<compile_context>
chip_gen: v7x
topology: tpu7x:2x2x1
jax: 0.10.0
libtpu: 0.0.40
codegen_flags: <defaults>
</compile_context>

<pallas_src>
import functools
import math

import jax
import jax.numpy as jnp
from jax import lax
from jax.experimental import pallas as pl
from jax.experimental.pallas import tpu as pltpu


# ----------------------------------------------------------------------------
# Model configuration (small, deterministic)
# ----------------------------------------------------------------------------
BACKBONE_CH = (8, 16, 32, 64)     # strides 4, 8, 16, 32
JPU_MID = 16                      # JPU mid_channels
JPU_DILATIONS = (1, 2, 4, 8)
HEAD_FEATS = 32
NUM_CLASSES = 19
ALIGN_CORNERS = False
TARGET_ROWS = 2048                # ~rows per grid step for conv kernels (review item 7)
TINY_ROWS = 64                    # below this a pallas_call is launch-overhead bound


def _pick_tile(total, target):
    """Largest divisor of `total` that is <= target (so the grid tiles exactly)."""
    t = max(1, min(total, target))
    while total % t:
        t -= 1
    return t


def _const_spec(shape):
    """Full-array block that stays resident across the whole grid."""
    zeros = (0,) * len(shape)
    return pl.BlockSpec(shape, lambda *_: zeros)


def _compiler_params(grid_rank, block_bytes):
    """Parallel grid axes + an explicit (generous, clamped) scoped-VMEM budget."""
    limit = int(min(max(4 * int(block_bytes), 16 * 2**20), 64 * 2**20))
    return pltpu.CompilerParams(
        dimension_semantics=("parallel",) * grid_rank,
        vmem_limit_bytes=limit)


# ----------------------------------------------------------------------------
# Pallas kernels
# ----------------------------------------------------------------------------
def _conv3x3_kernel(x_ref, w_ref, s_ref, b_ref, o_ref, *, th, w, relu):
    """3x3 'same' conv + folded BN (+ReLU), no HBM im2col.

    x_ref: (1, H+2, W+2, Cin) bf16, padded image, resident across the H-tile axis.
    Each grid step slices its (th+2)-row halo window and accumulates 9 shifted
    bf16 MXU matmuls in f32.  W-shifted slabs are loaded once per kx and reused
    for all 3 ky taps.
    """
    c_in = x_ref.shape[-1]
    c_out = o_ref.shape[-1]
    rows = th * w
    h0 = pl.multiple_of(pl.program_id(1) * th, th)
    acc = None
    for kx in range(3):
        slab = x_ref[:, pl.ds(h0, th + 2), kx:kx + w, :]          # (1, th+2, w, Cin) bf16
        for ky in range(3):
            patch = slab[:, ky:ky + th].reshape(rows, c_in)
            t = jnp.dot(patch, w_ref[ky * 3 + kx],
                        preferred_element_type=jnp.float32)
            acc = t if acc is None else acc + t
    y = acc * s_ref[...] + b_ref[...]
    if relu:
        y = jnp.maximum(y, 0.0)
    o_ref[...] = y.astype(o_ref.dtype).reshape(1, th, w, c_out)


def _jpu_branches_kernel(xp_ref, dww_ref, dws_ref, dwb_ref, pww_ref, pws_ref, pwb_ref,
                         o_ref, *, th, w, dilations, mid):
    """All four JPU dilated depthwise-separable branches, fused and row-tiled.

    xp_ref is padded once to the max dilation D and resident per batch element.
    Per branch: 3 W-shifted slabs (reused across the 3 ky taps) feed the f32 VPU
    depthwise accumulate + BN + ReLU; the four branch outputs are concatenated
    along channels (bf16) and hit the MXU once through the block-diagonal
    (4*C, 4*mid) pointwise weight, then pointwise BN + ReLU and one lane-dense
    64-wide bf16 store.
    """
    D = max(dilations)
    nb = len(dilations)
    c = xp_ref.shape[-1]
    rows = th * w
    h0 = pl.multiple_of(pl.program_id(1) * th, th)
    branch_feats = []
    for b, d in enumerate(dilations):
        off = D - d
        acc = None
        for kx in range(3):
            # one W-shifted slab per (branch, kx); reused for all 3 ky taps
            slab = xp_ref[:, pl.ds(h0, th + 2 * D),
                          off + kx * d: off + kx * d + w, :].astype(jnp.float32)
            for ky in range(3):
                patch = slab[:, off + ky * d: off + ky * d + th]   # (1, th, w, c)
                term = patch * dww_ref[b * 9 + ky * 3 + kx]
                acc = term if acc is None else acc + term
        y = jnp.maximum(acc * dws_ref[b] + dwb_ref[b], 0.0)        # depthwise BN + ReLU
        branch_feats.append(y.reshape(rows, c).astype(jnp.bfloat16))
    cat = jnp.concatenate(branch_feats, axis=-1)                   # (rows, nb*c) bf16
    out = jnp.dot(cat, pww_ref[...], preferred_element_type=jnp.float32)
    out = jnp.maximum(out * pws_ref[...] + pwb_ref[...], 0.0)      # pointwise BN + ReLU
    o_ref[...] = out.astype(o_ref.dtype).reshape(1, th, w, nb * mid)


def _head_kernel(x_ref, w1_ref, s1_ref, b1_ref, w2_ref, b2_ref, o_ref, *, th, w):
    """Fused FCN head: 3x3 conv (halo-sliced, 9 shifted MXU matmuls) + BN + ReLU,
    dropout (identity in eval/TEST mode), then the 1x1 classifier — the HEAD_FEATS
    intermediate never leaves VMEM/vregs."""
    c_in = x_ref.shape[-1]
    n_cls = o_ref.shape[-1]
    rows = th * w
    h0 = pl.multiple_of(pl.program_id(1) * th, th)
    acc = None
    for kx in range(3):
        slab = x_ref[:, pl.ds(h0, th + 2), kx:kx + w, :]           # (1, th+2, w, Cin) bf16
        for ky in range(3):
            patch = slab[:, ky:ky + th].reshape(rows, c_in)
            t = jnp.dot(patch, w1_ref[ky * 3 + kx],
                        preferred_element_type=jnp.float32)
            acc = t if acc is None else acc + t
    y = jnp.maximum(acc * s1_ref[...] + b1_ref[...], 0.0)
    # dropout: identity in eval (TEST) mode
    z = jnp.dot(y.astype(jnp.bfloat16), w2_ref[...], preferred_element_type=jnp.float32)
    o_ref[...] = (z + b2_ref[...]).astype(o_ref.dtype).reshape(1, th, w, n_cls)


# ----------------------------------------------------------------------------
# Thin wrappers around pallas_call
# ----------------------------------------------------------------------------
def conv3x3_bn_relu(x, w9, scale, bias, *, out_dtype=jnp.bfloat16):
    """3x3 conv (stride 1, 'same') + folded BN + ReLU.  Pallas for real-size maps;
    tiny maps stay in plain XLA (launch overhead would dominate — review item 8)."""
    N, H, W, C = x.shape
    Cout = w9.shape[-1]
    if N * H * W <= TINY_ROWS:
        w_hwio = w9.reshape(3, 3, C, Cout).astype(x.dtype)
        y = lax.conv_general_dilated(x, w_hwio, (1, 1), 'SAME',
                                     dimension_numbers=('NHWC', 'HWIO', 'NHWC'))
        y = jnp.maximum(y.astype(jnp.float32) * scale + bias, 0.0)
        return y.astype(out_dtype)

    xp = jnp.pad(x.astype(jnp.bfloat16), ((0, 0), (1, 1), (1, 1), (0, 0)))
    Hp, Wp = H + 2, W + 2
    th = _pick_tile(H, max(1, TARGET_ROWS // W))
    kern = functools.partial(_conv3x3_kernel, th=th, w=W, relu=True)
    block_bytes = Hp * Wp * C * 2 + 9 * C * Cout * 2 + 2 * th * W * Cout * 4
    return pl.pallas_call(
        kern,
        out_shape=jax.ShapeDtypeStruct((N, H, W, Cout), out_dtype),
        grid=(N, H // th),
        in_specs=[
            pl.BlockSpec((1, Hp, Wp, C), lambda n, h: (n, 0, 0, 0)),
            _const_spec((9, C, Cout)),
            _const_spec((1, Cout)),
            _const_spec((1, Cout)),
        ],
        out_specs=pl.BlockSpec((1, th, W, Cout), lambda n, h: (n, h, 0, 0)),
        compiler_params=_compiler_params(2, block_bytes),
        cost_estimate=pl.CostEstimate(
            flops=2 * N * H * W * 9 * C * Cout, transcendentals=0,
            bytes_accessed=N * (Hp * Wp * C * 2 + H * W * Cout * 2) + 9 * C * Cout * 2),
    )(xp, w9.astype(jnp.bfloat16),
      scale.reshape(1, Cout).astype(jnp.float32),
      bias.reshape(1, Cout).astype(jnp.float32))


def jpu_branches(feat, dp):
    """Fused 4-branch JPU dilation block: one pallas_call, padded once (to D=8),
    row-tiled grid, 12 hoisted W-shifted slabs, one block-diagonal pointwise dot,
    lane-dense 64-wide bf16 output."""
    N, H, W, C = feat.shape
    D = max(JPU_DILATIONS)
    nb = len(JPU_DILATIONS)
    Cout = JPU_MID * nb
    xp = jnp.pad(feat.astype(jnp.bfloat16), ((0, 0), (D, D), (D, D), (0, 0)))
    Hp, Wp = H + 2 * D, W + 2 * D
    th = _pick_tile(H, max(1, 1024 // W))
    kern = functools.partial(_jpu_branches_kernel, th=th, w=W,
                             dilations=JPU_DILATIONS, mid=JPU_MID)
    block_bytes = (Hp * Wp * C * 2 + nb * 9 * C * 4 + nb * C * Cout * 2
                   + 2 * th * W * Cout * 2 + 2 * (th + 2 * D) * W * C * 4)
    return pl.pallas_call(
        kern,
        out_shape=jax.ShapeDtypeStruct((N, H, W, Cout), jnp.bfloat16),
        grid=(N, H // th),
        in_specs=[
            pl.BlockSpec((1, Hp, Wp, C), lambda n, h: (n, 0, 0, 0)),
            _const_spec(dp['dww'].shape),
            _const_spec(dp['dws'].shape),
            _const_spec(dp['dwb'].shape),
            _const_spec(dp['pww'].shape),
            _const_spec(dp['pws'].shape),
            _const_spec(dp['pwb'].shape),
        ],
        out_specs=pl.BlockSpec((1, th, W, Cout), lambda n, h: (n, h, 0, 0)),
        compiler_params=_compiler_params(2, block_bytes),
        cost_estimate=pl.CostEstimate(
            flops=N * H * W * (2 * nb * 9 * C + 2 * nb * C * Cout),
            transcendentals=0,
            bytes_accessed=N * (Hp * Wp * C * 2 + H * W * Cout * 2)),
    )(xp, dp['dww'], dp['dws'], dp['dwb'], dp['pww'], dp['pws'], dp['pwb'])


def fcn_head(x, hp):
    """Fused FCN decoder head (3x3 conv + BN + ReLU -> dropout(eval) -> 1x1 classifier),
    no HBM im2col; row-tiled (N, H/th) grid."""
    # TODO(synk): classifier Cout=19 gives a <128-lane (masked) store; pad to a wider,
    # zero-padded Cout on v5e if the output resolution grows.
    N, H, W, C = x.shape
    xp = jnp.pad(x.astype(jnp.bfloat16), ((0, 0), (1, 1), (1, 1), (0, 0)))
    Hp, Wp = H + 2, W + 2
    th = _pick_tile(H, max(1, TARGET_ROWS // W))
    kern = functools.partial(_head_kernel, th=th, w=W)
    block_bytes = (Hp * Wp * C * 2 + 9 * C * HEAD_FEATS * 2
                   + HEAD_FEATS * NUM_CLASSES * 2 + 2 * th * W * NUM_CLASSES * 4)
    return pl.pallas_call(
        kern,
        out_shape=jax.ShapeDtypeStruct((N, H, W, NUM_CLASSES), jnp.float32),
        grid=(N, H // th),
        in_specs=[
            pl.BlockSpec((1, Hp, Wp, C), lambda n, h: (n, 0, 0, 0)),
            _const_spec((9, C, HEAD_FEATS)),
            _const_spec((1, HEAD_FEATS)),
            _const_spec((1, HEAD_FEATS)),
            _const_spec((HEAD_FEATS, NUM_CLASSES)),
            _const_spec((1, NUM_CLASSES)),
        ],
        out_specs=pl.BlockSpec((1, th, W, NUM_CLASSES), lambda n, h: (n, h, 0, 0)),
        compiler_params=_compiler_params(2, block_bytes),
        cost_estimate=pl.CostEstimate(
            flops=2 * N * H * W * (9 * C * HEAD_FEATS + HEAD_FEATS * NUM_CLASSES),
            transcendentals=0,
            bytes_accessed=N * (Hp * Wp * C * 2 + H * W * NUM_CLASSES * 4)),
    )(xp,
      hp['w1'].astype(jnp.bfloat16),
      hp['s1'].reshape(1, -1).astype(jnp.float32),
      hp['b1'].reshape(1, -1).astype(jnp.float32),
      hp['w2'].astype(jnp.bfloat16),
      hp['b2'].reshape(1, -1).astype(jnp.float32))


# ----------------------------------------------------------------------------
# JAX glue: bilinear resize as matmuls, avg pool, BN fold
# ----------------------------------------------------------------------------
def _interp_matrix(out_size, in_size, align_corners=False):
    if align_corners and out_size > 1:
        src = jnp.arange(out_size, dtype=jnp.float32) * ((in_size - 1) / (out_size - 1))
    else:
        src = (jnp.arange(out_size, dtype=jnp.float32) + 0.5) * (in_size / out_size) - 0.5
    src = jnp.clip(src, 0.0, in_size - 1)
    i0 = jnp.floor(src).astype(jnp.int32)
    i1 = jnp.minimum(i0 + 1, in_size - 1)
    f = (src - i0.astype(jnp.float32))[:, None]
    cols = jnp.arange(in_size, dtype=jnp.int32)[None, :]
    return ((cols == i0[:, None]).astype(jnp.float32) * (1.0 - f)
            + (cols == i1[:, None]).astype(jnp.float32) * f)


def bilinear_resize(x, out_h, out_w, align_corners=False):
    """PyTorch F.interpolate(bilinear) as two interpolation-matrix matmuls."""
    n, h, w, c = x.shape
    ry = _interp_matrix(out_h, h, align_corners)     # (out_h, h)
    rx = _interp_matrix(out_w, w, align_corners)     # (out_w, w)
    y = jnp.einsum('oh,nhwc->nowc', ry, x.astype(jnp.float32))
    return jnp.einsum('pw,nowc->nopc', rx, y)


def avg_pool(x, s):
    N, H, W, C = x.shape                             # assumes H, W divisible by s
    return x.reshape(N, H // s, s, W // s, s, C).mean(axis=(2, 4))


def fold_bn(gamma, beta, mean, var, eps=1e-5):
    scale = gamma / jnp.sqrt(var + eps)
    bias = beta - mean * scale
    return scale, bias


# ----------------------------------------------------------------------------
# Parameter init
# ----------------------------------------------------------------------------
def _init_conv(key, kh, kw, cin, cout):
    fan_in = kh * kw * cin
    return jax.random.normal(key, (kh, kw, cin, cout), jnp.float32) / math.sqrt(fan_in)


def _init_bn(key, c):
    k1, k2, k3, k4 = jax.random.split(key, 4)
    gamma = 1.0 + 0.1 * jax.random.normal(k1, (c,), jnp.float32)
    beta = 0.1 * jax.random.normal(k2, (c,), jnp.float32)
    mean = 0.1 * jax.random.normal(k3, (c,), jnp.float32)
    var = 1.0 + 0.1 * jnp.abs(jax.random.normal(k4, (c,), jnp.float32))
    return fold_bn(gamma, beta, mean, var)


def init_params(key):
    keys = iter(jax.random.split(key, 64))
    p = {}

    # TODO(synk): the configurable ResNet backbone lives outside this module
    # (cfg['backbone']); a tiny deterministic stand-in (avg-pool + 1x1 conv+BN+ReLU per
    # stage, kept in plain XLA per perf review) is used instead.
    prev = 3
    p['backbone'] = []
    for c in BACKBONE_CH:
        w = _init_conv(next(keys), 1, 1, prev, c)[0, 0]
        scale, bias = _init_bn(next(keys), c)
        p['backbone'].append({'w': w, 'scale': scale, 'bias': bias})
        prev = c

    # JPU neck: per-level 3x3 conv+BN+ReLU + fused dilated branches.
    jpu = {'convs': []}
    for c in BACKBONE_CH[1:]:
        w9 = _init_conv(next(keys), 3, 3, c, JPU_MID).reshape(9, c, JPU_MID)
        scale, bias = _init_bn(next(keys), JPU_MID)
        jpu['convs'].append({'w9': w9, 'scale': scale, 'bias': bias})

    cat_c = JPU_MID * len(BACKBONE_CH[1:])
    nb = len(JPU_DILATIONS)
    dww, dws, dwb, pws, pwb = [], [], [], [], []
    pww = jnp.zeros((nb * cat_c, nb * JPU_MID), jnp.float32)   # block-diagonal pointwise
    for b in range(nb):
        dw_w = _init_conv(next(keys), 3, 3, 1, cat_c).reshape(9, 1, cat_c)
        dsc, dbi = _init_bn(next(keys), cat_c)
        dww.append(dw_w); dws.append(dsc); dwb.append(dbi)
        pw_w = _init_conv(next(keys), 1, 1, cat_c, JPU_MID)[0, 0]
        pww = pww.at[b * cat_c:(b + 1) * cat_c,
                     b * JPU_MID:(b + 1) * JPU_MID].set(pw_w)
        psc, pbi = _init_bn(next(keys), JPU_MID)
        pws.append(psc); pwb.append(pbi)
    jpu['dil'] = {
        'dww': jnp.concatenate(dww, axis=0),            # (nb*9, 1, cat_c)  f32 VPU taps
        'dws': jnp.stack(dws, axis=0)[:, None, :],      # (nb, 1, cat_c)
        'dwb': jnp.stack(dwb, axis=0)[:, None, :],      # (nb, 1, cat_c)
        'pww': pww.astype(jnp.bfloat16),                # (nb*cat_c, nb*mid) block-diag
        'pws': jnp.concatenate(pws)[None, :],           # (1, nb*mid)
        'pwb': jnp.concatenate(pwb)[None, :],           # (1, nb*mid)
    }
    p['jpu'] = jpu

    # FCN decoder head: 3x3 conv+BN+ReLU -> dropout(eval) -> 1x1 classifier (with bias).
    head_in = JPU_MID * nb
    s1, b1 = _init_bn(next(keys), HEAD_FEATS)
    p['head'] = {
        'w1': _init_conv(next(keys), 3, 3, head_in, HEAD_FEATS).reshape(9, head_in,
                                                                        HEAD_FEATS),
        's1': s1, 'b1': b1,
        'w2': _init_conv(next(keys), 1, 1, HEAD_FEATS, NUM_CLASSES)[0, 0],
        'b2': 0.01 * jax.random.normal(next(keys), (NUM_CLASSES,), jnp.float32),
    }
    return p


# ----------------------------------------------------------------------------
# Forward pass
# ----------------------------------------------------------------------------
def jpu_forward(xs, p):
    """JPU neck. xs: 4 NHWC backbone features; returns (xs[1], xs[2], concat_feat)."""
    feats = []
    for i, fp in enumerate(p['convs']):
        feats.append(conv3x3_bn_relu(xs[1 + i], fp['w9'], fp['scale'], fp['bias'],
                                     out_dtype=jnp.bfloat16))
    H, W = feats[0].shape[1:3]
    up = [feats[0].astype(jnp.bfloat16)]
    for f in feats[1:]:
        up.append(bilinear_resize(f, H, W, ALIGN_CORNERS).astype(jnp.bfloat16))
    feat = jnp.concatenate(up, axis=-1)                         # (N, H, W, 48) bf16
    concat_feat = jpu_branches(feat, p['dil'])                  # (N, H, W, 64) bf16
    return (xs[1], xs[2], concat_feat)


def fastfcn_forward(x_nchw, params):
    N, _, Hin, Win = x_nchw.shape
    x = jnp.transpose(x_nchw, (0, 2, 3, 1)).astype(jnp.float32)   # NCHW -> NHWC

    # Backbone stand-in: 4 features at strides 4/8/16/32.  Plain XLA (1x1 conv stages
    # with only a few hundred rows would be launch-overhead bound as pallas_calls).
    feats = []
    cur = x
    for s, bp in zip((4, 2, 2, 2), params['backbone']):
        cur = avg_pool(cur, s)                     # assumes H, W divisible by the stride
        cur = jnp.maximum(cur @ bp['w'] * bp['scale'] + bp['bias'], 0.0)
        cur = cur.astype(jnp.bfloat16)             # only consumers are bf16 matmuls
        feats.append(cur)

    # transforminputs(selected_indices=(0,1,2,3)) -> JPU neck
    outs = jpu_forward([feats[0], feats[1], feats[2], feats[3]], params['jpu'])

    # FCN decoder head on outs[-1] (fused conv3x3+BN+ReLU + dropout(eval) + classifier)
    logits = fcn_head(outs[-1], params['head'])

    # upsample seg logits to input resolution
    logits = bilinear_resize(logits, Hin, Win, ALIGN_CORNERS)
    return jnp.transpose(logits, (0, 3, 1, 2))                    # NHWC -> NCHW


if __name__ == "__main__":
    key = jax.random.PRNGKey(0)
    k_params, k_x = jax.random.split(key)
    params = init_params(k_params)
    x = jax.random.normal(k_x, (2, 3, 64, 64), jnp.float32)       # NCHW input image

    out = jax.jit(fastfcn_forward)(x, params)
    out = jax.block_until_ready(out)

    assert out.shape == (2, NUM_CLASSES, 64, 64), out.shape
    assert out.dtype == jnp.float32
    assert bool(jnp.all(jnp.isfinite(out)))
    print("KERNEL_OK")
</pallas_src>

<mosaic_0001>
module attributes {stable_mosaic.version = 11 : i64} {
  func.func @_conv3x3_kernel(%arg0: i32, %arg1: i32, %arg2: memref<1x10x10x16xbf16, #tpu.memory_space<vmem>>, %arg3: memref<9x16x16xbf16, #tpu.memory_space<vmem>>, %arg4: memref<1x16xf32, #tpu.memory_space<vmem>>, %arg5: memref<1x16xf32, #tpu.memory_space<vmem>>, %arg6: memref<1x8x8x16xbf16, #tpu.memory_space<vmem>>) attributes {dimension_semantics = [#tpu.dimension_semantics<parallel>, #tpu.dimension_semantics<parallel>], iteration_bounds = array<i64: 2, 1>, scalar_prefetch = 0 : i64, scratch_operands = 0 : i64, tpu.core_type = #tpu.core_type<tc>, window_params = [{transform_indices = @transform_0, window_bounds = array<i64: 1, 10, 10, 16>}, {pipeline_mode = #tpu.pipeline_mode<synchronous>, transform_indices = @transform_1, window_bounds = array<i64: 9, 16, 16>}, {pipeline_mode = #tpu.pipeline_mode<synchronous>, transform_indices = @transform_2, window_bounds = array<i64: 1, 16>}, {pipeline_mode = #tpu.pipeline_mode<synchronous>, transform_indices = @transform_3, window_bounds = array<i64: 1, 16>}, {transform_indices = @transform_4, window_bounds = array<i64: 1, 8, 8, 16>}]} {
    %c8_i32 = arith.constant 8 : i32
    %0 = arith.muli %arg1, %c8_i32 : i32
    %1 = tpu.assume_multiple %0, 8 : i32
    %c0 = arith.constant 0 : index
    %2 = arith.index_cast %1 : i32 to index
    %c0_0 = arith.constant 0 : index
    %c0_1 = arith.constant 0 : index
    %3 = vector.load %arg2[%c0, %2, %c0_0, %c0_1] : memref<1x10x10x16xbf16, #tpu.memory_space<vmem>>, vector<1x10x8x16xbf16>
    %4 = vector.extract_strided_slice %3 {offsets = [0, 0, 0, 0], sizes = [1, 8, 8, 16], strides = [1, 1, 1, 1]} : vector<1x10x8x16xbf16> to vector<1x8x8x16xbf16>
    %5 = vector.shape_cast %4 : vector<1x8x8x16xbf16> to vector<64x16xbf16>
    %c0_2 = arith.constant 0 : index
    %c0_3 = arith.constant 0 : index
    %c0_4 = arith.constant 0 : index
    %6 = vector.load %arg3[%c0_2, %c0_3, %c0_4] : memref<9x16x16xbf16, #tpu.memory_space<vmem>>, vector<1x16x16xbf16>
    %7 = vector.shape_cast %6 : vector<1x16x16xbf16> to vector<16x16xbf16>
    %cst = arith.constant dense<0.000000e+00> : vector<64x16xf32>
    %8 = tpu.matmul %5, %7, %cst {dimension_numbers = #tpu.dot_dimension_numbers<[1], [0], [0], [1], [0, 0, 1, 1], [], []>} : vector<64x16xbf16>, vector<16x16xbf16>, vector<64x16xf32> -> vector<64x16xf32>
    %9 = vector.extract_strided_slice %3 {offsets = [0, 1, 0, 0], sizes = [1, 8, 8, 16], strides = [1, 1, 1, 1]} : vector<1x10x8x16xbf16> to vector<1x8x8x16xbf16>
    %10 = vector.shape_cast %9 : vector<1x8x8x16xbf16> to vector<64x16xbf16>
    %c3 = arith.constant 3 : index
    %c0_5 = arith.constant 0 : index
    %c0_6 = arith.constant 0 : index
    %11 = vector.load %arg3[%c3, %c0_5, %c0_6] : memref<9x16x16xbf16, #tpu.memory_space<vmem>>, vector<1x16x16xbf16>
    %12 = vector.shape_cast %11 : vector<1x16x16xbf16> to vector<16x16xbf16>
    %cst_7 = arith.constant dense<0.000000e+00> : vector<64x16xf32>
    %13 = tpu.matmul %10, %12, %cst_7 {dimension_numbers = #tpu.dot_dimension_numbers<[1], [0], [0], [1], [0, 0, 1, 1], [], []>} : vector<64x16xbf16>, vector<16x16xbf16>, vector<64x16xf32> -> vector<64x16xf32>
    %14 = arith.addf %8, %13 : vector<64x16xf32>
    %15 = vector.extract_strided_slice %3 {offsets = [0, 2, 0, 0], sizes = [1, 8, 8, 16], strides = [1, 1, 1, 1]} : vector<1x10x8x16xbf16> to vector<1x8x8x16xbf16>
    %16 = vector.shape_cast %15 : vector<1x8x8x16xbf16> to vector<64x16xbf16>
    %c6 = arith.constant 6 : index
    %c0_8 = arith.constant 0 : index
    %c0_9 = arith.constant 0 : index
    %17 = vector.load %arg3[%c6, %c0_8, %c0_9] : memref<9x16x16xbf16, #tpu.memory_space<vmem>>, vector<1x16x16xbf16>
    %18 = vector.shape_cast %17 : vector<1x16x16xbf16> to vector<16x16xbf16>
    %cst_10 = arith.constant dense<0.000000e+00> : vector<64x16xf32>
    %19 = tpu.matmul %16, %18, %cst_10 {dimension_numbers = #tpu.dot_dimension_numbers<[1], [0], [0], [1], [0, 0, 1, 1], [], []>} : vector<64x16xbf16>, vector<16x16xbf16>, vector<64x16xf32> -> vector<64x16xf32>
    %20 = arith.addf %14, %19 : vector<64x16xf32>
    %c0_11 = arith.constant 0 : index
    %21 = arith.index_cast %1 : i32 to index
    %c1 = arith.constant 1 : index
    %c0_12 = arith.constant 0 : index
    %22 = vector.load %arg2[%c0_11, %21, %c1, %c0_12] : memref<1x10x10x16xbf16, #tpu.memory_space<vmem>>, vector<1x10x8x16xbf16>
    %23 = vector.extract_strided_slice %22 {offsets = [0, 0, 0, 0], sizes = [1, 8, 8, 16], strides = [1, 1, 1, 1]} : vector<1x10x8x16xbf16> to vector<1x8x8x16xbf16>
    %24 = vector.shape_cast %23 : vector<1x8x8x16xbf16> to vector<64x16xbf16>
    %c1_13 = arith.constant 1 : index
    %c0_14 = arith.constant 0 : index
    %c0_15 = arith.constant 0 : index
    %25 = vector.load %arg3[%c1_13, %c0_14, %c0_15] : memref<9x16x16xbf16, #tpu.memory_space<vmem>>, vector<1x16x16xbf16>
    %26 = vector.shape_cast %25 : vector<1x16x16xbf16> to vector<16x16xbf16>
    %cst_16 = arith.constant dense<0.000000e+00> : vector<64x16xf32>
    %27 = tpu.matmul %24, %26, %cst_16 {dimension_numbers = #tpu.dot_dimension_numbers<[1], [0], [0], [1], [0, 0, 1, 1], [], []>} : vector<64x16xbf16>, vector<16x16xbf16>, vector<64x16xf32> -> vector<64x16xf32>
    %28 = arith.addf %20, %27 : vector<64x16xf32>
    %29 = vector.extract_strided_slice %22 {offsets = [0, 1, 0, 0], sizes = [1, 8, 8, 16], strides = [1, 1, 1, 1]} : vector<1x10x8x16xbf16> to vector<1x8x8x16xbf16>
    %30 = vector.shape_cast %29 : vector<1x8x8x16xbf16> to vector<64x16xbf16>
    %c4 = arith.constant 4 : index
    %c0_17 = arith.constant 0 : index
    %c0_18 = arith.constant 0 : index
    %31 = vector.load %arg3[%c4, %c0_17, %c0_18] : memref<9x16x16xbf16, #tpu.memory_space<vmem>>, vector<1x16x16xbf16>
    %32 = vector.shape_cast %31 : vector<1x16x16xbf16> to vector<16x16xbf16>
    %cst_19 = arith.constant dense<0.000000e+00> : vector<64x16xf32>
    %33 = tpu.matmul %30, %32, %cst_19 {dimension_numbers = #tpu.dot_dimension_numbers<[1], [0], [0], [1], [0, 0, 1, 1], [], []>} : vector<64x16xbf16>, vector<16x16xbf16>, vector<64x16xf32> -> vector<64x16xf32>
    %34 = arith.addf %28, %33 : vector<64x16xf32>
    %35 = vector.extract_strided_slice %22 {offsets = [0, 2, 0, 0], sizes = [1, 8, 8, 16], strides = [1, 1, 1, 1]} : vector<1x10x8x16xbf16> to vector<1x8x8x16xbf16>
    %36 = vector.shape_cast %35 : vector<1x8x8x16xbf16> to vector<64x16xbf16>
    %c7 = arith.constant 7 : index
    %c0_20 = arith.constant 0 : index
    %c0_21 = arith.constant 0 : index
    %37 = vector.load %arg3[%c7, %c0_20, %c0_21] : memref<9x16x16xbf16, #tpu.memory_space<vmem>>, vector<1x16x16xbf16>
    %38 = vector.shape_cast %37 : vector<1x16x16xbf16> to vector<16x16xbf16>
    %cst_22 = arith.constant dense<0.000000e+00> : vector<64x16xf32>
    %39 = tpu.matmul %36, %38, %cst_22 {dimension_numbers = #tpu.dot_dimension_numbers<[1], [0], [0], [1], [0, 0, 1, 1], [], []>} : vector<64x16xbf16>, vector<16x16xbf16>, vector<64x16xf32> -> vector<64x16xf32>
    %40 = arith.addf %34, %39 : vector<64x16xf32>
    %c0_23 = arith.constant 0 : index
    %41 = arith.index_cast %1 : i32 to index
    %c2 = arith.constant 2 : index
    %c0_24 = arith.constant 0 : index
    %42 = vector.load %arg2[%c0_23, %41, %c2, %c0_24] : memref<1x10x10x16xbf16, #tpu.memory_space<vmem>>, vector<1x10x8x16xbf16>
    %43 = vector.extract_strided_slice %42 {offsets = [0, 0, 0, 0], sizes = [1, 8, 8, 16], strides = [1, 1, 1, 1]} : vector<1x10x8x16xbf16> to vector<1x8x8x16xbf16>
    %44 = vector.shape_cast %43 : vector<1x8x8x16xbf16> to vector<64x16xbf16>
    %c2_25 = arith.constant 2 : index
    %c0_26 = arith.constant 0 : index
    %c0_27 = arith.constant 0 : index
    %45 = vector.load %arg3[%c2_25, %c0_26, %c0_27] : memref<9x16x16xbf16, #tpu.memory_space<vmem>>, vector<1x16x16xbf16>
    %46 = vector.shape_cast %45 : vector<1x16x16xbf16> to vector<16x16xbf16>
    %cst_28 = arith.constant dense<0.000000e+00> : vector<64x16xf32>
    %47 = tpu.matmul %44, %46, %cst_28 {dimension_numbers = #tpu.dot_dimension_numbers<[1], [0], [0], [1], [0, 0, 1, 1], [], []>} : vector<64x16xbf16>, vector<16x16xbf16>, vector<64x16xf32> -> vector<64x16xf32>
    %48 = arith.addf %40, %47 : vector<64x16xf32>
    %49 = vector.extract_strided_slice %42 {offsets = [0, 1, 0, 0], sizes = [1, 8, 8, 16], strides = [1, 1, 1, 1]} : vector<1x10x8x16xbf16> to vector<1x8x8x16xbf16>
    %50 = vector.shape_cast %49 : vector<1x8x8x16xbf16> to vector<64x16xbf16>
    %c5 = arith.constant 5 : index
    %c0_29 = arith.constant 0 : index
    %c0_30 = arith.constant 0 : index
    %51 = vector.load %arg3[%c5, %c0_29, %c0_30] : memref<9x16x16xbf16, #tpu.memory_space<vmem>>, vector<1x16x16xbf16>
    %52 = vector.shape_cast %51 : vector<1x16x16xbf16> to vector<16x16xbf16>
    %cst_31 = arith.constant dense<0.000000e+00> : vector<64x16xf32>
    %53 = tpu.matmul %50, %52, %cst_31 {dimension_numbers = #tpu.dot_dimension_numbers<[1], [0], [0], [1], [0, 0, 1, 1], [], []>} : vector<64x16xbf16>, vector<16x16xbf16>, vector<64x16xf32> -> vector<64x16xf32>
    %54 = arith.addf %48, %53 : vector<64x16xf32>
    %55 = vector.extract_strided_slice %42 {offsets = [0, 2, 0, 0], sizes = [1, 8, 8, 16], strides = [1, 1, 1, 1]} : vector<1x10x8x16xbf16> to vector<1x8x8x16xbf16>
    %56 = vector.shape_cast %55 : vector<1x8x8x16xbf16> to vector<64x16xbf16>
    %c8 = arith.constant 8 : index
    %c0_32 = arith.constant 0 : index
    %c0_33 = arith.constant 0 : index
    %57 = vector.load %arg3[%c8, %c0_32, %c0_33] : memref<9x16x16xbf16, #tpu.memory_space<vmem>>, vector<1x16x16xbf16>
    %58 = vector.shape_cast %57 : vector<1x16x16xbf16> to vector<16x16xbf16>
    %cst_34 = arith.constant dense<0.000000e+00> : vector<64x16xf32>
    %59 = tpu.matmul %56, %58, %cst_34 {dimension_numbers = #tpu.dot_dimension_numbers<[1], [0], [0], [1], [0, 0, 1, 1], [], []>} : vector<64x16xbf16>, vector<16x16xbf16>, vector<64x16xf32> -> vector<64x16xf32>
    %60 = arith.addf %54, %59 : vector<64x16xf32>
    %c0_35 = arith.constant 0 : index
    %c0_36 = arith.constant 0 : index
    %61 = vector.load %arg4[%c0_35, %c0_36] : memref<1x16xf32, #tpu.memory_space<vmem>>, vector<1x16xf32>
    %62 = vector.broadcast %61 : vector<1x16xf32> to vector<64x16xf32>
    %63 = arith.mulf %60, %62 : vector<64x16xf32>
    %c0_37 = arith.constant 0 : index
    %c0_38 = arith.constant 0 : index
    %64 = vector.load %arg5[%c0_37, %c0_38] : memref<1x16xf32, #tpu.memory_space<vmem>>, vector<1x16xf32>
    %65 = vector.broadcast %64 : vector<1x16xf32> to vector<64x16xf32>
    %66 = arith.addf %63, %65 : vector<64x16xf32>
    %cst_39 = arith.constant 0.000000e+00 : f32
    %67 = vector.broadcast %cst_39 : f32 to vector<64x16xf32>
    %68 = arith.maximumf %66, %67 : vector<64x16xf32>
    %69 = arith.truncf %68 : vector<64x16xf32> to vector<64x16xbf16>
    %70 = vector.shape_cast %69 : vector<64x16xbf16> to vector<1x8x8x16xbf16>
    %c0_40 = arith.constant 0 : index
    %c0_41 = arith.constant 0 : index
    %c0_42 = arith.constant 0 : index
    %c0_43 = arith.constant 0 : index
    %71 = vector.load %arg6[%c0_40, %c0_41, %c0_42, %c0_43] : memref<1x8x8x16xbf16, #tpu.memory_space<vmem>>, vector<1x8x8x16xbf16>
    tpu.vector_store %arg6[%c0_40, %c0_41, %c0_42, %c0_43], %70 {strides = array<i32>} : memref<1x8x8x16xbf16, #tpu.memory_space<vmem>>, vector<1x8x8x16xbf16>,
    return
  }
  func.func @transform_0(%arg0: i32, %arg1: i32) -> (i32, i32, i32, i32) {
    %c0_i32 = arith.constant 0 : i32
    %c0_i32_0 = arith.constant 0 : i32
    %c0_i32_1 = arith.constant 0 : i32
    %c0_i32_2 = arith.constant 0 : i32
    return %arg0, %c0_i32, %c0_i32_0, %c0_i32_1 : i32, i32, i32, i32
  }
  func.func @transform_1(%arg0: i32, %arg1: i32) -> (i32, i32, i32) {
    %c0_i32 = arith.constant 0 : i32
    %c0_i32_0 = arith.constant 0 : i32
    %c0_i32_1 = arith.constant 0 : i32
    %c0_i32_2 = arith.constant 0 : i32
    return %c0_i32, %c0_i32_0, %c0_i32_1 : i32, i32, i32
  }
  func.func @transform_2(%arg0: i32, %arg1: i32) -> (i32, i32) {
    %c0_i32 = arith.constant 0 : i32
    %c0_i32_0 = arith.constant 0 : i32
    %c0_i32_1 = arith.constant 0 : i32
    return %c0_i32, %c0_i32_0 : i32, i32
  }
  func.func @transform_3(%arg0: i32, %arg1: i32) -> (i32, i32) {
    %c0_i32 = arith.constant 0 : i32
    %c0_i32_0 = arith.constant 0 : i32
    %c0_i32_1 = arith.constant 0 : i32
    return %c0_i32, %c0_i32_0 : i32, i32
  }
  func.func @transform_4(%arg0: i32, %arg1: i32) -> (i32, i32, i32, i32) {
    %c0_i32 = arith.constant 0 : i32
    %c0_i32_0 = arith.constant 0 : i32
    %c0_i32_1 = arith.constant 0 : i32
    return %arg0, %arg1, %c0_i32, %c0_i32_0 : i32, i32, i32, i32
  }
}

module attributes {stable_mosaic.version = 11 : i64} {
  func.func @_jpu_branches_kernel(%arg0: i32, %arg1: i32, %arg2: memref<1x24x24x48xbf16, #tpu.memory_space<vmem>>, %arg3: memref<36x1x48xf32, #tpu.memory_space<vmem>>, %arg4: memref<4x1x48xf32, #tpu.memory_space<vmem>>, %arg5: memref<4x1x48xf32, #tpu.memory_space<vmem>>, %arg6: memref<192x64xbf16, #tpu.memory_space<vmem>>, %arg7: memref<1x64xf32, #tpu.memory_space<vmem>>, %arg8: memref<1x64xf32, #tpu.memory_space<vmem>>, %arg9: memref<1x8x8x64xbf16, #tpu.memory_space<vmem>>) attributes {dimension_semantics = [#tpu.dimension_semantics<parallel>, #tpu.dimension_semantics<parallel>], iteration_bounds = array<i64: 2, 1>, scalar_prefetch = 0 : i64, scratch_operands = 0 : i64, tpu.core_type = #tpu.core_type<tc>, window_params = [{transform_indices = @transform_0, window_bounds = array<i64: 1, 24, 24, 48>}, {pipeline_mode = #tpu.pipeline_mode<synchronous>, transform_indices = @transform_1, window_bounds = array<i64: 36, 1, 48>}, {pipeline_mode = #tpu.pipeline_mode<synchronous>, transform_indices = @transform_2, window_bounds = array<i64: 4, 1, 48>}, {pipeline_mode = #tpu.pipeline_mode<synchronous>, transform_indices = @transform_3, window_bounds = array<i64: 4, 1, 48>}, {pipeline_mode = #tpu.pipeline_mode<synchronous>, transform_indices = @transform_4, window_bounds = array<i64: 192, 64>}, {pipeline_mode = #tpu.pipeline_mode<synchronous>, transform_indices = @transform_5, window_bounds = array<i64: 1, 64>}, {pipeline_mode = #tpu.pipeline_mode<synchronous>, transform_indices = @transform_6, window_bounds = array<i64: 1, 64>}, {transform_indices = @transform_7, window_bounds = array<i64: 1, 8, 8, 64>}]} {
    %c8_i32 = arith.constant 8 : i32
    %0 = arith.muli %arg1, %c8_i32 : i32
    %1 = tpu.assume_multiple %0, 8 : i32
    %c0 = arith.constant 0 : index
    %2 = arith.index_cast %1 : i32 to index
    %c7 = arith.constant 7 : index
    %c0_0 = arith.constant 0 : index
    %3 = vector.load %arg2[%c0, %2, %c7, %c0_0] : memref<1x24x24x48xbf16, #tpu.memory_space<vmem>>, vector<1x24x8x48xbf16>
    %4 = arith.extf %3 : vector<1x24x8x48xbf16> to vector<1x24x8x48xf32>
    %5 = vector.extract_strided_slice %4 {offsets = [0, 7, 0, 0], sizes = [1, 8, 8, 48], strides = [1, 1, 1, 1]} : vector<1x24x8x48xf32> to vector<1x8x8x48xf32>
    %c0_1 = arith.constant 0 : index
    %c0_2 = arith.constant 0 : index
    %c0_3 = arith.constant 0 : index
    %6 = vector.load %arg3[%c0_1, %c0_2, %c0_3] : memref<36x1x48xf32, #tpu.memory_space<vmem>>, vector<1x1x48xf32>
    %7 = vector.shape_cast %6 : vector<1x1x48xf32> to vector<1x48xf32>
    %8 = vector.shape_cast %7 : vector<1x48xf32> to vector<1x1x1x48xf32>
    %9 = vector.broadcast %8 : vector<1x1x1x48xf32> to vector<1x8x8x48xf32>
    %10 = arith.mulf %5, %9 : vector<1x8x8x48xf32>
    %11 = vector.extract_strided_slice %4 {offsets = [0, 8, 0, 0], sizes = [1, 8, 8, 48], strides = [1, 1, 1, 1]} : vector<1x24x8x48xf32> to vector<1x8x8x48xf32>
    %c3 = arith.constant 3 : index
    %c0_4 = arith.constant 0 : index
    %c0_5 = arith.constant 0 : index
    %12 = vector.load %arg3[%c3, %c0_4, %c0_5] : memref<36x1x48xf32, #tpu.memory_space<vmem>>, vector<1x1x48xf32>
    %13 = vector.shape_cast %12 : vector<1x1x48xf32> to vector<1x48xf32>
    %14 = vector.shape_cast %13 : vector<1x48xf32> to vector<1x1x1x48xf32>
    %15 = vector.broadcast %14 : vector<1x1x1x48xf32> to vector<1x8x8x48xf32>
    %16 = arith.mulf %11, %15 : vector<1x8x8x48xf32>
    %17 = arith.addf %10, %16 : vector<1x8x8x48xf32>
    %18 = vector.extract_strided_slice %4 {offsets = [0, 9, 0, 0], sizes = [1, 8, 8, 48], strides = [1, 1, 1, 1]} : vector<1x24x8x48xf32> to vector<1x8x8x48xf32>
    %c6 = arith.constant 6 : index
    %c0_6 = arith.constant 0 : index
    %c0_7 = arith.constant 0 : index
    %19 = vector.load %arg3[%c6, %c0_6, %c0_7] : memref<36x1x48xf32, #tpu.memory_space<vmem>>, vector<1x1x48xf32>
    %20 = vector.shape_cast %19 : vector<1x1x48xf32> to vector<1x48xf32>
    %21 = vector.shape_cast %20 : vector<1x48xf32> to vector<1x1x1x48xf32>
    %22 = vector.broadcast %21 : vector<1x1x1x48xf32> to vector<1x8x8x48xf32>
    %23 = arith.mulf %18, %22 : vector<1x8x8x48xf32>
    %24 = arith.addf %17, %23 : vector<1x8x8x48xf32>
    %c0_8 = arith.constant 0 : index
    %25 = arith.index_cast %1 : i32 to index
    %c8 = arith.constant 8 : index
    %c0_9 = arith.constant 0 : index
    %26 = vector.load %arg2[%c0_8, %25, %c8, %c0_9] : memref<1x24x24x48xbf16, #tpu.memory_space<vmem>>, vector<1x24x8x48xbf16>
    %27 = arith.extf %26 : vector<1x24x8x48xbf16> to vector<1x24x8x48xf32>
    %28 = vector.extract_strided_slice %27 {offsets = [0, 7, 0, 0], sizes = [1, 8, 8, 48], strides = [1, 1, 1, 1]} : vector<1x24x8x48xf32> to vector<1x8x8x48xf32>
    %c1 = arith.constant 1 : index
    %c0_10 = arith.constant 0 : index
    %c0_11 = arith.constant 0 : index
    %29 = vector.load %arg3[%c1, %c0_10, %c0_11] : memref<36x1x48xf32, #tpu.memory_space<vmem>>, vector<1x1x48xf32>
    %30 = vector.shape_cast %29 : vector<1x1x48xf32> to vector<1x48xf32>
    %31 = vector.shape_cast %30 : vector<1x48xf32> to vector<1x1x1x48xf32>
    %32 = vector.broadcast %31 : vector<1x1x1x48xf32> to vector<1x8x8x48xf32>
    %33 = arith.mulf %28, %32 : vector<1x8x8x48xf32>
    %34 = arith.addf %24, %33 : vector<1x8x8x48xf32>
    %35 = vector.extract_strided_slice %27 {offsets = [0, 8, 0, 0], sizes = [1, 8, 8, 48], strides = [1, 1, 1, 1]} : vector<1x24x8x48xf32> to vector<1x8x8x48xf32>
    %c4 = arith.constant 4 : index
    %c0_12 = arith.constant 0 : index
    %c0_13 = arith.constant 0 : index
    %36 = vector.load %arg3[%c4, %c0_12, %c0_13] : memref<36x1x48xf32, #tpu.memory_space<vmem>>, vector<1x1x48xf32>
    %37 = vector.shape_cast %36 : vector<1x1x48xf32> to vector<1x48xf32>
    %38 = vector.shape_cast %37 : vector<1x48xf32> to vector<1x1x1x48xf32>
    %39 = vector.broadcast %38 : vector<1x1x1x48xf32> to vector<1x8x8x48xf32>
    %40 = arith.mulf %35, %39 : vector<1x8x8x48xf32>
    %41 = arith.addf %34, %40 : vector<1x8x8x48xf32>
    %42 = vector.extract_strided_slice %27 {offsets = [0, 9, 0, 0], sizes = [1, 8, 8, 48], strides = [1, 1, 1, 1]} : vector<1x24x8x48xf32> to vector<1x8x8x48xf32>
    %c7_14 = arith.constant 7 : index
    %c0_15 = arith.constant 0 : index
    %c0_16 = arith.constant 0 : index
    %43 = vector.load %arg3[%c7_14, %c0_15, %c0_16] : memref<36x1x48xf32, #tpu.memory_space<vmem>>, vector<1x1x48xf32>
    %44 = vector.shape_cast %43 : vector<1x1x48xf32> to vector<1x48xf32>
    %45 = vector.shape_cast %44 : vector<1x48xf32> to vector<1x1x1x48xf32>
    %46 = vector.broadcast %45 : vector<1x1x1x48xf32> to vector<1x8x8x48xf32>
    %47 = arith.mulf %42, %46 : vector<1x8x8x48xf32>
    %48 = arith.addf %41, %47 : vector<1x8x8x48xf32>
    %c0_17 = arith.constant 0 : index
    %49 = arith.index_cast %1 : i32 to index
    %c9 = arith.constant 9 : index
    %c0_18 = arith.constant 0 : index
    %50 = vector.load %arg2[%c0_17, %49, %c9, %c0_18] : memref<1x24x24x48xbf16, #tpu.memory_space<vmem>>, vector<1x24x8x48xbf16>
    %51 = arith.extf %50 : vector<1x24x8x48xbf16> to vector<1x24x8x48xf32>
    %52 = vector.extract_strided_slice %51 {offsets = [0, 7, 0, 0], sizes = [1, 8, 8, 48], strides = [1, 1, 1, 1]} : vector<1x24x8x48xf32> to vector<1x8x8x48xf32>
    %c2 = arith.constant 2 : index
    %c0_19 = arith.constant 0 : index
    %c0_20 = arith.constant 0 : index
    %53 = vector.load %arg3[%c2, %c0_19, %c0_20] : memref<36x1x48xf32, #tpu.memory_space<vmem>>, vector<1x1x48xf32>
    %54 = vector.shape_cast %53 : vector<1x1x48xf32> to vector<1x48xf32>
    %55 = vector.shape_cast %54 : vector<1x48xf32> to vector<1x1x1x48xf32>
    %56 = vector.broadcast %55 : vector<1x1x1x48xf32> to vector<1x8x8x48xf32>
    %57 = arith.mulf %52, %56 : vector<1x8x8x48xf32>
    %58 = arith.addf %48, %57 : vector<1x8x8x48xf32>
    %59 = vector.extract_strided_slice %51 {offsets = [0, 8, 0, 0], sizes = [1, 8, 8, 48], strides = [1, 1, 1, 1]} : vector<1x24x8x48xf32> to vector<1x8x8x48xf32>
    %c5 = arith.constant 5 : index
    %c0_21 = arith.constant 0 : index
    %c0_22 = arith.constant 0 : index
    %60 = vector.load %arg3[%c5, %c0_21, %c0_22] : memref<36x1x48xf32, #tpu.memory_space<vmem>>, vector<1x1x48xf32>
    %61 = vector.shape_cast %60 : vector<1x1x48xf32> to vector<1x48xf32>
    %62 = vector.shape_cast %61 : vector<1x48xf32> to vector<1x1x1x48xf32>
    %63 = vector.broadcast %62 : vector<1x1x1x48xf32> to vector<1x8x8x48xf32>
    %64 = arith.mulf %59, %63 : vector<1x8x8x48xf32>
    %65 = arith.addf %58, %64 : vector<1x8x8x48xf32>
    %66 = vector.extract_strided_slice %51 {offsets = [0, 9, 0, 0], sizes = [1, 8, 8, 48], strides = [1, 1, 1, 1]} : vector<1x24x8x48xf32> to vector<1x8x8x48xf32>
    %c8_23 = arith.constant 8 : index
    %c0_24 = arith.constant 0 : index
    %c0_25 = arith.constant 0 : index
    %67 = vector.load %arg3[%c8_23, %c0_24, %c0_25] : memref<36x1x48xf32, #tpu.memory_space<vmem>>, vector<1x1x48xf32>
    %68 = vector.shape_cast %67 : vector<1x1x48xf32> to vector<1x48xf32>
    %69 = vector.shape_cast %68 : vector<1x48xf32> to vector<1x1x1x48xf32>
    %70 = vector.broadcast %69 : vector<1x1x1x48xf32> to vector<1x8x8x48xf32>
    %71 = arith.mulf %66, %70 : vector<1x8x8x48xf32>
    %72 = arith.addf %65, %71 : vector<1x8x8x48xf32>
    %c0_26 = arith.constant 0 : index
    %c0_27 = arith.constant 0 : index
    %c0_28 = arith.constant 0 : index
    %73 = vector.load %arg4[%c0_26, %c0_27, %c0_28] : memref<4x1x48xf32, #tpu.memory_space<vmem>>, vector<1x1x48xf32>
    %74 = vector.shape_cast %73 : vector<1x1x48xf32> to vector<1x48xf32>
    %75 = vector.shape_cast %74 : vector<1x48xf32> to vector<1x1x1x48xf32>
    %76 = vector.broadcast %75 : vector<1x1x1x48xf32> to vector<1x8x8x48xf32>
    %77 = arith.mulf %72, %76 : vector<1x8x8x48xf32>
    %c0_29 = arith.constant 0 : index
    %c0_30 = arith.constant 0 : index
    %c0_31 = arith.constant 0 : index
    %78 = vector.load %arg5[%c0_29, %c0_30, %c0_31] : memref<4x1x48xf32, #tpu.memory_space<vmem>>, vector<1x1x48xf32>
    %79 = vector.shape_cast %78 : vector<1x1x48xf32> to vector<1x48xf32>
    %80 = vector.shape_cast %79 : vector<1x48xf32> to vector<1x1x1x48xf32>
    %81 = vector.broadcast %80 : vector<1x1x1x48xf32> to vector<1x8x8x48xf32>
    %82 = arith.addf %77, %81 : vector<1x8x8x48xf32>
    %cst = arith.constant 0.000000e+00 : f32
    %83 = vector.broadcast %cst : f32 to vector<1x8x8x48xf32>
    %84 = arith.maximumf %82, %83 : vector<1x8x8x48xf32>
    %85 = vector.shape_cast %84 : vector<1x8x8x48xf32> to vector<64x48xf32>
    %86 = arith.truncf %85 : vector<64x48xf32> to vector<64x48xbf16>
    %c0_32 = arith.constant 0 : index
    %87 = arith.index_cast %1 : i32 to index
    %c6_33 = arith.constant 6 : index
    %c0_34 = arith.constant 0 : index
    %88 = vector.load %arg2[%c0_32, %87, %c6_33, %c0_34] : memref<1x24x24x48xbf16, #tpu.memory_space<vmem>>, vector<1x24x8x48xbf16>
    %89 = arith.extf %88 : vector<1x24x8x48xbf16> to vector<1x24x8x48xf32>
    %90 = vector.extract_strided_slice %89 {offsets = [0, 6, 0, 0], sizes = [1, 8, 8, 48], strides = [1, 1, 1, 1]} : vector<1x24x8x48xf32> to vector<1x8x8x48xf32>
    %c9_35 = arith.constant 9 : index
    %c0_36 = arith.constant 0 : index
    %c0_37 = arith.constant 0 : index
    %91 = vector.load %arg3[%c9_35, %c0_36, %c0_37] : memref<36x1x48xf32, #tpu.memory_space<vmem>>, vector<1x1x48xf32>
    %92 = vector.shape_cast %91 : vector<1x1x48xf32> to vector<1x48xf32>
    %93 = vector.shape_cast %92 : vector<1x48xf32> to vector<1x1x1x48xf32>
    %94 = vector.broadcast %93 : vector<1x1x1x48xf32> to vector<1x8x8x48xf32>
    %95 = arith.mulf %90, %94 : vector<1x8x8x48xf32>
    %96 = vector.extract_strided_slice %89 {offsets = [0, 8, 0, 0], sizes = [1, 8, 8, 48], strides = [1, 1, 1, 1]} : vector<1x24x8x48xf32> to vector<1x8x8x48xf32>
    %c12 = arith.constant 12 : index
    %c0_38 = arith.constant 0 : index
    %c0_39 = arith.constant 0 : index
    %97 = vector.load %arg3[%c12, %c0_38, %c0_39] : memref<36x1x48xf32, #tpu.memory_space<vmem>>, vector<1x1x48xf32>
    %98 = vector.shape_cast %97 : vector<1x1x48xf32> to vector<1x48xf32>
    %99 = vector.shape_cast %98 : vector<1x48xf32> to vector<1x1x1x48xf32>
    %100 = vector.broadcast %99 : vector<1x1x1x48xf32> to vector<1x8x8x48xf32>
    %101 = arith.mulf %96, %100 : vector<1x8x8x48xf32>
    %102 = arith.addf %95, %101 : vector<1x8x8x48xf32>
    %103 = vector.extract_strided_slice %89 {offsets = [0, 10, 0, 0], sizes = [1, 8, 8, 48], strides = [1, 1, 1, 1]} : vector<1x24x8x48xf32> to vector<1x8x8x48xf32>
    %c15 = arith.constant 15 : index
    %c0_40 = arith.constant 0 : index
    %c0_41 = arith.constant 0 : index
    %104 = vector.load %arg3[%c15, %c0_40, %c0_41] : memref<36x1x48xf32, #tpu.memory_space<vmem>>, vector<1x1x48xf32>
    %105 = vector.shape_cast %104 : vector<1x1x48xf32> to vector<1x48xf32>
    %106 = vector.shape_cast %105 : vector<1x48xf32> to vector<1x1x1x48xf32>
    %107 = vector.broadcast %106 : vector<1x1x1x48xf32> to vector<1x8x8x48xf32>
    %108 = arith.mulf %103, %107 : vector<1x8x8x48xf32>
    %109 = arith.addf %102, %108 : vector<1x8x8x48xf32>
    %c0_42 = arith.constant 0 : index
    %110 = arith.index_cast %1 : i32 to index
    %c8_43 = arith.constant 8 : index
    %c0_44 = arith.constant 0 : index
    %111 = vector.load %arg2[%c0_42, %110, %c8_43, %c0_44] : memref<1x24x24x48xbf16, #tpu.memory_space<vmem>>, vector<1x24x8x48xbf16>
    %112 = arith.extf %111 : vector<1x24x8x48xbf16> to vector<1x24x8x48xf32>
    %113 = vector.extract_strided_slice %112 {offsets = [0, 6, 0, 0], sizes = [1, 8, 8, 48], strides = [1, 1, 1, 1]} : vector<1x24x8x48xf32> to vector<1x8x8x48xf32>
    %c10 = arith.constant 10 : index
    %c0_45 = arith.constant 0 : index
    %c0_46 = arith.constant 0 : index
    %114 = vector.load %arg3[%c10, %c0_45, %c0_46] : memref<36x1x48xf32, #tpu.memory_space<vmem>>, vector<1x1x48xf32>
    %115 = vector.shape_cast %114 : vector<1x1x48xf32> to vector<1x48xf32>
    %116 = vector.shape_cast %115 : vector<1x48xf32> to vector<1x1x1x48xf32>
    %117 = vector.broadcast %116 : vector<1x1x1x48xf32> to vector<1x8x8x48xf32>
    %118 = arith.mulf %113, %117 : vector<1x8x8x48xf32>
    %119 = arith.addf %109, %118 : vector<1x8x8x48xf32>
    %120 = vector.extract_strided_slice %112 {offsets = [0, 8, 0, 0], sizes = [1, 8, 8, 48], strides = [1, 1, 1, 1]} : vector<1x24x8x48xf32> to vector<1x8x8x48xf32>
    %c13 = arith.constant 13 : index
    %c0_47 = arith.constant 0 : index
    %c0_48 = arith.constant 0 : index
    %121 = vector.load %arg3[%c13, %c0_47, %c0_48] : memref<36x1x48xf32, #tpu.memory_space<vmem>>, vector<1x1x48xf32>
    %122 = vector.shape_cast %121 : vector<1x1x48xf32> to vector<1x48xf32>
    %123 = vector.shape_cast %122 : vector<1x48xf32> to vector<1x1x1x48xf32>
    %124 = vector.broadcast %123 : vector<1x1x1x48xf32> to vector<1x8x8x48xf32>
    %125 = arith.mulf %120, %124 : vector<1x8x8x48xf32>
    %126 = arith.addf %119, %125 : vector<1x8x8x48xf32>
    %127 = vector.extract_strided_slice %112 {offsets = [0, 10, 0, 0], sizes = [1, 8, 8, 48], strides = [1, 1, 1, 1]} : vector<1x24x8x48xf32> to vector<1x8x8x48xf32>
    %c16 = arith.constant 16 : index
    %c0_49 = arith.constant 0 : index
    %c0_50 = arith.constant 0 : index
    %128 = vector.load %arg3[%c16, %c0_49, %c0_50] : memref<36x1x48xf32, #tpu.memory_space<vmem>>, vector<1x1x48xf32>
    %129 = vector.shape_cast %128 : vector<1x1x48xf32> to vector<1x48xf32>
    %130 = vector.shape_cast %129 : vector<1x48xf32> to vector<1x1x1x48xf32>
    %131 = vector.broadcast %130 : vector<1x1x1x48xf32> to vector<1x8x8x48xf32>
    %132 = arith.mulf %127, %131 : vector<1x8x8x48xf32>
    %133 = arith.addf %126, %132 : vector<1x8x8x48xf32>
    %c0_51 = arith.constant 0 : index
    %134 = arith.index_cast %1 : i32 to index
    %c10_52 = arith.constant 10 : index
    %c0_53 = arith.constant 0 : index
    %135 = vector.load %arg2[%c0_51, %134, %c10_52, %c0_53] : memref<1x24x24x48xbf16, #tpu.memory_space<vmem>>, vector<1x24x8x48xbf16>
    %136 = arith.extf %135 : vector<1x24x8x48xbf16> to vector<1x24x8x48xf32>
    %137 = vector.extract_strided_slice %136 {offsets = [0, 6, 0, 0], sizes = [1, 8, 8, 48], strides = [1, 1, 1, 1]} : vector<1x24x8x48xf32> to vector<1x8x8x48xf32>
    %c11 = arith.constant 11 : index
    %c0_54 = arith.constant 0 : index
    %c0_55 = arith.constant 0 : index
    %138 = vector.load %arg3[%c11, %c0_54, %c0_55] : memref<36x1x48xf32, #tpu.memory_space<vmem>>, vector<1x1x48xf32>
    %139 = vector.shape_cast %138 : vector<1x1x48xf32> to vector<1x48xf32>
    %140 = vector.shape_cast %139 : vector<1x48xf32> to vector<1x1x1x48xf32>
    %141 = vector.broadcast %140 : vector<1x1x1x48xf32> to vector<1x8x8x48xf32>
    %142 = arith.mulf %137, %141 : vector<1x8x8x48xf32>
    %143 = arith.addf %133, %142 : vector<1x8x8x48xf32>
    %144 = vector.extract_strided_slice %136 {offsets = [0, 8, 0, 0], sizes = [1, 8, 8, 48], strides = [1, 1, 1, 1]} : vector<1x24x8x48xf32> to vector<1x8x8x48xf32>
    %c14 = arith.constant 14 : index
    %c0_56 = arith.constant 0 : index
    %c0_57 = arith.constant 0 : index
    %145 = vector.load %arg3[%c14, %c0_56, %c0_57] : memref<36x1x48xf32, #tpu.memory_space<vmem>>, vector<1x1x48xf32>
    %146 = vector.shape_cast %145 : vector<1x1x48xf32> to vector<1x48xf32>
    %147 = vector.shape_cast %146 : vector<1x48xf32> to vector<1x1x1x48xf32>
    %148 = vector.broadcast %147 : vector<1x1x1x48xf32> to vector<1x8x8x48xf32>
    %149 = arith.mulf %144, %148 : vector<1x8x8x48xf32>
    %150 = arith.addf %143, %149 : vector<1x8x8x48xf32>
    %151 = vector.extract_strided_slice %136 {offsets = [0, 10, 0, 0], sizes = [1, 8, 8, 48], strides = [1, 1, 1, 1]} : vector<1x24x8x48xf32> to vector<1x8x8x48xf32>
    %c17 = arith.constant 17 : index
    %c0_58 = arith.constant 0 : index
    %c0_59 = arith.constant 0 : index
    %152 = vector.load %arg3[%c17, %c0_58, %c0_59] : memref<36x1x48xf32, #tpu.memory_space<vmem>>, vector<1x1x48xf32>
    %153 = vector.shape_cast %152 : vector<1x1x48xf32> to vector<1x48xf32>
    %154 = vector.shape_cast %153 : vector<1x48xf32> to vector<1x1x1x48xf32>
    %155 = vector.broadcast %154 : vector<1x1x1x48xf32> to vector<1x8x8x48xf32>
    %156 = arith.mulf %151, %155 : vector<1x8x8x48xf32>
    %157 = arith.addf %150, %156 : vector<1x8x8x48xf32>
    %c1_60 = arith.constant 1 : index
    %c0_61 = arith.constant 0 : index
    %c0_62 = arith.constant 0 : index
    %158 = vector.load %arg4[%c1_60, %c0_61, %c0_62] : memref<4x1x48xf32, #tpu.memory_space<vmem>>, vector<1x1x48xf32>
    %159 = vector.shape_cast %158 : vector<1x1x48xf32> to vector<1x48xf32>
    %160 = vector.shape_cast %159 : vector<1x48xf32> to vector<1x1x1x48xf32>
    %161 = vector.broadcast %160 : vector<1x1x1x48xf32> to vector<1x8x8x48xf32>
    %162 = arith.mulf %157, %161 : vector<1x8x8x48xf32>
    %c1_63 = arith.constant 1 : index
    %c0_64 = arith.constant 0 : index
    %c0_65 = arith.constant 0 : index
    %163 = vector.load %arg5[%c1_63, %c0_64, %c0_65] : memref<4x1x48xf32, #tpu.memory_space<vmem>>, vector<1x1x48xf32>
    %164 = vector.shape_cast %163 : vector<1x1x48xf32> to vector<1x48xf32>
    %165 = vector.shape_cast %164 : vector<1x48xf32> to vector<1x1x1x48xf32>
    %166 = vector.broadcast %165 : vector<1x1x1x48xf32> to vector<1x8x8x48xf32>
    %167 = arith.addf %162, %166 : vector<1x8x8x48xf32>
    %cst_66 = arith.constant 0.000000e+00 : f32
    %168 = vector.broadcast %cst_66 : f32 to vector<1x8x8x48xf32>
    %169 = arith.maximumf %167, %168 : vector<1x8x8x48xf32>
    %170 = vector.shape_cast %169 : vector<1x8x8x48xf32> to vector<64x48xf32>
    %171 = arith.truncf %170 : vector<64x48xf32> to vector<64x48xbf16>
    %c0_67 = arith.constant 0 : index
    %172 = arith.index_cast %1 : i32 to index
    %c4_68 = arith.constant 4 : index
    %c0_69 = arith.constant 0 : index
    %173 = vector.load %arg2[%c0_67, %172, %c4_68, %c0_69] : memref<1x24x24x48xbf16, #tpu.memory_space<vmem>>, vector<1x24x8x48xbf16>
    %174 = arith.extf %173 : vector<1x24x8x48xbf16> to vector<1x24x8x48xf32>
    %175 = vector.extract_strided_slice %174 {offsets = [0, 4, 0, 0], sizes = [1, 8, 8, 48], strides = [1, 1, 1, 1]} : vector<1x24x8x48xf32> to vector<1x8x8x48xf32>
    %c18 = arith.constant 18 : index
    %c0_70 = arith.constant 0 : index
    %c0_71 = arith.constant 0 : index
    %176 = vector.load %arg3[%c18, %c0_70, %c0_71] : memref<36x1x48xf32, #tpu.memory_space<vmem>>, vector<1x1x48xf32>
    %177 = vector.shape_cast %176 : vector<1x1x48xf32> to vector<1x48xf32>
    %178 = vector.shape_cast %177 : vector<1x48xf32> to vector<1x1x1x48xf32>
    %179 = vector.broadcast %178 : vector<1x1x1x48xf32> to vector<1x8x8x48xf32>
    %180 = arith.mulf %175, %179 : vector<1x8x8x48xf32>
    %181 = vector.extract_strided_slice %174 {offsets = [0, 8, 0, 0], sizes = [1, 8, 8, 48], strides = [1, 1, 1, 1]} : vector<1x24x8x48xf32> to vector<1x8x8x48xf32>
    %c21 = arith.constant 21 : index
    %c0_72 = arith.constant 0 : index
    %c0_73 = arith.constant 0 : index
    %182 = vector.load %arg3[%c21, %c0_72, %c0_73] : memref<36x1x48xf32, #tpu.memory_space<vmem>>, vector<1x1x48xf32>
    %183 = vector.shape_cast %182 : vector<1x1x48xf32> to vector<1x48xf32>
    %184 = vector.shape_cast %183 : vector<1x48xf32> to vector<1x1x1x48xf32>
    %185 = vector.broadcast %184 : vector<1x1x1x48xf32> to vector<1x8x8x48xf32>
    %186 = arith.mulf %181, %185 : vector<1x8x8x48xf32>
    %187 = arith.addf %180, %186 : vector<1x8x8x48xf32>
    %188 = vector.extract_strided_slice %174 {offsets = [0, 12, 0, 0], sizes = [1, 8, 8, 48], strides = [1, 1, 1, 1]} : vector<1x24x8x48xf32> to vector<1x8x8x48xf32>
    %c24 = arith.constant 24 : index
    %c0_74 = arith.constant 0 : index
    %c0_75 = arith.constant 0 : index
    %189 = vector.load %arg3[%c24, %c0_74, %c0_75] : memref<36x1x48xf32, #tpu.memory_space<vmem>>, vector<1x1x48xf32>
    %190 = vector.shape_cast %189 : vector<1x1x48xf32> to vector<1x48xf32>
    %191 = vector.shape_cast %190 : vector<1x48xf32> to vector<1x1x1x48xf32>
    %192 = vector.broadcast %191 : vector<1x1x1x48xf32> to vector<1x8x8x48xf32>
    %193 = arith.mulf %188, %192 : vector<1x8x8x48xf32>
    %194 = arith.addf %187, %193 : vector<1x8x8x48xf32>
    %c0_76 = arith.constant 0 : index
    %195 = arith.index_cast %1 : i32 to index
    %c8_77 = arith.constant 8 : index
    %c0_78 = arith.constant 0 : index
    %196 = vector.load %arg2[%c0_76, %195, %c8_77, %c0_78] : memref<1x24x24x48xbf16, #tpu.memory_space<vmem>>, vector<1x24x8x48xbf16>
    %197 = arith.extf %196 : vector<1x24x8x48xbf16> to vector<1x24x8x48xf32>
    %198 = vector.extract_strided_slice %197 {offsets = [0, 4, 0, 0], sizes = [1, 8, 8, 48], strides = [1, 1, 1, 1]} : vector<1x24x8x48xf32> to vector<1x8x8x48xf32>
    %c19 = arith.constant 19 : index
    %c0_79 = arith.constant 0 : index
    %c0_80 = arith.constant 0 : index
    %199 = vector.load %arg3[%c19, %c0_79, %c0_80] : memref<36x1x48xf32, #tpu.memory_space<vmem>>, vector<1x1x48xf32>
    %200 = vector.shape_cast %199 : vector<1x1x48xf32> to vector<1x48xf32>
    %201 = vector.shape_cast %200 : vector<1x48xf32> to vector<1x1x1x48xf32>
    %202 = vector.broadcast %201 : vector<1x1x1x48xf32> to vector<1x8x8x48xf32>
    %203 = arith.mulf %198, %202 : vector<1x8x8x48xf32>
    %204 = arith.addf %194, %203 : vector<1x8x8x48xf32>
    %205 = vector.extract_strided_slice %197 {offsets = [0, 8, 0, 0], sizes = [1, 8, 8, 48], strides = [1, 1, 1, 1]} : vector<1x24x8x48xf32> to vector<1x8x8x48xf32>
    %c22 = arith.constant 22 : index
    %c0_81 = arith.constant 0 : index
    %c0_82 = arith.constant 0 : index
    %206 = vector.load %arg3[%c22, %c0_81, %c0_82] : memref<36x1x48xf32, #tpu.memory_space<vmem>>, vector<1x1x48xf32>
    %207 = vector.shape_cast %206 : vector<1x1x48xf32> to vector<1x48xf32>
    %208 = vector.shape_cast %207 : vector<1x48xf32> to vector<1x1x1x48xf32>
    %209 = vector.broadcast %208 : vector<1x1x1x48xf32> to vector<1x8x8x48xf32>
    %210 = arith.mulf %205, %209 : vector<1x8x8x48xf32>
    %211 = arith.addf %204, %210 : vector<1x8x8x48xf32>
    %212 = vector.extract_strided_slice %197 {offsets = [0, 12, 0, 0], sizes = [1, 8, 8, 48], strides = [1, 1, 1, 1]} : vector<1x24x8x48xf32> to vector<1x8x8x48xf32>
    %c25 = arith.constant 25 : index
    %c0_83 = arith.constant 0 : index
    %c0_84 = arith.constant 0 : index
    %213 = vector.load %arg3[%c25, %c0_83, %c0_84] : memref<36x1x48xf32, #tpu.memory_space<vmem>>, vector<1x1x48xf32>
    %214 = vector.shape_cast %213 : vector<1x1x48xf32> to vector<1x48xf32>
    %215 = vector.shape_cast %214 : vector<1x48xf32> to vector<1x1x1x48xf32>
    %216 = vector.broadcast %215 : vector<1x1x1x48xf32> to vector<1x8x8x48xf32>
    %217 = arith.mulf %212, %216 : vector<1x8x8x48xf32>
    %218 = arith.addf %211, %217 : vector<1x8x8x48xf32>
    %c0_85 = arith.constant 0 : index
    %219 = arith.index_cast %1 : i32 to index
    %c12_86 = arith.constant 12 : index
    %c0_87 = arith.constant 0 : index
    %220 = vector.load %arg2[%c0_85, %219, %c12_86, %c0_87] : memref<1x24x24x48xbf16, #tpu.memory_space<vmem>>, vector<1x24x8x48xbf16>
    %221 = arith.extf %220 : vector<1x24x8x48xbf16> to vector<1x24x8x48xf32>
    %222 = vector.extract_strided_slice %221 {offsets = [0, 4, 0, 0], sizes = [1, 8, 8, 48], strides = [1, 1, 1, 1]} : vector<1x24x8x48xf32> to vector<1x8x8x48xf32>
    %c20 = arith.constant 20 : index
    %c0_88 = arith.constant 0 : index
    %c0_89 = arith.constant 0 : index
    %223 = vector.load %arg3[%c20, %c0_88, %c0_89] : memref<36x1x48xf32, #tpu.memory_space<vmem>>, vector<1x1x48xf32>
    %224 = vector.shape_cast %223 : vector<1x1x48xf32> to vector<1x48xf32>
    %225 = vector.shape_cast %224 : vector<1x48xf32> to vector<1x1x1x48xf32>
    %226 = vector.broadcast %225 : vector<1x1x1x48xf32> to vector<1x8x8x48xf32>
    %227 = arith.mulf %222, %226 : vector<1x8x8x48xf32>
    %228 = arith.addf %218, %227 : vector<1x8x8x48xf32>
    %229 = vector.extract_strided_slice %221 {offsets = [0, 8, 0, 0], sizes = [1, 8, 8, 48], strides = [1, 1, 1, 1]} : vector<1x24x8x48xf32> to vector<1x8x8x48xf32>
    %c23 = arith.constant 23 : index
    %c0_90 = arith.constant 0 : index
    %c0_91 = arith.constant 0 : index
    %230 = vector.load %arg3[%c23, %c0_90, %c0_91] : memref<36x1x48xf32, #tpu.memory_space<vmem>>, vector<1x1x48xf32>
    %231 = vector.shape_cast %230 : vector<1x1x48xf32> to vector<1x48xf32>
    %232 = vector.shape_cast %231 : vector<1x48xf32> to vector<1x1x1x48xf32>
    %233 = vector.broadcast %232 : vector<1x1x1x48xf32> to vector<1x8x8x48xf32>
    %234 = arith.mulf %229, %233 : vector<1x8x8x48xf32>
    %235 = arith.addf %228, %234 : vector<1x8x8x48xf32>
    %236 = vector.extract_strided_slice %221 {offsets = [0, 12, 0, 0], sizes = [1, 8, 8, 48], strides = [1, 1, 1, 1]} : vector<1x24x8x48xf32> to vector<1x8x8x48xf32>
    %c26 = arith.constant 26 : index
    %c0_92 = arith.constant 0 : index
    %c0_93 = arith.constant 0 : index
    %237 = vector.load %arg3[%c26, %c0_92, %c0_93] : memref<36x1x48xf32, #tpu.memory_space<vmem>>, vector<1x1x48xf32>
    %238 = vector.shape_cast %237 : vector<1x1x48xf32> to vector<1x48xf32>
    %239 = vector.shape_cast %238 : vector<1x48xf32> to vector<1x1x1x48xf32>
    %240 = vector.broadcast %239 : vector<1x1x1x48xf32> to vector<1x8x8x48xf32>
    %241 = arith.mulf %236, %240 : vector<1x8x8x48xf32>
    %242 = arith.addf %235, %241 : vector<1x8x8x48xf32>
    %c2_94 = arith.constant 2 : index
    %c0_95 = arith.constant 0 : index
    %c0_96 = arith.constant 0 : index
    %243 = vector.load %arg4[%c2_94, %c0_95, %c0_96] : memref<4x1x48xf32, #tpu.memory_space<vmem>>, vector<1x1x48xf32>
    %244 = vector.shape_cast %243 : vector<1x1x48xf32> to vector<1x48xf32>
    %245 = vector.shape_cast %244 : vector<1x48xf32> to vector<1x1x1x48xf32>
    %246 = vector.broadcast %245 : vector<1x1x1x48xf32> to vector<1x8x8x48xf32>
    %247 = arith.mulf %242, %246 : vector<1x8x8x48xf32>
    %c2_97 = arith.constant 2 : index
    %c0_98 = arith.constant 0 : index
    %c0_99 = arith.constant 0 : index
    %248 = vector.load %arg5[%c2_97, %c0_98, %c0_99] : memref<4x1x48xf32, #tpu.memory_space<vmem>>, vector<1x1x48xf32>
    %249 = vector.shape_cast %248 : vector<1x1x48xf32> to vector<1x48xf32>
    %250 = vector.shape_cast %249 : vector<1x48xf32> to vector<1x1x1x48xf32>
    %251 = vector.broadcast %250 : vector<1x1x1x48xf32> to vector<1x8x8x48xf32>
    %252 = arith.addf %247, %251 : vector<1x8x8x48xf32>
    %cst_100 = arith.constant 0.000000e+00 : f32
    %253 = vector.broadcast %cst_100 : f32 to vector<1x8x8x48xf32>
    %254 = arith.maximumf %252, %253 : vector<1x8x8x48xf32>
    %255 = vector.shape_cast %254 : vector<1x8x8x48xf32> to vector<64x48xf32>
    %256 = arith.truncf %255 : vector<64x48xf32> to vector<64x48xbf16>
    %c0_101 = arith.constant 0 : index
    %257 = arith.index_cast %1 : i32 to index
    %c0_102 = arith.constant 0 : index
    %c0_103 = arith.constant 0 : index
    %258 = vector.load %arg2[%c0_101, %257, %c0_102, %c0_103] : memref<1x24x24x48xbf16, #tpu.memory_space<vmem>>, vector<1x24x8x48xbf16>
    %259 = arith.extf %258 : vector<1x24x8x48xbf16> to vector<1x24x8x48xf32>
    %260 = vector.extract_strided_slice %259 {offsets = [0, 0, 0, 0], sizes = [1, 8, 8, 48], strides = [1, 1, 1, 1]} : vector<1x24x8x48xf32> to vector<1x8x8x48xf32>
    %c27 = arith.constant 27 : index
    %c0_104 = arith.constant 0 : index
    %c0_105 = arith.constant 0 : index
    %261 = vector.load %arg3[%c27, %c0_104, %c0_105] : memref<36x1x48xf32, #tpu.memory_space<vmem>>, vector<1x1x48xf32>
    %262 = vector.shape_cast %261 : vector<1x1x48xf32> to vector<1x48xf32>
    %263 = vector.shape_cast %262 : vector<1x48xf32> to vector<1x1x1x48xf32>
    %264 = vector.broadcast %263 : vector<1x1x1x48xf32> to vector<1x8x8x48xf32>
    %265 = arith.mulf %260, %264 : vector<1x8x8x48xf32>
    %266 = vector.extract_strided_slice %259 {offsets = [0, 8, 0, 0], sizes = [1, 8, 8, 48], strides = [1, 1, 1, 1]} : vector<1x24x8x48xf32> to vector<1x8x8x48xf32>
    %c30 = arith.constant 30 : index
    %c0_106 = arith.constant 0 : index
    %c0_107 = arith.constant 0 : index
    %267 = vector.load %arg3[%c30, %c0_106, %c0_107] : memref<36x1x48xf32, #tpu.memory_space<vmem>>, vector<1x1x48xf32>
    %268 = vector.shape_cast %267 : vector<1x1x48xf32> to vector<1x48xf32>
    %269 = vector.shape_cast %268 : vector<1x48xf32> to vector<1x1x1x48xf32>
    %270 = vector.broadcast %269 : vector<1x1x1x48xf32> to vector<1x8x8x48xf32>
    %271 = arith.mulf %266, %270 : vector<1x8x8x48xf32>
    %272 = arith.addf %265, %271 : vector<1x8x8x48xf32>
    %273 = vector.extract_strided_slice %259 {offsets = [0, 16, 0, 0], sizes = [1, 8, 8, 48], strides = [1, 1, 1, 1]} : vector<1x24x8x48xf32> to vector<1x8x8x48xf32>
    %c33 = arith.constant 33 : index
    %c0_108 = arith.constant 0 : index
    %c0_109 = arith.constant 0 : index
    %274 = vector.load %arg3[%c33, %c0_108, %c0_109] : memref<36x1x48xf32, #tpu.memory_space<vmem>>, vector<1x1x48xf32>
    %275 = vector.shape_cast %274 : vector<1x1x48xf32> to vector<1x48xf32>
    %276 = vector.shape_cast %275 : vector<1x48xf32> to vector<1x1x1x48xf32>
    %277 = vector.broadcast %276 : vector<1x1x1x48xf32> to vector<1x8x8x48xf32>
    %278 = arith.mulf %273, %277 : vector<1x8x8x48xf32>
    %279 = arith.addf %272, %278 : vector<1x8x8x48xf32>
    %c0_110 = arith.constant 0 : index
    %280 = arith.index_cast %1 : i32 to index
    %c8_111 = arith.constant 8 : index
    %c0_112 = arith.constant 0 : index
    %281 = vector.load %arg2[%c0_110, %280, %c8_111, %c0_112] : memref<1x24x24x48xbf16, #tpu.memory_space<vmem>>, vector<1x24x8x48xbf16>
    %282 = arith.extf %281 : vector<1x24x8x48xbf16> to vector<1x24x8x48xf32>
    %283 = vector.extract_strided_slice %282 {offsets = [0, 0, 0, 0], sizes = [1, 8, 8, 48], strides = [1, 1, 1, 1]} : vector<1x24x8x48xf32> to vector<1x8x8x48xf32>
    %c28 = arith.constant 28 : index
    %c0_113 = arith.constant 0 : index
    %c0_114 = arith.constant 0 : index
    %284 = vector.load %arg3[%c28, %c0_113, %c0_114] : memref<36x1x48xf32, #tpu.memory_space<vmem>>, vector<1x1x48xf32>
    %285 = vector.shape_cast %284 : vector<1x1x48xf32> to vector<1x48xf32>
    %286 = vector.shape_cast %285 : vector<1x48xf32> to vector<1x1x1x48xf32>
    %287 = vector.broadcast %286 : vector<1x1x1x48xf32> to vector<1x8x8x48xf32>
    %288 = arith.mulf %283, %287 : vector<1x8x8x48xf32>
    %289 = arith.addf %279, %288 : vector<1x8x8x48xf32>
    %290 = vector.extract_strided_slice %282 {offsets = [0, 8, 0, 0], sizes = [1, 8, 8, 48], strides = [1, 1, 1, 1]} : vector<1x24x8x48xf32> to vector<1x8x8x48xf32>
    %c31 = arith.constant 31 : index
    %c0_115 = arith.constant 0 : index
    %c0_116 = arith.constant 0 : index
    %291 = vector.load %arg3[%c31, %c0_115, %c0_116] : memref<36x1x48xf32, #tpu.memory_space<vmem>>, vector<1x1x48xf32>
    %292 = vector.shape_cast %291 : vector<1x1x48xf32> to vector<1x48xf32>
    %293 = vector.shape_cast %292 : vector<1x48xf32> to vector<1x1x1x48xf32>
    %294 = vector.broadcast %293 : vector<1x1x1x48xf32> to vector<1x8x8x48xf32>
    %295 = arith.mulf %290, %294 : vector<1x8x8x48xf32>
    %296 = arith.addf %289, %295 : vector<1x8x8x48xf32>
    %297 = vector.extract_strided_slice %282 {offsets = [0, 16, 0, 0], sizes = [1, 8, 8, 48], strides = [1, 1, 1, 1]} : vector<1x24x8x48xf32> to vector<1x8x8x48xf32>
    %c34 = arith.constant 34 : index
    %c0_117 = arith.constant 0 : index
    %c0_118 = arith.constant 0 : index
    %298 = vector.load %arg3[%c34, %c0_117, %c0_118] : memref<36x1x48xf32, #tpu.memory_space<vmem>>, vector<1x1x48xf32>
    %299 = vector.shape_cast %298 : vector<1x1x48xf32> to vector<1x48xf32>
    %300 = vector.shape_cast %299 : vector<1x48xf32> to vector<1x1x1x48xf32>
    %301 = vector.broadcast %300 : vector<1x1x1x48xf32> to vector<1x8x8x48xf32>
    %302 = arith.mulf %297, %301 : vector<1x8x8x48xf32>
    %303 = arith.addf %296, %302 : vector<1x8x8x48xf32>
    %c0_119 = arith.constant 0 : index
    %304 = arith.index_cast %1 : i32 to index
    %c16_120 = arith.constant 16 : index
    %c0_121 = arith.constant 0 : index
    %305 = vector.load %arg2[%c0_119, %304, %c16_120, %c0_121] : memref<1x24x24x48xbf16, #tpu.memory_space<vmem>>, vector<1x24x8x48xbf16>
    %306 = arith.extf %305 : vector<1x24x8x48xbf16> to vector<1x24x8x48xf32>
    %307 = vector.extract_strided_slice %306 {offsets = [0, 0, 0, 0], sizes = [1, 8, 8, 48], strides = [1, 1, 1, 1]} : vector<1x24x8x48xf32> to vector<1x8x8x48xf32>
    %c29 = arith.constant 29 : index
    %c0_122 = arith.constant 0 : index
    %c0_123 = arith.constant 0 : index
    %308 = vector.load %arg3[%c29, %c0_122, %c0_123] : memref<36x1x48xf32, #tpu.memory_space<vmem>>, vector<1x1x48xf32>
    %309 = vector.shape_cast %308 : vector<1x1x48xf32> to vector<1x48xf32>
    %310 = vector.shape_cast %309 : vector<1x48xf32> to vector<1x1x1x48xf32>
    %311 = vector.broadcast %310 : vector<1x1x1x48xf32> to vector<1x8x8x48xf32>
    %312 = arith.mulf %307, %311 : vector<1x8x8x48xf32>
    %313 = arith.addf %303, %312 : vector<1x8x8x48xf32>
    %314 = vector.extract_strided_slice %306 {offsets = [0, 8, 0, 0], sizes = [1, 8, 8, 48], strides = [1, 1, 1, 1]} : vector<1x24x8x48xf32> to vector<1x8x8x48xf32>
    %c32 = arith.constant 32 : index
    %c0_124 = arith.constant 0 : index
    %c0_125 = arith.constant 0 : index
    %315 = vector.load %arg3[%c32, %c0_124, %c0_125] : memref<36x1x48xf32, #tpu.memory_space<vmem>>, vector<1x1x48xf32>
    %316 = vector.shape_cast %315 : vector<1x1x48xf32> to vector<1x48xf32>
    %317 = vector.shape_cast %316 : vector<1x48xf32> to vector<1x1x1x48xf32>
    %318 = vector.broadcast %317 : vector<1x1x1x48xf32> to vector<1x8x8x48xf32>
    %319 = arith.mulf %314, %318 : vector<1x8x8x48xf32>
    %320 = arith.addf %313, %319 : vector<1x8x8x48xf32>
    %321 = vector.extract_strided_slice %306 {offsets = [0, 16, 0, 0], sizes = [1, 8, 8, 48], strides = [1, 1, 1, 1]} : vector<1x24x8x48xf32> to vector<1x8x8x48xf32>
    %c35 = arith.constant 35 : index
    %c0_126 = arith.constant 0 : index
    %c0_127 = arith.constant 0 : index
    %322 = vector.load %arg3[%c35, %c0_126, %c0_127] : memref<36x1x48xf32, #tpu.memory_space<vmem>>, vector<1x1x48xf32>
    %323 = vector.shape_cast %322 : vector<1x1x48xf32> to vector<1x48xf32>
    %324 = vector.shape_cast %323 : vector<1x48xf32> to vector<1x1x1x48xf32>
    %325 = vector.broadcast %324 : vector<1x1x1x48xf32> to vector<1x8x8x48xf32>
    %326 = arith.mulf %321, %325 : vector<1x8x8x48xf32>
    %327 = arith.addf %320, %326 : vector<1x8x8x48xf32>
    %c3_128 = arith.constant 3 : index
    %c0_129 = arith.constant 0 : index
    %c0_130 = arith.constant 0 : index
    %328 = vector.load %arg4[%c3_128, %c0_129, %c0_130] : memref<4x1x48xf32, #tpu.memory_space<vmem>>, vector<1x1x48xf32>
    %329 = vector.shape_cast %328 : vector<1x1x48xf32> to vector<1x48xf32>
    %330 = vector.shape_cast %329 : vector<1x48xf32> to vector<1x1x1x48xf32>
    %331 = vector.broadcast %330 : vector<1x1x1x48xf32> to vector<1x8x8x48xf32>
    %332 = arith.mulf %327, %331 : vector<1x8x8x48xf32>
    %c3_131 = arith.constant 3 : index
    %c0_132 = arith.constant 0 : index
    %c0_133 = arith.constant 0 : index
    %333 = vector.load %arg5[%c3_131, %c0_132, %c0_133] : memref<4x1x48xf32, #tpu.memory_space<vmem>>, vector<1x1x48xf32>
    %334 = vector.shape_cast %333 : vector<1x1x48xf32> to vector<1x48xf32>
    %335 = vector.shape_cast %334 : vector<1x48xf32> to vector<1x1x1x48xf32>
    %336 = vector.broadcast %335 : vector<1x1x1x48xf32> to vector<1x8x8x48xf32>
    %337 = arith.addf %332, %336 : vector<1x8x8x48xf32>
    %cst_134 = arith.constant 0.000000e+00 : f32
    %338 = vector.broadcast %cst_134 : f32 to vector<1x8x8x48xf32>
    %339 = arith.maximumf %337, %338 : vector<1x8x8x48xf32>
    %340 = vector.shape_cast %339 : vector<1x8x8x48xf32> to vector<64x48xf32>
    %341 = arith.truncf %340 : vector<64x48xf32> to vector<64x48xbf16>
    %342 = tpu.concatenate %86, %171, %256, %341 in 1 : vector<64x48xbf16>, vector<64x48xbf16>, vector<64x48xbf16>, vector<64x48xbf16> -> vector<64x192xbf16>
    %c0_135 = arith.constant 0 : index
    %c0_136 = arith.constant 0 : index
    %343 = vector.load %arg6[%c0_135, %c0_136] : memref<192x64xbf16, #tpu.memory_space<vmem>>, vector<192x64xbf16>
    %cst_137 = arith.constant dense<0.000000e+00> : vector<64x64xf32>
    %344 = tpu.matmul %342, %343, %cst_137 {dimension_numbers = #tpu.dot_dimension_numbers<[1], [0], [0], [1], [0, 0, 1, 1], [], []>} : vector<64x192xbf16>, vector<192x64xbf16>, vector<64x64xf32> -> vector<64x64xf32>
    %c0_138 = arith.constant 0 : index
    %c0_139 = arith.constant 0 : index
    %345 = vector.load %arg7[%c0_138, %c0_139] : memref<1x64xf32, #tpu.memory_space<vmem>>, vector<1x64xf32>
    %346 = vector.broadcast %345 : vector<1x64xf32> to vector<64x64xf32>
    %347 = arith.mulf %344, %346 : vector<64x64xf32>
    %c0_140 = arith.constant 0 : index
    %c0_141 = arith.constant 0 : index
    %348 = vector.load %arg8[%c0_140, %c0_141] : memref<1x64xf32, #tpu.memory_space<vmem>>, vector<1x64xf32>
    %349 = vector.broadcast %348 : vector<1x64xf32> to vector<64x64xf32>
    %350 = arith.addf %347, %349 : vector<64x64xf32>
    %cst_142 = arith.constant 0.000000e+00 : f32
    %351 = vector.broadcast %cst_142 : f32 to vector<64x64xf32>
    %352 = arith.maximumf %350, %351 : vector<64x64xf32>
    %353 = arith.truncf %352 : vector<64x64xf32> to vector<64x64xbf16>
    %354 = vector.shape_cast %353 : vector<64x64xbf16> to vector<1x8x8x64xbf16>
    %c0_143 = arith.constant 0 : index
    %c0_144 = arith.constant 0 : index
    %c0_145 = arith.constant 0 : index
    %c0_146 = arith.constant 0 : index
    %355 = vector.load %arg9[%c0_143, %c0_144, %c0_145, %c0_146] : memref<1x8x8x64xbf16, #tpu.memory_space<vmem>>, vector<1x8x8x64xbf16>
    tpu.vector_store %arg9[%c0_143, %c0_144, %c0_145, %c0_146], %354 {strides = array<i32>} : memref<1x8x8x64xbf16, #tpu.memory_space<vmem>>, vector<1x8x8x64xbf16>,
    return
  }
  func.func @transform_0(%arg0: i32, %arg1: i32) -> (i32, i32, i32, i32) {
    %c0_i32 = arith.constant 0 : i32
    %c0_i32_0 = arith.constant 0 : i32
    %c0_i32_1 = arith.constant 0 : i32
    %c0_i32_2 = arith.constant 0 : i32
    return %arg0, %c0_i32, %c0_i32_0, %c0_i32_1 : i32, i32, i32, i32
  }
  func.func @transform_1(%arg0: i32, %arg1: i32) -> (i32, i32, i32) {
    %c0_i32 = arith.constant 0 : i32
    %c0_i32_0 = arith.constant 0 : i32
    %c0_i32_1 = arith.constant 0 : i32
    %c0_i32_2 = arith.constant 0 : i32
    return %c0_i32, %c0_i32_0, %c0_i32_1 : i32, i32, i32
  }
  func.func @transform_2(%arg0: i32, %arg1: i32) -> (i32, i32, i32) {
    %c0_i32 = arith.constant 0 : i32
    %c0_i32_0 = arith.constant 0 : i32
    %c0_i32_1 = arith.constant 0 : i32
    %c0_i32_2 = arith.constant 0 : i32
    return %c0_i32, %c0_i32_0, %c0_i32_1 : i32, i32, i32
  }
  func.func @transform_3(%arg0: i32, %arg1: i32) -> (i32, i32, i32) {
    %c0_i32 = arith.constant 0 : i32
    %c0_i32_0 = arith.constant 0 : i32
    %c0_i32_1 = arith.constant 0 : i32
    %c0_i32_2 = arith.constant 0 : i32
    return %c0_i32, %c0_i32_0, %c0_i32_1 : i32, i32, i32
  }
  func.func @transform_4(%arg0: i32, %arg1: i32) -> (i32, i32) {
    %c0_i32 = arith.constant 0 : i32
    %c0_i32_0 = arith.constant 0 : i32
    %c0_i32_1 = arith.constant 0 : i32
    return %c0_i32, %c0_i32_0 : i32, i32
  }
  func.func @transform_5(%arg0: i32, %arg1: i32) -> (i32, i32) {
    %c0_i32 = arith.constant 0 : i32
    %c0_i32_0 = arith.constant 0 : i32
    %c0_i32_1 = arith.constant 0 : i32
    return %c0_i32, %c0_i32_0 : i32, i32
  }
  func.func @transform_6(%arg0: i32, %arg1: i32) -> (i32, i32) {
    %c0_i32 = arith.constant 0 : i32
    %c0_i32_0 = arith.constant 0 : i32
    %c0_i32_1 = arith.constant 0 : i32
    return %c0_i32, %c0_i32_0 : i32, i32
  }
  func.func @transform_7(%arg0: i32, %arg1: i32) -> (i32, i32, i32, i32) {
    %c0_i32 = arith.constant 0 : i32
    %c0_i32_0 = arith.constant 0 : i32
    %c0_i32_1 = arith.constant 0 : i32
    return %arg0, %arg1, %c0_i32, %c0_i32_0 : i32, i32, i32, i32
  }
}

module attributes {stable_mosaic.version = 11 : i64} {
  func.func @_head_kernel(%arg0: i32, %arg1: i32, %arg2: memref<1x10x10x64xbf16, #tpu.memory_space<vmem>>, %arg3: memref<9x64x32xbf16, #tpu.memory_space<vmem>>, %arg4: memref<1x32xf32, #tpu.memory_space<vmem>>, %arg5: memref<1x32xf32, #tpu.memory_space<vmem>>, %arg6: memref<32x19xbf16, #tpu.memory_space<vmem>>, %arg7: memref<1x19xf32, #tpu.memory_space<vmem>>, %arg8: memref<1x8x8x19xf32, #tpu.memory_space<vmem>>) attributes {dimension_semantics = [#tpu.dimension_semantics<parallel>, #tpu.dimension_semantics<parallel>], iteration_bounds = array<i64: 2, 1>, scalar_prefetch = 0 : i64, scratch_operands = 0 : i64, tpu.core_type = #tpu.core_type<tc>, window_params = [{transform_indices = @transform_0, window_bounds = array<i64: 1, 10, 10, 64>}, {pipeline_mode = #tpu.pipeline_mode<synchronous>, transform_indices = @transform_1, window_bounds = array<i64: 9, 64, 32>}, {pipeline_mode = #tpu.pipeline_mode<synchronous>, transform_indices = @transform_2, window_bounds = array<i64: 1, 32>}, {pipeline_mode = #tpu.pipeline_mode<synchronous>, transform_indices = @transform_3, window_bounds = array<i64: 1, 32>}, {pipeline_mode = #tpu.pipeline_mode<synchronous>, transform_indices = @transform_4, window_bounds = array<i64: 32, 19>}, {pipeline_mode = #tpu.pipeline_mode<synchronous>, transform_indices = @transform_5, window_bounds = array<i64: 1, 19>}, {transform_indices = @transform_6, window_bounds = array<i64: 1, 8, 8, 19>}]} {
    %c8_i32 = arith.constant 8 : i32
    %0 = arith.muli %arg1, %c8_i32 : i32
    %1 = tpu.assume_multiple %0, 8 : i32
    %c0 = arith.constant 0 : index
    %2 = arith.index_cast %1 : i32 to index
    %c0_0 = arith.constant 0 : index
    %c0_1 = arith.constant 0 : index
    %3 = vector.load %arg2[%c0, %2, %c0_0, %c0_1] : memref<1x10x10x64xbf16, #tpu.memory_space<vmem>>, vector<1x10x8x64xbf16>
    %4 = vector.extract_strided_slice %3 {offsets = [0, 0, 0, 0], sizes = [1, 8, 8, 64], strides = [1, 1, 1, 1]} : vector<1x10x8x64xbf16> to vector<1x8x8x64xbf16>
    %5 = vector.shape_cast %4 : vector<1x8x8x64xbf16> to vector<64x64xbf16>
    %c0_2 = arith.constant 0 : index
    %c0_3 = arith.constant 0 : index
    %c0_4 = arith.constant 0 : index
    %6 = vector.load %arg3[%c0_2, %c0_3, %c0_4] : memref<9x64x32xbf16, #tpu.memory_space<vmem>>, vector<1x64x32xbf16>
    %7 = vector.shape_cast %6 : vector<1x64x32xbf16> to vector<64x32xbf16>
    %cst = arith.constant dense<0.000000e+00> : vector<64x32xf32>
    %8 = tpu.matmul %5, %7, %cst {dimension_numbers = #tpu.dot_dimension_numbers<[1], [0], [0], [1], [0, 0, 1, 1], [], []>} : vector<64x64xbf16>, vector<64x32xbf16>, vector<64x32xf32> -> vector<64x32xf32>
    %9 = vector.extract_strided_slice %3 {offsets = [0, 1, 0, 0], sizes = [1, 8, 8, 64], strides = [1, 1, 1, 1]} : vector<1x10x8x64xbf16> to vector<1x8x8x64xbf16>
    %10 = vector.shape_cast %9 : vector<1x8x8x64xbf16> to vector<64x64xbf16>
    %c3 = arith.constant 3 : index
    %c0_5 = arith.constant 0 : index
    %c0_6 = arith.constant 0 : index
    %11 = vector.load %arg3[%c3, %c0_5, %c0_6] : memref<9x64x32xbf16, #tpu.memory_space<vmem>>, vector<1x64x32xbf16>
    %12 = vector.shape_cast %11 : vector<1x64x32xbf16> to vector<64x32xbf16>
    %cst_7 = arith.constant dense<0.000000e+00> : vector<64x32xf32>
    %13 = tpu.matmul %10, %12, %cst_7 {dimension_numbers = #tpu.dot_dimension_numbers<[1], [0], [0], [1], [0, 0, 1, 1], [], []>} : vector<64x64xbf16>, vector<64x32xbf16>, vector<64x32xf32> -> vector<64x32xf32>
    %14 = arith.addf %8, %13 : vector<64x32xf32>
    %15 = vector.extract_strided_slice %3 {offsets = [0, 2, 0, 0], sizes = [1, 8, 8, 64], strides = [1, 1, 1, 1]} : vector<1x10x8x64xbf16> to vector<1x8x8x64xbf16>
    %16 = vector.shape_cast %15 : vector<1x8x8x64xbf16> to vector<64x64xbf16>
    %c6 = arith.constant 6 : index
    %c0_8 = arith.constant 0 : index
    %c0_9 = arith.constant 0 : index
    %17 = vector.load %arg3[%c6, %c0_8, %c0_9] : memref<9x64x32xbf16, #tpu.memory_space<vmem>>, vector<1x64x32xbf16>
    %18 = vector.shape_cast %17 : vector<1x64x32xbf16> to vector<64x32xbf16>
    %cst_10 = arith.constant dense<0.000000e+00> : vector<64x32xf32>
    %19 = tpu.matmul %16, %18, %cst_10 {dimension_numbers = #tpu.dot_dimension_numbers<[1], [0], [0], [1], [0, 0, 1, 1], [], []>} : vector<64x64xbf16>, vector<64x32xbf16>, vector<64x32xf32> -> vector<64x32xf32>
    %20 = arith.addf %14, %19 : vector<64x32xf32>
    %c0_11 = arith.constant 0 : index
    %21 = arith.index_cast %1 : i32 to index
    %c1 = arith.constant 1 : index
    %c0_12 = arith.constant 0 : index
    %22 = vector.load %arg2[%c0_11, %21, %c1, %c0_12] : memref<1x10x10x64xbf16, #tpu.memory_space<vmem>>, vector<1x10x8x64xbf16>
    %23 = vector.extract_strided_slice %22 {offsets = [0, 0, 0, 0], sizes = [1, 8, 8, 64], strides = [1, 1, 1, 1]} : vector<1x10x8x64xbf16> to vector<1x8x8x64xbf16>
    %24 = vector.shape_cast %23 : vector<1x8x8x64xbf16> to vector<64x64xbf16>
    %c1_13 = arith.constant 1 : index
    %c0_14 = arith.constant 0 : index
    %c0_15 = arith.constant 0 : index
    %25 = vector.load %arg3[%c1_13, %c0_14, %c0_15] : memref<9x64x32xbf16, #tpu.memory_space<vmem>>, vector<1x64x32xbf16>
    %26 = vector.shape_cast %25 : vector<1x64x32xbf16> to vector<64x32xbf16>
    %cst_16 = arith.constant dense<0.000000e+00> : vector<64x32xf32>
    %27 = tpu.matmul %24, %26, %cst_16 {dimension_numbers = #tpu.dot_dimension_numbers<[1], [0], [0], [1], [0, 0, 1, 1], [], []>} : vector<64x64xbf16>, vector<64x32xbf16>, vector<64x32xf32> -> vector<64x32xf32>
    %28 = arith.addf %20, %27 : vector<64x32xf32>
    %29 = vector.extract_strided_slice %22 {offsets = [0, 1, 0, 0], sizes = [1, 8, 8, 64], strides = [1, 1, 1, 1]} : vector<1x10x8x64xbf16> to vector<1x8x8x64xbf16>
    %30 = vector.shape_cast %29 : vector<1x8x8x64xbf16> to vector<64x64xbf16>
    %c4 = arith.constant 4 : index
    %c0_17 = arith.constant 0 : index
    %c0_18 = arith.constant 0 : index
    %31 = vector.load %arg3[%c4, %c0_17, %c0_18] : memref<9x64x32xbf16, #tpu.memory_space<vmem>>, vector<1x64x32xbf16>
    %32 = vector.shape_cast %31 : vector<1x64x32xbf16> to vector<64x32xbf16>
    %cst_19 = arith.constant dense<0.000000e+00> : vector<64x32xf32>
    %33 = tpu.matmul %30, %32, %cst_19 {dimension_numbers = #tpu.dot_dimension_numbers<[1], [0], [0], [1], [0, 0, 1, 1], [], []>} : vector<64x64xbf16>, vector<64x32xbf16>, vector<64x32xf32> -> vector<64x32xf32>
    %34 = arith.addf %28, %33 : vector<64x32xf32>
    %35 = vector.extract_strided_slice %22 {offsets = [0, 2, 0, 0], sizes = [1, 8, 8, 64], strides = [1, 1, 1, 1]} : vector<1x10x8x64xbf16> to vector<1x8x8x64xbf16>
    %36 = vector.shape_cast %35 : vector<1x8x8x64xbf16> to vector<64x64xbf16>
    %c7 = arith.constant 7 : index
    %c0_20 = arith.constant 0 : index
    %c0_21 = arith.constant 0 : index
    %37 = vector.load %arg3[%c7, %c0_20, %c0_21] : memref<9x64x32xbf16, #tpu.memory_space<vmem>>, vector<1x64x32xbf16>
    %38 = vector.shape_cast %37 : vector<1x64x32xbf16> to vector<64x32xbf16>
    %cst_22 = arith.constant dense<0.000000e+00> : vector<64x32xf32>
    %39 = tpu.matmul %36, %38, %cst_22 {dimension_numbers = #tpu.dot_dimension_numbers<[1], [0], [0], [1], [0, 0, 1, 1], [], []>} : vector<64x64xbf16>, vector<64x32xbf16>, vector<64x32xf32> -> vector<64x32xf32>
    %40 = arith.addf %34, %39 : vector<64x32xf32>
    %c0_23 = arith.constant 0 : index
    %41 = arith.index_cast %1 : i32 to index
    %c2 = arith.constant 2 : index
    %c0_24 = arith.constant 0 : index
    %42 = vector.load %arg2[%c0_23, %41, %c2, %c0_24] : memref<1x10x10x64xbf16, #tpu.memory_space<vmem>>, vector<1x10x8x64xbf16>
    %43 = vector.extract_strided_slice %42 {offsets = [0, 0, 0, 0], sizes = [1, 8, 8, 64], strides = [1, 1, 1, 1]} : vector<1x10x8x64xbf16> to vector<1x8x8x64xbf16>
    %44 = vector.shape_cast %43 : vector<1x8x8x64xbf16> to vector<64x64xbf16>
    %c2_25 = arith.constant 2 : index
    %c0_26 = arith.constant 0 : index
    %c0_27 = arith.constant 0 : index
    %45 = vector.load %arg3[%c2_25, %c0_26, %c0_27] : memref<9x64x32xbf16, #tpu.memory_space<vmem>>, vector<1x64x32xbf16>
    %46 = vector.shape_cast %45 : vector<1x64x32xbf16> to vector<64x32xbf16>
    %cst_28 = arith.constant dense<0.000000e+00> : vector<64x32xf32>
    %47 = tpu.matmul %44, %46, %cst_28 {dimension_numbers = #tpu.dot_dimension_numbers<[1], [0], [0], [1], [0, 0, 1, 1], [], []>} : vector<64x64xbf16>, vector<64x32xbf16>, vector<64x32xf32> -> vector<64x32xf32>
    %48 = arith.addf %40, %47 : vector<64x32xf32>
    %49 = vector.extract_strided_slice %42 {offsets = [0, 1, 0, 0], sizes = [1, 8, 8, 64], strides = [1, 1, 1, 1]} : vector<1x10x8x64xbf16> to vector<1x8x8x64xbf16>
    %50 = vector.shape_cast %49 : vector<1x8x8x64xbf16> to vector<64x64xbf16>
    %c5 = arith.constant 5 : index
    %c0_29 = arith.constant 0 : index
    %c0_30 = arith.constant 0 : index
    %51 = vector.load %arg3[%c5, %c0_29, %c0_30] : memref<9x64x32xbf16, #tpu.memory_space<vmem>>, vector<1x64x32xbf16>
    %52 = vector.shape_cast %51 : vector<1x64x32xbf16> to vector<64x32xbf16>
    %cst_31 = arith.constant dense<0.000000e+00> : vector<64x32xf32>
    %53 = tpu.matmul %50, %52, %cst_31 {dimension_numbers = #tpu.dot_dimension_numbers<[1], [0], [0], [1], [0, 0, 1, 1], [], []>} : vector<64x64xbf16>, vector<64x32xbf16>, vector<64x32xf32> -> vector<64x32xf32>
    %54 = arith.addf %48, %53 : vector<64x32xf32>
    %55 = vector.extract_strided_slice %42 {offsets = [0, 2, 0, 0], sizes = [1, 8, 8, 64], strides = [1, 1, 1, 1]} : vector<1x10x8x64xbf16> to vector<1x8x8x64xbf16>
    %56 = vector.shape_cast %55 : vector<1x8x8x64xbf16> to vector<64x64xbf16>
    %c8 = arith.constant 8 : index
    %c0_32 = arith.constant 0 : index
    %c0_33 = arith.constant 0 : index
    %57 = vector.load %arg3[%c8, %c0_32, %c0_33] : memref<9x64x32xbf16, #tpu.memory_space<vmem>>, vector<1x64x32xbf16>
    %58 = vector.shape_cast %57 : vector<1x64x32xbf16> to vector<64x32xbf16>
    %cst_34 = arith.constant dense<0.000000e+00> : vector<64x32xf32>
    %59 = tpu.matmul %56, %58, %cst_34 {dimension_numbers = #tpu.dot_dimension_numbers<[1], [0], [0], [1], [0, 0, 1, 1], [], []>} : vector<64x64xbf16>, vector<64x32xbf16>, vector<64x32xf32> -> vector<64x32xf32>
    %60 = arith.addf %54, %59 : vector<64x32xf32>
    %c0_35 = arith.constant 0 : index
    %c0_36 = arith.constant 0 : index
    %61 = vector.load %arg4[%c0_35, %c0_36] : memref<1x32xf32, #tpu.memory_space<vmem>>, vector<1x32xf32>
    %62 = vector.broadcast %61 : vector<1x32xf32> to vector<64x32xf32>
    %63 = arith.mulf %60, %62 : vector<64x32xf32>
    %c0_37 = arith.constant 0 : index
    %c0_38 = arith.constant 0 : index
    %64 = vector.load %arg5[%c0_37, %c0_38] : memref<1x32xf32, #tpu.memory_space<vmem>>, vector<1x32xf32>
    %65 = vector.broadcast %64 : vector<1x32xf32> to vector<64x32xf32>
    %66 = arith.addf %63, %65 : vector<64x32xf32>
    %cst_39 = arith.constant 0.000000e+00 : f32
    %67 = vector.broadcast %cst_39 : f32 to vector<64x32xf32>
    %68 = arith.maximumf %66, %67 : vector<64x32xf32>
    %69 = arith.truncf %68 : vector<64x32xf32> to vector<64x32xbf16>
    %c0_40 = arith.constant 0 : index
    %c0_41 = arith.constant 0 : index
    %70 = vector.load %arg6[%c0_40, %c0_41] : memref<32x19xbf16, #tpu.memory_space<vmem>>, vector<32x19xbf16>
    %cst_42 = arith.constant dense<0.000000e+00> : vector<64x19xf32>
    %71 = tpu.matmul %69, %70, %cst_42 {dimension_numbers = #tpu.dot_dimension_numbers<[1], [0], [0], [1], [0, 0, 1, 1], [], []>} : vector<64x32xbf16>, vector<32x19xbf16>, vector<64x19xf32> -> vector<64x19xf32>
    %c0_43 = arith.constant 0 : index
    %c0_44 = arith.constant 0 : index
    %72 = vector.load %arg7[%c0_43, %c0_44] : memref<1x19xf32, #tpu.memory_space<vmem>>, vector<1x19xf32>
    %73 = vector.broadcast %72 : vector<1x19xf32> to vector<64x19xf32>
    %74 = arith.addf %71, %73 : vector<64x19xf32>
    %75 = vector.shape_cast %74 : vector<64x19xf32> to vector<1x8x8x19xf32>
    %c0_45 = arith.constant 0 : index
    %c0_46 = arith.constant 0 : index
    %c0_47 = arith.constant 0 : index
    %c0_48 = arith.constant 0 : index
    %76 = vector.load %arg8[%c0_45, %c0_46, %c0_47, %c0_48] : memref<1x8x8x19xf32, #tpu.memory_space<vmem>>, vector<1x8x8x19xf32>
    tpu.vector_store %arg8[%c0_45, %c0_46, %c0_47, %c0_48], %75 {strides = array<i32>} : memref<1x8x8x19xf32, #tpu.memory_space<vmem>>, vector<1x8x8x19xf32>,
    return
  }
  func.func @transform_0(%arg0: i32, %arg1: i32) -> (i32, i32, i32, i32) {
    %c0_i32 = arith.constant 0 : i32
    %c0_i32_0 = arith.constant 0 : i32
    %c0_i32_1 = arith.constant 0 : i32
    %c0_i32_2 = arith.constant 0 : i32
    return %arg0, %c0_i32, %c0_i32_0, %c0_i32_1 : i32, i32, i32, i32
  }
  func.func @transform_1(%arg0: i32, %arg1: i32) -> (i32, i32, i32) {
    %c0_i32 = arith.constant 0 : i32
    %c0_i32_0 = arith.constant 0 : i32
    %c0_i32_1 = arith.constant 0 : i32
    %c0_i32_2 = arith.constant 0 : i32
    return %c0_i32, %c0_i32_0, %c0_i32_1 : i32, i32, i32
  }
  func.func @transform_2(%arg0: i32, %arg1: i32) -> (i32, i32) {
    %c0_i32 = arith.constant 0 : i32
    %c0_i32_0 = arith.constant 0 : i32
    %c0_i32_1 = arith.constant 0 : i32
    return %c0_i32, %c0_i32_0 : i32, i32
  }
  func.func @transform_3(%arg0: i32, %arg1: i32) -> (i32, i32) {
    %c0_i32 = arith.constant 0 : i32
    %c0_i32_0 = arith.constant 0 : i32
    %c0_i32_1 = arith.constant 0 : i32
    return %c0_i32, %c0_i32_0 : i32, i32
  }
  func.func @transform_4(%arg0: i32, %arg1: i32) -> (i32, i32) {
    %c0_i32 = arith.constant 0 : i32
    %c0_i32_0 = arith.constant 0 : i32
    %c0_i32_1 = arith.constant 0 : i32
    return %c0_i32, %c0_i32_0 : i32, i32
  }
  func.func @transform_5(%arg0: i32, %arg1: i32) -> (i32, i32) {
    %c0_i32 = arith.constant 0 : i32
    %c0_i32_0 = arith.constant 0 : i32
    %c0_i32_1 = arith.constant 0 : i32
    return %c0_i32, %c0_i32_0 : i32, i32
  }
  func.func @transform_6(%arg0: i32, %arg1: i32) -> (i32, i32, i32, i32) {
    %c0_i32 = arith.constant 0 : i32
    %c0_i32_0 = arith.constant 0 : i32
    %c0_i32_1 = arith.constant 0 : i32
    return %arg0, %arg1, %c0_i32, %c0_i32_0 : i32, i32, i32, i32
  }
}

</mosaic_0001>

<bundles_post_ra>
// kernel: reverse
= control target key start
LH: loop header
LB: loop body
LE: loop exit
PB: predicated region body
PF: predicated region fallthrough
CT: control target
= control target key end

     0   :  { %s224_s0 = inlined_call_operand.vmem [shape: bf16[3,3,64,16], index: 0, kind: input, shape index: {}]   ;;  %s225_s1 = inlined_call_operand.vmem [shape: bf16[3,3,64,16], index: 1, kind: output, shape index: {}]  }
   0x1   :  { %v126_v0 = vld [vmem:[%s224_s0 + $0x40] sm:$0xff]   ;;  %v127_v1 = vld [vmem:[%s224_s0 + $0x28] sm:$0xff]   ;;  %v129_v2 = vld [vmem:[%s224_s0 + $0x10] sm:$0xff]  }
   0x2   :  { %7 = vst [vmem:[%s225_s1] sm:$0xff] %v126_v0   ;;  %128 = vst [vmem:[%s225_s1 + $0x18] sm:$0xff] %v127_v1   ;;  %v131_v3 = vld [vmem:[%s224_s0 + $0x38] sm:$0xff]   ;;  %v133_v4 = vld [vmem:[%s224_s0 + $0x20] sm:$0xff]  }
   0x3   :  { %130 = vst [vmem:[%s225_s1 + $0x30] sm:$0xff] %v129_v2   ;;  %v135_v5 = vld [vmem:[%s224_s0 + $0x8] sm:$0xff]   ;;  %132 = vst [vmem:[%s225_s1 + $0x8] sm:$0xff] %v131_v3   ;;  %v137_v6 = vld [vmem:[%s224_s0 + $0x30] sm:$0xff]  }
   0x4   :  { %134 = vst [vmem:[%s225_s1 + $0x20] sm:$0xff] %v133_v4   ;;  %136 = vst [vmem:[%s225_s1 + $0x38] sm:$0xff] %v135_v5   ;;  %v139_v7 = vld [vmem:[%s224_s0 + $0x18] sm:$0xff]   ;;  %v57_v8 = vld [vmem:[%s224_s0] sm:$0xff]  }
   0x5   :  { %138 = vst [vmem:[%s225_s1 + $0x10] sm:$0xff] %v137_v6   ;;  %140 = vst [vmem:[%s225_s1 + $0x28] sm:$0xff] %v139_v7  }
   0x6   :  { %141 = vst [vmem:[%s225_s1 + $0x40] sm:$0xff] %v57_v8  }

// kernel: fastfcn_forward.3
= control target key start
LH: loop header
LB: loop body
LE: loop exit
PB: predicated region body
PF: predicated region fallthrough
CT: control target
= control target key end

     0   :  { %s1924_s15 = smov 0   ;;  %s1926_s16 = smov 0   ;;  %s2260_s0 = inlined_call_operand.vmem [shape: bf16[2,10,10,16], index: 0, kind: input, shape index: {}]   ;;  %s2261_s1 = inlined_call_operand.vmem [shape: bf16[9,16,16], index: 1, kind: input, shape index: {}]   ;;  %s2262_s2 = inlined_call_operand.vmem [shape: f32[1,16], index: 2, kind: input, shape index: {}]   ;;  %s2263_s3 = inlined_call_operand.vmem [shape: f32[1,16], index: 3, kind: input, shape index: {}]   ;;  %s2264_s4 = inlined_call_operand.vmem [shape: bf16[2,8,8,16], index: 4, kind: output, shape index: {}]  }
   0x1   :  { %s1928_s17 = smov 0  }
   0x2 LB: > { %s26_s18 = sadd.s32 1, %s1893_s16  ;;  %p1508_p0 = scmp.ge.s32.totalorder %s1897_s17, 1  ;;  %s1897_s17 = sphi %s1928_s17, %s14_s17   ;;  %s1893_s16 = sphi %s1926_s16, %s2270_s16   ;;  %s1889_s15 = sphi %s1924_s15, %s2269_s15  }
   0x3   : > { %p28_p1 = scmp.ge.s32.totalorder %s26_s18, 2  ;;  %p176_p2 = scmp.lt.s32.totalorder %s1897_s17, 3 }
   0x5   : > { %s2272_s18 = smov (%p28_p1, %s26_s18), 0  ;;  %p177_p3 = pnand %p1508_p0, %p176_p2 }
   0x6   : > { %v1857_v0 = vld [vmem:[%s2261_s1 + $0x18] sm:$0xff] (!%p177_p3)   ;;  %p206_p4 = scmp.lt.s32.totalorder (!%p177_p3), %s1889_s15, 1  ;;  %v1948_v1 = vld [vmem:[%s2261_s1 + $0x20] sm:$0xff] (!%p177_p3)   ;;  %vm267_vm0 = vcmask (!%p177_p3), 130048   ;;  %vm542_vm1 = vsmask.f32 (!%p177_p3), 3328 }
   0x7   : > { %180 = sbr.rel (%p177_p3) target bundleno = 335 (0x14f), region = 36  ;;  %1676 = vmatprep.subr.bf16.mxu1 (!%p177_p3), %v1857_v0  ;;  %v1865_v2 = vld [vmem:[%s2261_s1] sm:$0xff] (!%p177_p3)   ;;  %1716 = vmatprep.subr.bf16.mxu0 (!%p177_p3), %v1948_v1  ;;  %v1961_v3 = vld [vmem:[%s2261_s1 + $0x38] sm:$0xff] (!%p177_p3)   ;;  %vm543_vm2 = vsmask.f32 (!%p177_p3), 7440  ;;  %v1870_v34 = vld [vmem:[%s2261_s1 + $0x30] sm:$0xff] (!%p177_p3)  }
   0x8   : > { %1677 = vmatpush3.bf16.msra.mxu1 (!%p177_p3), %v1857_v0  ;;  %1717 = vmatpush3.bf16.msra.mxu0 (!%p177_p3), %v1948_v1  ;;  %vm2021_vm3 = vmor (!%p177_p3), %vm542_vm1, %vm543_vm2  ;;  %vm1003_vm4 = vcmask (!%p177_p3), 1042432   ;;  %vm1004_vm5 = vcmask (!%p177_p3), 1046532   ;;  %vm1412_vm7 = vcmask (!%p177_p3), 125952  }
   0x9   : > { %1686 = vmatprep.subr.bf16.mxu1 (!%p177_p3), %v1865_v2  ;;  %1726 = vmatprep.subr.bf16.mxu0 (!%p177_p3), %v1961_v3  ;;  %vm2133_vm6 = vmor (!%p177_p3), %vm1003_vm4, %vm1004_vm5 }
   0xe   : > { %s2274_s15 = smov (!%p206_p4, %s1889_s15), 1 }
   0xf   : > { %s1832_s25 = smul.u32 80, %s2274_s15  ;;  %s1622_s23 = sshll.u32 %s2274_s15, 5 }
  0x10   : > { %s2233_s26 = scalar_lea.vmem %s2264_s4, %s1622_s23 }
  0x11   : > { %s1966_s30 = scalar_lea.vmem %s2260_s0, %s1832_s25 }
  0x12   : > { %v227_v4 = vld [vmem:[%s1966_s30 + $0x8] sm:$0xf]  ;;  %v228_v5 = vld [vmem:[%s1966_s30 + $0x10] sm:$0xf]  ;;  %v229_v6 = vld [vmem:[%s1966_s30 + $0x18] sm:$0xf] }
  0x13   : > { %v1973_v7 = vld [vmem:[%s1966_s30 + $0x20] sm:$0xf]  ;;  %v1514_v8 = vcombine.low %v227_v4, %v228_v5  ;;  %v1976_v9 = vld [vmem:[%s1966_s30 + $0x28] sm:$0xf]  ;;  %v1980_v11 = vld [vmem:[%s1966_s30 + $0x30] sm:$0xf]  ;;  %v2027_v49 = vcombine.low %v228_v5, %v229_v6 }
  0x14   : > { %v1515_v10 = vcombine.low %v229_v6, %v1973_v7  ;;  %v1516_v12 = vcombine.low %v1976_v9, %v1980_v11  ;;  %v1987_v13 = vld [vmem:[%s1966_s30 + $0x38] sm:$0xf]  ;;  %v1990_v14 = vld [vmem:[%s1966_s30 + $0x40] sm:$0xf]  ;;  %v524_v15 = vld [vmem:[%s1966_s30 + $0x8] sm:$0xf] }
  0x15   : > { %1678 = vmatprep.mubr.msk.bf16.mxu1 %vm267_vm0, %v1514_v8  ;;  %v1995_v16 = vld [vmem:[%s1966_s30 + $0xc] sm:$0x1]  ;;  %v526_v17 = vld [vmem:[%s1966_s30 + $0x10] sm:$0xf]  ;;  %v226_v18 = vld [vmem:[%s1966_s30] sm:$0xf]  ;;  %v1517_v19 = vcombine.low %v1987_v13, %v1990_v14 }
  0x16   : > { %1679 = vmatmul.mubr.msk.bf16.vlgmr.msra.gmra.mrb[0].mxu1 %vm267_vm0, %v1515_v10  ;;  %v2002_v20 = vld [vmem:[%s1966_s30 + $0x14] sm:$0x1]  ;;  %v560_v21 = vshrl.u32 %v524_v15, 16  ;;  %v528_v22 = vld [vmem:[%s1966_s30 + $0x18] sm:$0xf]  ;;  %v563_v23 = vshll.u32 %v524_v15, 16  ;;  %v1523_v27 = vcombine.low %v226_v18, %v227_v4 }
  0x17   : > { %1682 = vmatprep.mubr.msk.bf16.mxu1 %vm267_vm0, %v1516_v12  ;;  %1687 = vmatpush3.bf16.msra.mxu1 %v1865_v2  ;;  %v569_v24 = vshll.u32 %v1995_v16, 16  ;;  %v574_v25 = vshrl.u32 %v526_v17, 16  ;;  %v577_v26 = vshll.u32 %v526_v17, 16  ;;  %v530_v28 = vld [vmem:[%s1966_s30 + $0x20] sm:$0xf]  ;;  %v583_v35 = vshll.u32 %v2002_v20, 16 }
  0x18   : > { %v562_v29 = vrot.slane %v560_v21, 4  ;;  %v2008_v30 = vld [vmem:[%s1966_s30 + $0x1c] sm:$0x1]  ;;  %v565_v31 = vrot.slane %v563_v23, 5  ;;  %v588_v36 = vshrl.u32 %v528_v22, 16  ;;  %v591_v37 = vshll.u32 %v528_v22, 16  ;;  %1696 = vmatprep.subr.bf16.mxu1 %v1870_v34 }
  0x19   : > { %v576_v32 = vrot.slane %v574_v25, 4  ;;  %v579_v33 = vrot.slane %v577_v26, 5  ;;  %v2016_v38 = vld [vmem:[%s1966_s30 + $0x24] sm:$0x1]  ;;  %v571_v40 = vrot.slane %v569_v24, 5  ;;  %v602_v42 = vshrl.u32 %v530_v28, 16 }
  0x1a   : > { %v566_v39 = vor.u32 %v565_v31, %v562_v29  ;;  %v532_v43 = vld [vmem:[%s1966_s30 + $0x28] sm:$0xf]  ;;  %v585_v45 = vrot.slane %v583_v35, 5  ;;  %v590_v46 = vrot.slane %v588_v36, 4  ;;  %v593_v47 = vrot.slane %v591_v37, 5  ;;  %v2074_v31 = vld [vmem:[%s2261_s1 + $0x10] sm:$0xff]  }
  0x1b   : > { %v580_v41 = vor.u32 %v579_v33, %v576_v32  ;;  %v597_v48 = vshll.u32 %v2008_v30, 16  ;;  %v522_v52 = vld [vmem:[%s1966_s30] sm:$0xf]  ;;  %v604_v54 = vrot.slane %v602_v42, 4  ;;  %v605_v55 = vshll.u32 %v530_v28, 16  ;;  %v2049_v8 = vld [vmem:[%s2261_s1 + $0x8] sm:$0xff]  }
  0x1c   : > { %v567_v50 = vrot.slane %v566_v39, 4  ;;  %v594_v53 = vor.u32 %v593_v47, %v590_v46  ;;  %v611_v56 = vshll.u32 %v2016_v38, 16  ;;  %v2032_v57 = vld [vmem:[%s1966_s30 + $0x2c] sm:$0x1]  ;;  %v616_v60 = vshrl.u32 %v532_v43, 16 }
  0x1d   : > { %v581_v51 = vrot.slane %v580_v41, 4  ;;  %v619_v61 = vshll.u32 %v532_v43, 16  ;;  %v599_v63 = vrot.slane %v597_v48, 5  ;;  %v607_v0 = vrot.slane %v605_v55, 5  ;;  %v534_v4 = vld [vmem:[%s1966_s30 + $0x30] sm:$0xf] }
  0x1e   : > { %1683 = vmatmul.mubr.msk.bf16.gmra.mrb[4].mxu1 %vm267_vm0, %v1517_v19  ;;  %v2036_v58 = vsel %vm2021_vm3, %v567_v50, %v571_v40  ;;  %v595_v62 = vrot.slane %v594_v53, 4  ;;  %v2042_v2 = vcombine.low %v1973_v7, %v1976_v9  ;;  %v546_v5 = vshrl.u32 %v522_v52, 16  ;;  %v536_v7 = vld [vmem:[%s1966_s30 + $0x38] sm:$0xf]  ;;  %v2061_v22 = vld [vmem:[%s1966_s30 + $0x34] sm:$0x1] }
  0x1f   : > { %1688 = vmatprep.mubr.msk.bf16.mxu1 %vm267_vm0, %v1523_v27  ;;  %v586_v59 = vsel %vm2021_vm3, %v581_v51, %v585_v45  ;;  %v608_v10 = vor.u32 %v607_v0, %v604_v54  ;;  %v613_v12 = vrot.slane %v611_v56, 5  ;;  %v618_v15 = vrot.slane %v616_v60, 4  ;;  %v2064_v24 = vld [vmem:[%s1966_s30 + $0x3c] sm:$0x1]  ;;  %v538_v33 = vld [vmem:[%s1966_s30 + $0x40] sm:$0xf] }
  0x20   : > { %v1553_v6 = vcombine.low %v2036_v58, %v586_v59  ;;  %v621_v17 = vrot.slane %v619_v61, 5  ;;  %v549_v9 = vshll.u32 %v522_v52, 16  ;;  %v600_v18 = vsel %vm2021_vm3, %v595_v62, %v599_v63  ;;  %v540_v39 = vld [vmem:[%s1966_s30 + $0x48] sm:$0xf]  ;;  %v2084_v45 = vld [vmem:[%s1966_s30 + $0x4] sm:$0x1] }
  0x21   : > { %v609_v19 = vrot.slane %v608_v10, 4  ;;  %v625_v21 = vshll.u32 %v2032_v57, 16  ;;  %v548_v23 = vrot.slane %v546_v5, 4  ;;  %v630_v25 = vshrl.u32 %v534_v4, 16  ;;  %v2092_v51 = vld [vmem:[%s1966_s30 + $0x44] sm:$0x1] }
  0x22   : > { %1718 = vmatprep.mubr.msk.bf16.mxu0 %vm267_vm0, %v1553_v6  ;;  %v633_v26 = vshll.u32 %v534_v4, 16  ;;  %v622_v28 = vor.u32 %v621_v17, %v618_v15  ;;  %v2069_v29 = vcombine.low %v586_v59, %v600_v18  ;;  %v644_v32 = vshrl.u32 %v536_v7, 16  ;;  %v2098_v56 = vld [vmem:[%s1966_s30 + $0x4c] sm:$0x1] }
  0x23   : > { %v614_v27 = vsel %vm2021_vm3, %v609_v19, %v613_v12  ;;  %v2079_v35 = vcombine.low %v1980_v11, %v1987_v13  ;;  %v632_v36 = vrot.slane %v630_v25, 4  ;;  %v639_v37 = vshll.u32 %v2061_v22, 16  ;;  %v978_v19 = vld [vmem:[%s1966_s30 + $0x8] sm:$0xe] }
  0x24   : > { %v551_v40 = vrot.slane %v549_v9, 5  ;;  %v627_v41 = vrot.slane %v625_v21, 5  ;;  %v635_v42 = vrot.slane %v633_v26, 5  ;;  %v646_v43 = vrot.slane %v644_v32, 4 }
  0x25   : > { %v647_v46 = vshll.u32 %v536_v7, 16  ;;  %v653_v47 = vshll.u32 %v2064_v24, 16  ;;  %v764_v48 = vshrl.u32 %v538_v33, 16  ;;  %v767_v11 = vshll.u32 %v538_v33, 16 }
  0x26   : > { %1689 = vmatmul.mubr.msk.bf16.vlgmr.msra.gmra.mrb[0].mxu1 %vm267_vm0, %v2027_v49  ;;  %v623_v13 = vrot.slane %v622_v28, 4  ;;  %v636_v50 = vor.u32 %v635_v42, %v632_v36  ;;  %v877_v52 = vshrl.u32 %v540_v39, 16  ;;  %v880_v53 = vshll.u32 %v540_v39, 16  ;;  %v979_v42 = vld [vmem:[%s1966_s30 + $0x10] sm:$0xe] }
  0x27   : > { %1692 = vmatprep.mubr.msk.bf16.mxu1 %vm267_vm0, %v2042_v2  ;;  %1697 = vmatpush3.bf16.msra.mxu1 %v1870_v34  ;;  %v1554_v34 = vcombine.low %v600_v18, %v614_v27  ;;  %v641_v54 = vrot.slane %v639_v37, 5  ;;  %v649_v55 = vrot.slane %v647_v46, 5  ;;  %v766_v59 = vrot.slane %v764_v48, 4  ;;  %v977_v18 = vld [vmem:[%s1966_s30] sm:$0xe] }
  0x28   : > { %1706 = vmatprep.subr.bf16.mxu1 %v2049_v8  ;;  %v769_v60 = vrot.slane %v767_v11, 5  ;;  %v637_v61 = vrot.slane %v636_v50, 4  ;;  %v879_v62 = vrot.slane %v877_v52, 4  ;;  %v882_v63 = vrot.slane %v880_v53, 5  ;;  %v981_v48 = vld [vmem:[%s1966_s30 + $0x20] sm:$0xe] }
  0x29   : > { %1719 = vmatmul.mubr.msk.bf16.vlgmr.msra.gmra.mrb[0].mxu0 %vm267_vm0, %v1554_v34  ;;  %v552_v0 = vor.u32 %v551_v40, %v548_v23  ;;  %v650_v4 = vor.u32 %v649_v55, %v646_v43  ;;  %v655_v5 = vrot.slane %v653_v47, 5  ;;  %v773_v6 = vshll.u32 %v2092_v51, 16  ;;  %v1871_v40 = vld [vmem:[%s2261_s1 + $0x28] sm:$0xff]   ;;  %v980_v43 = vld [vmem:[%s1966_s30 + $0x18] sm:$0xe] }
  0x2a   : > { %1727 = vmatpush3.bf16.msra.mxu0 %v1961_v3  ;;  %1728 = vmatprep.mubr.msk.bf16.mxu0 %vm267_vm0, %v2069_v29  ;;  %v555_v3 = vshll.u32 %v2084_v45, 16  ;;  %v2106_v10 = vsel %vm2021_vm3, %v623_v13, %v627_v41  ;;  %v770_v12 = vor.u32 %v769_v60, %v766_v59  ;;  %v883_v15 = vor.u32 %v882_v63, %v879_v62  ;;  %v982_v11 = vld [vmem:[%s1966_s30 + $0x28] sm:$0xe] }
  0x2b   : > { %1736 = vmatprep.subr.bf16.mxu0 %v2074_v31  ;;  %v886_v17 = vshll.u32 %v2098_v56, 16  ;;  %v2111_v7 = vsel %vm2021_vm3, %v637_v61, %v641_v54  ;;  %v651_v9 = vrot.slane %v650_v4, 4  ;;  %v553_v21 = vrot.slane %v552_v0, 4 }
  0x2c   : > { %v1544_v23 = vcombine.low %v614_v27, %v2106_v10  ;;  %v775_v26 = vrot.slane %v773_v6, 5  ;;  %v771_v32 = vrot.slane %v770_v12, 4  ;;  %v884_v33 = vrot.slane %v883_v15, 4  ;;  %v1874_v6 = vld [vmem:[%s2261_s1 + $0x40] sm:$0xff]  }
  0x2d   : > { %v2118_v25 = vsel %vm2021_vm3, %v651_v9, %v655_v5  ;;  %v888_v34 = vrot.slane %v886_v17, 5  ;;  %v1008_v36 = vrot.slane %v2084_v45, 5  ;;  %v1012_v37 = vrot.slane %v1995_v16, 5  ;;  %v235_v16 = vld [vmem:[%s1966_s30 + $0x48] sm:$0xf] }
  0x2e   : > { %1693 = vmatmul.mubr.msk.bf16.gmra.mrb[4].mxu1 %vm267_vm0, %v2079_v35  ;;  %v2122_v28 = vcombine.low %v2111_v7, %v2118_v25  ;;  %v1570_v27 = vrot.slane %v977_v18, 9  ;;  %v1571_v39 = vrot.slane %v978_v19, 9  ;;  %v1572_v13 = vrot.slane %v979_v42, 9 }
  0x2f   : > { %1698 = vmatprep.mubr.msk.bf16.mxu1 %vm267_vm0, %v2027_v49  ;;  %v557_v49 = vrot.slane %v555_v3, 5  ;;  %v1016_v44 = vrot.slane %v2002_v20, 5  ;;  %v1573_v52 = vrot.slane %v980_v43, 9  ;;  %v1020_v53 = vrot.slane %v2008_v30, 5  ;;  %v983_v30 = vld [vmem:[%s1966_s30 + $0x30] sm:$0xe] }
  0x30   : > { %v1009_v45 = vsel %vm2133_vm6, %v1570_v27, %v1008_v36  ;;  %v1013_v46 = vsel %vm2133_vm6, %v1571_v39, %v1012_v37  ;;  %v1574_v55 = vrot.slane %v981_v48, 9  ;;  %v1575_v59 = vrot.slane %v982_v11, 9 }
  0x31   : > { %v1580_v54 = vcombine.low %v1009_v45, %v1013_v46  ;;  %v1017_v20 = vsel %vm2133_vm6, %v1572_v13, %v1016_v44  ;;  %v1021_v60 = vsel %vm2133_vm6, %v1573_v52, %v1020_v53  ;;  %v1576_v62 = vrot.slane %v983_v30, 9 }
  0x32   : > { %v1581_v61 = vcombine.low %v1017_v20, %v1021_v60  ;;  %v1032_v0 = vrot.slane %v2061_v22, 5  ;;  %v1036_v5 = vrot.slane %v2064_v24, 5  ;;  %v1592_v15 = vcombine.low %v1013_v46, %v1017_v20 }
  0x33   : > { %v1148_v18 = vrot.slane %v2092_v51, 5 }
  0x34   : > { %v1033_v22 = vsel %vm2133_vm6, %v1576_v62, %v1032_v0 }
  0x35   : > { %1729 = vmatmul.mubr.msk.bf16.vlgmr.msra.gmra.mrb[0].mxu0 %vm267_vm0, %v1544_v23 }
  0x36   : > { %1699 = vmatmul.mubr.msk.bf16.vlgmr.msra.gmra.mrb[0].mxu1 %vm267_vm0, %v2042_v2  ;;  %v558_v2 = vsel %vm2021_vm3, %v553_v21, %v557_v49  ;;  %1737 = vmatpush3.bf16.msra.mxu0 %v2074_v31  ;;  %v1534_v31 = vcombine.low %v1990_v14, %v235_v16  ;;  %v1024_v14 = vrot.slane %v2016_v38, 5  ;;  %v986_v21 = vld [vmem:[%s1966_s30 + $0x48] sm:$0xe] }
  0x37   : > { %1702 = vmatprep.mubr.msk.bf16.mxu1 %vm267_vm0, %v2079_v35  ;;  %1707 = vmatpush3.bf16.msra.mxu1 %v2049_v8  ;;  %v2151_v35 = vsel %vm2021_vm3, %v771_v32, %v775_v26  ;;  %v889_v8 = vsel %vm2021_vm3, %v884_v33, %v888_v34  ;;  %v1542_v47 = vcombine.low %v558_v2, %v2036_v58  ;;  %v1028_v58 = vrot.slane %v2032_v57, 5  ;;  %v984_v57 = vld [vmem:[%s1966_s30 + $0x38] sm:$0xe]  ;;  %v1611_v2 = vld [vmem:[%s2263_s3] ss:$0 sm:$0xff] }
  0x38   : > { %1766 = vmatprep.subr.bf16.mxu1 %v1948_v1  ;;  %1732 = vmatprep.mubr.msk.bf16.mxu0 %vm267_vm0, %v2122_v28  ;;  %v1564_v50 = vcombine.low %v2151_v35, %v889_v8  ;;  %v1025_v3 = vsel %vm2133_vm6, %v1574_v55, %v1024_v14  ;;  %v1577_v4 = vrot.slane %v984_v57, 9  ;;  %v1601_v51 = vrot.slane %v986_v21, 9 }
  0x39   : > { %1746 = vmatprep.subr.bf16.mxu0 %v1871_v40  ;;  %v1029_v38 = vsel %vm2133_vm6, %v1575_v59, %v1028_v58  ;;  %v1593_v17 = vcombine.low %v1021_v60, %v1025_v3 }
  0x3a   : > { %v1582_v63 = vcombine.low %v1025_v3, %v1029_v38  ;;  %v1037_v24 = vsel %vm2133_vm6, %v1577_v4, %v1036_v5  ;;  %v1594_v9 = vcombine.low %v1029_v38, %v1033_v22 }
  0x3b   : > { %v1583_v12 = vcombine.low %v1033_v22, %v1037_v24 }
  0x3d   : > { %1733 = vmatmul.mubr.msk.bf16.gmra.mrb[4].mxu0 %vm267_vm0, %v1564_v50 }
  0x3e   : > { %1703 = vmatmul.mubr.msk.bf16.gmra.mrb[4].mxu1 %vm267_vm0, %v1534_v31  ;;  %1738 = vmatprep.mubr.msk.bf16.mxu0 %vm267_vm0, %v1580_v54 }
  0x3f   : > { %1708 = vmatprep.mubr.msk.bf16.mxu1 %vm267_vm0, %v1542_v47 }
  0x45   : > { %1739 = vmatmul.mubr.msk.bf16.vlgmr.msra.gmra.mrb[0].mxu0 %vm267_vm0, %v1581_v61 }
  0x46   : > { %1709 = vmatmul.mubr.msk.bf16.vlgmr.msra.gmra.mrb[0].mxu1 %vm267_vm0, %v2069_v29  ;;  %1747 = vmatpush3.bf16.msra.mxu0 %v1871_v40  ;;  %v1555_v29 = vcombine.low %v2106_v10, %v2111_v7  ;;  %v1556_v10 = vcombine.low %v2118_v25, %v2151_v35  ;;  %v1610_v40 = vld [vmem:[%s2262_s2] ss:$0 sm:$0xff] }
  0x47   : > { %1712 = vmatprep.mubr.msk.bf16.mxu1 %vm267_vm0, %v1544_v23  ;;  %1767 = vmatpush3.bf16.msra.mxu1 %v1948_v1  ;;  %v985_v1 = vld [vmem:[%s1966_s30 + $0x40] sm:$0xe]  ;;  %v1253_v23 = vrot.slane %v2098_v56, 5 }
  0x48   : > { %1742 = vmatprep.mubr.msk.bf16.mxu0 %vm267_vm0, %v1582_v63  ;;  %1756 = vmatprep.subr.bf16.mxu0 %v1874_v6  ;;  %v1589_v49 = vrot.slane %v985_v1, 9 }
  0x49   : > { %v1254_v25 = vsel %vm2133_vm6, %v1601_v51, %v1253_v23 }
  0x4a   : > { %v1149_v7 = vsel %vm2133_vm6, %v1589_v49, %v1148_v18 }
  0x4b   : > { %v1595_v19 = vcombine.low %v1037_v24, %v1149_v7  ;;  %v1604_v26 = vcombine.low %v1149_v7, %v1254_v25 }
  0x4d   : > { %1743 = vmatmul.mubr.msk.bf16.gmra.mrb[4].mxu0 %vm267_vm0, %v1583_v12 }
  0x4e   : > { %1713 = vmatmul.mubr.msk.bf16.gmra.mrb[4].mxu1 %vm267_vm0, %v2122_v28  ;;  %1748 = vmatprep.mubr.msk.bf16.mxu0 %vm267_vm0, %v1592_v15 }
  0x4f   : > { %1722 = vmatprep.mubr.msk.bf16.mxu1 %vm267_vm0, %v1555_v29 }
  0x55   : > { %1749 = vmatmul.mubr.msk.bf16.vlgmr.msra.gmra.mrb[0].mxu0 %vm267_vm0, %v1593_v17 }
  0x56   : > { %1757 = vmatpush3.bf16.msra.mxu0 %v1874_v6  ;;  %1752 = vmatprep.mubr.msk.bf16.mxu0 %vm267_vm0, %v1594_v9 }
  0x5a   : > { %1723 = vmatmul.mubr.msk.bf16.vlgmr.msra.gmra.mrb[4].mxu1 %vm267_vm0, %v1556_v10 }
  0x5d   : > { %1753 = vmatmul.mubr.msk.bf16.gmra.mrb[4].mxu0 %vm267_vm0, %v1595_v19 }
  0x5e   : > { %1758 = vmatprep.mubr.msk.bf16.mxu0 %vm267_vm0, %v1581_v61 }
  0x65   : > { %1759 = vmatmul.mubr.msk.bf16.vlgmr.msra.gmra.mrb[0].mxu0 %vm267_vm0, %v1582_v63 }
  0x66   : > { %1762 = vmatprep.mubr.msk.bf16.mxu0 %vm267_vm0, %v1583_v12 }
  0x6d   : > { %1763 = vmatmul.mubr.msk.bf16.gmra.mrb[4].mxu0 %vm267_vm0, %v1604_v26 }
 0x119   : > { %v1710_v28 = vpop.f32.mrb[0].mxu1 }
 0x11a   : > { %v724_v32 = vpop.f32.mrb[1].mxu1 }
 0x11b   : > { %v1711_v33 = vpop.f32.mrb[2].mxu1 }
 0x11c   : > { %v727_v34 = vpop.f32.mrb[3].mxu1 }
 0x12d   : > { %v1724_v36 = vpop.f32.mrb[4].mxu1 }
 0x12e   : > { %v853_v37 = vpop.f32.mrb[5].mxu1 }
 0x12f   : > { %v1725_v27 = vpop.f32.mrb[6].mxu1 }
 0x130   : > { %v856_v39 = vpop.f32.mrb[7].mxu1 }
 0x138   : > { %v1760_v56 = vpop.f32.mrb[0].mxu0 }
 0x139   : > { %v1768_v16 = vadd.f32 %v1760_v56, %v1710_v28  ;;  %v1303_v41 = vpop.f32.mrb[1].mxu0 }
 0x13a   : > { %v1769_v42 = vadd.f32 %v1303_v41, %v724_v32  ;;  %v1761_v35 = vpop.f32.mrb[2].mxu0 }
 0x13b   : > { %v1351_v8 = vmul.f32 %v1768_v16, %v1610_v40  ;;  %v1770_v43 = vadd.f32 %v1761_v35, %v1711_v33  ;;  %v1306_v45 = vpop.f32.mrb[3].mxu0 }
 0x13c   : > { %v1349_v46 = vmul.f32 %v1769_v42, %v1610_v40  ;;  %v1771_v31 = vadd.f32 %v1306_v45, %v727_v34 }
 0x13d   : > { %v1366_v47 = vadd.f32 %v1611_v2, %v1351_v8  ;;  %v1352_v48 = vmul.f32 %v1770_v43, %v1610_v40 }
 0x13e   : > { %v1364_v11 = vadd.f32 %v1611_v2, %v1349_v46  ;;  %v1350_v13 = vmul.f32 %v1771_v31, %v1610_v40 }
 0x13f   : > { %v1374_v50 = vmax.f32 %v1366_v47, 0.0  ;;  %v1367_v44 = vadd.f32 %v1611_v2, %v1352_v48 }
 0x140   : > { %v1372_v52 = vmax.f32 %v1364_v11, 0.0  ;;  %v1365_v53 = vadd.f32 %v1611_v2, %v1350_v13  ;;  %v1764_v54 = vpop.f32.mrb[4].mxu0 }
 0x141   : > { %v1625_v55 = vpack.c.bf16 %v1374_v50, %v1374_v50  ;;  %v1375_v14 = vmax.f32 %v1367_v44, 0.0  ;;  %v1772_v59 = vadd.f32 %v1764_v54, %v1724_v36  ;;  %v1319_v58 = vpop.f32.mrb[5].mxu0 }
 0x142   : > { %v1623_v20 = vpack.c.bf16 %v1372_v52, %v1372_v52  ;;  %v1373_v60 = vmax.f32 %v1365_v53, 0.0  ;;  %v1773_v30 = vadd.f32 %v1319_v58, %v853_v37  ;;  %v1765_v3 = vpop.f32.mrb[6].mxu0 }
 0x143   : > { %1415 = vst.msk [vmem:[%s2233_s26 + $0x8] sm:$0xf] %vm1412_vm7, %v1625_v55  ;;  %v1626_v38 = vpack.c.bf16 %v1375_v14, %v1375_v14  ;;  %v1355_v57 = vmul.f32 %v1772_v59, %v1610_v40  ;;  %v1774_v61 = vadd.f32 %v1765_v3, %v1725_v27  ;;  %v1322_v62 = vpop.f32.mrb[7].mxu0 }
 0x144   : > { %1413 = vst.msk [vmem:[%s2233_s26] sm:$0xf] %vm1412_vm7, %v1623_v20  ;;  %v1624_v63 = vpack.c.bf16 %v1373_v60, %v1373_v60  ;;  %v1353_v0 = vmul.f32 %v1773_v30, %v1610_v40  ;;  %v1775_v4 = vadd.f32 %v1322_v62, %v856_v39 }
 0x145   : > { %1416 = vst.msk [vmem:[%s2233_s26 + $0xc] sm:$0xf] %vm1412_vm7, %v1626_v38  ;;  %v1370_v5 = vadd.f32 %v1611_v2, %v1355_v57  ;;  %v1356_v6 = vmul.f32 %v1774_v61, %v1610_v40 }
 0x146   : > { %1414 = vst.msk [vmem:[%s2233_s26 + $0x4] sm:$0xf] %vm1412_vm7, %v1624_v63  ;;  %v1368_v22 = vadd.f32 %v1611_v2, %v1353_v0  ;;  %v1354_v24 = vmul.f32 %v1775_v4, %v1610_v40 }
 0x147   : > { %v1378_v29 = vmax.f32 %v1370_v5, 0.0  ;;  %v1371_v12 = vadd.f32 %v1611_v2, %v1356_v6 }
 0x148   : > { %v1376_v15 = vmax.f32 %v1368_v22, 0.0  ;;  %v1369_v1 = vadd.f32 %v1611_v2, %v1354_v24 }
 0x149   : > { %v1629_v17 = vpack.c.bf16 %v1378_v29, %v1378_v29  ;;  %v1379_v9 = vmax.f32 %v1371_v12, 0.0 }
 0x14a   : > { %v1627_v49 = vpack.c.bf16 %v1376_v15, %v1376_v15  ;;  %v1377_v18 = vmax.f32 %v1369_v1, 0.0 }
 0x14b   : > { %1419 = vst.msk [vmem:[%s2233_s26 + $0x18] sm:$0xf] %vm1412_vm7, %v1629_v17  ;;  %v1630_v10 = vpack.c.bf16 %v1379_v9, %v1379_v9 }
 0x14c   : > { %1417 = vst.msk [vmem:[%s2233_s26 + $0x10] sm:$0xf] %vm1412_vm7, %v1627_v49  ;;  %v1628_v7 = vpack.c.bf16 %v1377_v18, %v1377_v18 }
 0x14d   : > { %1420 = vst.msk [vmem:[%s2233_s26 + $0x1c] sm:$0xf] %vm1412_vm7, %v1630_v10 }
 0x14e   : > { %1418 = vst.msk [vmem:[%s2233_s26 + $0x14] sm:$0xf] %vm1412_vm7, %v1628_v7 }
 0x14f PF: > { %s14_s17 = sadd.s32 1, %s1897_s17   ;;  %s2269_s15 = smov %s1893_s16 }
 0x150   : > { %p11_p5 = scmp.ge.s32.totalorder %s14_s17, 4   ;;  %s2270_s16 = smov %s2272_s18 }
 0x152   :  { %13 = sbr.rel (!%p11_p5) target bundleno = 2 (0x2), region = 75 }

// kernel: fastfcn_forward.5
= control target key start
LH: loop header
LB: loop body
LE: loop exit
PB: predicated region body
PF: predicated region fallthrough
CT: control target
= control target key end

     0   :  { %s2469_s21 = smov 0   ;;  %s2471_s22 = smov 0   ;;  %s2900_s0 = inlined_call_operand.vmem [shape: bf16[2,10,10,64], index: 0, kind: input, shape index: {}]   ;;  %s2901_s1 = inlined_call_operand.vmem [shape: bf16[9,64,32], index: 1, kind: input, shape index: {}]   ;;  %s2902_s2 = inlined_call_operand.vmem [shape: f32[1,32], index: 2, kind: input, shape index: {}]   ;;  %s2903_s3 = inlined_call_operand.vmem [shape: f32[1,32], index: 3, kind: input, shape index: {}]   ;;  %s2904_s4 = inlined_call_operand.vmem [shape: bf16[32,19], index: 4, kind: input, shape index: {}]   ;;  %s2905_s5 = inlined_call_operand.vmem [shape: f32[1,19], index: 5, kind: input, shape index: {}]   ;;  %s2906_s6 = inlined_call_operand.vmem [shape: f32[2,8,8,19], index: 6, kind: output, shape index: {}]  }
   0x1   :  { %s2473_s23 = smov 0  }
   0x2 LB: > { %s28_s24 = sadd.s32 1, %s2428_s22  ;;  %p1851_p0 = scmp.ge.s32.totalorder %s2432_s23, 1  ;;  %s2432_s23 = sphi %s2473_s23, %s16_s23   ;;  %s2428_s22 = sphi %s2471_s22, %s2912_s22   ;;  %s2424_s21 = sphi %s2469_s21, %s2911_s21  }
   0x3   : > { %p30_p1 = scmp.ge.s32.totalorder %s28_s24, 2  ;;  %p226_p2 = scmp.lt.s32.totalorder %s2432_s23, 3 }
   0x5   : > { %s2914_s24 = smov (%p30_p1, %s28_s24), 0  ;;  %p227_p3 = pnand %p1851_p0, %p226_p2 }
   0x6   : > { %v2363_v0 = vld [vmem:[%s2901_s1 + $0x60] sm:$0xff] (!%p227_p3)   ;;  %p260_p4 = scmp.lt.s32.totalorder (!%p227_p3), %s2424_s21, 1  ;;  %v2365_v2 = vld [vmem:[%s2901_s1 + $0x68] sm:$0xff] (!%p227_p3)   ;;  %v2367_v4 = vld [vmem:[%s2901_s1 + $0x70] sm:$0xff] (!%p227_p3)   ;;  %vm351_vm0 = vcmask (!%p227_p3), 523264   ;;  %vm1201_vm4 = vcmask (!%p227_p3), 1042432  }
   0x7   : > { %230 = sbr.rel (%p227_p3) target bundleno = 556 (0x22c), region = 44  ;;  %v2364_v1 = vld [vmem:[%s2901_s1 + $0x80] sm:$0xff] (!%p227_p3)   ;;  %2118 = vmatprep.subr.bf16.mxu1 (!%p227_p3), %v2363_v0  ;;  %v2366_v3 = vld [vmem:[%s2901_s1 + $0x88] sm:$0xff] (!%p227_p3)   ;;  %v2368_v5 = vld [vmem:[%s2901_s1 + $0x90] sm:$0xff] (!%p227_p3)   ;;  %vm668_vm1 = vsmask.f32 (!%p227_p3), 3328 }
   0x8   : > { %2182 = vmatprep.subr.bf16.mxu0 (!%p227_p3), %v2364_v1  ;;  %2119 = vmatpush3.bf16.msra.mxu1 (!%p227_p3), %v2363_v0  ;;  %v2369_v6 = vld [vmem:[%s2901_s1 + $0x78] sm:$0xff] (!%p227_p3)   ;;  %v2375_v13 = vld [vmem:[%s2901_s1] sm:$0xff] (!%p227_p3)   ;;  %vm669_vm2 = vsmask.f32 (!%p227_p3), 7440  ;;  %v2377_v36 = vld [vmem:[%s2901_s1 + $0x8] sm:$0xff] (!%p227_p3)   ;;  %vm1202_vm5 = vcmask (!%p227_p3), 1046532  }
   0x9   : > { %2183 = vmatpush3.bf16.msra.mxu0 (!%p227_p3), %v2364_v1  ;;  %2120 = vmatprep.subr.bf16.mxu1 (!%p227_p3), %v2365_v2  ;;  %v2370_v9 = vld [vmem:[%s2901_s1 + $0x98] sm:$0xff] (!%p227_p3)   ;;  %v2551_v20 = vld [vmem:[%s2901_s1 + $0xe0] sm:$0xff] (!%p227_p3)   ;;  %vm2570_vm3 = vmor (!%p227_p3), %vm668_vm1, %vm669_vm2  ;;  %vm1677_vm7 = vcmask (!%p227_p3), 261120   ;;  %vm1755_vm8 = vcmask (!%p227_p3), 154624  }
   0xa   : > { %2184 = vmatprep.subr.bf16.mxu0 (!%p227_p3), %v2366_v3  ;;  %v2381_v46 = vld [vmem:[%s2901_s1 + $0x10] sm:$0xff] (!%p227_p3)   ;;  %vm2742_vm6 = vmor (!%p227_p3), %vm1201_vm4, %vm1202_vm5 }
   0xc   : > { %2121 = vmatpush3.bf16.msra.mxu1 (!%p227_p3), %v2365_v2  ;;  %v2383_v2 = vld [vmem:[%s2901_s1 + $0x18] sm:$0xff] (!%p227_p3)  }
   0xd   : > { %2185 = vmatpush3.bf16.msra.mxu0 (!%p227_p3), %v2366_v3  ;;  %2122 = vmatprep.subr.bf16.mxu1 (!%p227_p3), %v2367_v4 }
   0xe   : > { %s2916_s21 = smov (!%p260_p4, %s2424_s21), 1  ;;  %2186 = vmatprep.subr.bf16.mxu0 %v2368_v5 }
   0xf   : > { %s2338_s11 = smul.u32 80, %s2916_s21  ;;  %s2039_s7 = sshll.u32 %s2916_s21, 6 }
  0x10   : > { %2123 = vmatpush3.bf16.msra.mxu1 %v2367_v4  ;;  %s273_s12 = scalar_lea.vmem %s2906_s6, %s2039_s7 }
  0x11   : > { %s2511_s16 = scalar_lea.vmem %s2900_s0, %s2338_s11  ;;  %2187 = vmatpush3.bf16.msra.mxu0 %v2368_v5  ;;  %2124 = vmatprep.subr.bf16.mxu1 %v2369_v6 }
  0x12   : > { %v2517_v7 = vld [vmem:[%s2511_s16 + $0x8] sm:$0xf]  ;;  %v2520_v8 = vld [vmem:[%s2511_s16 + $0x10] sm:$0xf]  ;;  %v2528_v11 = vld [vmem:[%s2511_s16 + $0x18] sm:$0xf]  ;;  %2188 = vmatprep.subr.bf16.mxu0 %v2370_v9 }
  0x13   : > { %v1863_v10 = vcombine.low %v2517_v7, %v2520_v8  ;;  %v2531_v12 = vld [vmem:[%s2511_s16 + $0x20] sm:$0xf]  ;;  %v650_v14 = vld [vmem:[%s2511_s16 + $0x8] sm:$0xf]  ;;  %v2539_v15 = vld [vmem:[%s2511_s16 + $0xc] sm:$0x1] }
  0x14   : > { %v652_v16 = vld [vmem:[%s2511_s16 + $0x10] sm:$0xf]  ;;  %v1864_v17 = vcombine.low %v2528_v11, %v2531_v12  ;;  %2125 = vmatpush3.bf16.msra.mxu1 %v2369_v6  ;;  %v2545_v18 = vld [vmem:[%s2511_s16 + $0x14] sm:$0x1]  ;;  %v654_v19 = vld [vmem:[%s2511_s16 + $0x18] sm:$0xf] }
  0x15   : > { %2126 = vmatprep.mubr.msk.bf16.mxu1 %vm351_vm0, %v1863_v10  ;;  %2189 = vmatpush3.bf16.msra.mxu0 %v2370_v9  ;;  %v2554_v21 = vld [vmem:[%s2511_s16 + $0x1c] sm:$0x1]  ;;  %v656_v22 = vld [vmem:[%s2511_s16 + $0x20] sm:$0xf]  ;;  %v686_v23 = vshrl.u32 %v650_v14, 16  ;;  %v689_v24 = vshll.u32 %v650_v14, 16 }
  0x16   : > { %2134 = vmatprep.subr.bf16.mxu1 %v2375_v13  ;;  %v695_v25 = vshll.u32 %v2539_v15, 16  ;;  %v700_v26 = vshrl.u32 %v652_v16, 16  ;;  %v703_v27 = vshll.u32 %v652_v16, 16  ;;  %2198 = vmatprep.subr.bf16.mxu0 %v2551_v20  ;;  %v2561_v28 = vld [vmem:[%s2511_s16 + $0x24] sm:$0x1]  ;;  %v709_v34 = vshll.u32 %v2545_v18, 16 }
  0x17   : > { %2127 = vmatmul.mubr.msk.bf16.vlgmr.msra.gmra.mrb[0].mxu1 %vm351_vm0, %v1864_v17  ;;  %v688_v29 = vrot.slane %v686_v23, 4  ;;  %v691_v30 = vrot.slane %v689_v24, 5  ;;  %v658_v32 = vld [vmem:[%s2511_s16 + $0x28] sm:$0xf]  ;;  %v714_v35 = vshrl.u32 %v654_v19, 16  ;;  %v717_v39 = vshll.u32 %v654_v19, 16 }
  0x18   : > { %v702_v31 = vrot.slane %v700_v26, 4  ;;  %v705_v33 = vrot.slane %v703_v27, 5  ;;  %2135 = vmatpush3.bf16.msra.mxu1 %v2375_v13  ;;  %v697_v38 = vrot.slane %v695_v25, 5  ;;  %v728_v40 = vshrl.u32 %v656_v22, 16  ;;  %v2579_v47 = vld [vmem:[%s2511_s16 + $0x2c] sm:$0x1] }
  0x19   : > { %v692_v37 = vor.u32 %v691_v30, %v688_v29  ;;  %v711_v43 = vrot.slane %v709_v34, 5  ;;  %v716_v44 = vrot.slane %v714_v35, 4  ;;  %v723_v45 = vshll.u32 %v2554_v21, 16  ;;  %2136 = vmatprep.subr.bf16.mxu1 %v2377_v36  ;;  %v2583_v54 = vld [vmem:[%s2511_s16] sm:$0xf]  ;;  %v2378_v29 = vld [vmem:[%s2901_s1 + $0xe8] sm:$0xff]  }
  0x1a   : > { %v706_v42 = vor.u32 %v705_v33, %v702_v31  ;;  %v719_v49 = vrot.slane %v717_v39, 5  ;;  %v730_v51 = vrot.slane %v728_v40, 4  ;;  %v731_v52 = vshll.u32 %v656_v22, 16  ;;  %v280_v59 = vld [vmem:[%s2511_s16] sm:$0xf] }
  0x1b   : > { %v693_v48 = vrot.slane %v692_v37, 4  ;;  %v737_v53 = vshll.u32 %v2561_v28, 16  ;;  %v742_v57 = vshrl.u32 %v658_v32, 16  ;;  %v745_v58 = vshll.u32 %v658_v32, 16  ;;  %v2595_v0 = vld [vmem:[%s2511_s16 + $0x28] sm:$0xf] }
  0x1c   : > { %v707_v50 = vrot.slane %v706_v42, 4  ;;  %2137 = vmatpush3.bf16.msra.mxu1 %v2377_v36  ;;  %v720_v56 = vor.u32 %v719_v49, %v716_v44  ;;  %v725_v61 = vrot.slane %v723_v45, 5  ;;  %v733_v62 = vrot.slane %v731_v52, 5  ;;  %v2598_v1 = vld [vmem:[%s2511_s16 + $0x30] sm:$0xf]  ;;  %v2385_v25 = vld [vmem:[%s2901_s1 + $0xc0] sm:$0xff]  }
  0x1d   : > { %v2587_v55 = vsel %vm2570_vm3, %v693_v48, %v697_v38  ;;  %2138 = vmatprep.subr.bf16.mxu1 %v2381_v46  ;;  %v739_v63 = vrot.slane %v737_v53, 5  ;;  %v744_v4 = vrot.slane %v742_v57, 4  ;;  %v747_v5 = vrot.slane %v745_v58, 5  ;;  %v2605_v9 = vld [vmem:[%s2511_s16 + $0x38] sm:$0xf]  ;;  %v2382_v53 = vld [vmem:[%s2901_s1 + $0xf0] sm:$0xff]  }
  0x1e   : > { %v2592_v60 = vsel %vm2570_vm3, %v707_v50, %v711_v43  ;;  %v721_v3 = vrot.slane %v720_v56, 4  ;;  %v751_v6 = vshll.u32 %v2579_v47, 16  ;;  %v734_v10 = vor.u32 %v733_v62, %v730_v51  ;;  %v2610_v14 = vld [vmem:[%s2511_s16 + $0x40] sm:$0xf]  ;;  %v660_v19 = vld [vmem:[%s2511_s16 + $0x30] sm:$0xf] }
  0x1f   : > { %v1932_v13 = vcombine.low %v2587_v55, %v2592_v60  ;;  %v672_v16 = vshrl.u32 %v2583_v54, 16  ;;  %v748_v17 = vor.u32 %v747_v5, %v744_v4  ;;  %v2620_v24 = vld [vmem:[%s2511_s16 + $0x34] sm:$0x1]  ;;  %v1875_v26 = vcombine.low %v280_v59, %v2517_v7  ;;  %v662_v32 = vld [vmem:[%s2511_s16 + $0x38] sm:$0xf] }
  0x20   : > { %2139 = vmatpush3.bf16.msra.mxu1 %v2381_v46  ;;  %v2616_v22 = vsel %vm2570_vm3, %v721_v3, %v725_v61  ;;  %v735_v23 = vrot.slane %v734_v10, 4  ;;  %v753_v27 = vrot.slane %v751_v6, 5  ;;  %v1865_v30 = vcombine.low %v2595_v0, %v2598_v1  ;;  %v2639_v7 = vld [vmem:[%s2511_s16 + $0x3c] sm:$0x1]  ;;  %v664_v36 = vld [vmem:[%s2511_s16 + $0x40] sm:$0xf] }
  0x21   : > { %2140 = vmatprep.subr.bf16.mxu1 %v2383_v2  ;;  %2190 = vmatprep.mubr.msk.bf16.mxu0 %vm351_vm0, %v1932_v13  ;;  %v1866_v31 = vcombine.low %v2605_v9, %v2610_v14  ;;  %v756_v34 = vshrl.u32 %v660_v19, 16  ;;  %v759_v35 = vshll.u32 %v660_v19, 16  ;;  %v749_v37 = vrot.slane %v748_v17, 4  ;;  %v2647_v40 = vld [vmem:[%s2511_s16 + $0x44] sm:$0x1]  ;;  %v2384_v10 = vld [vmem:[%s2901_s1 + $0xf8] sm:$0xff]  }
  0x22   : > { %v2636_v33 = vsel %vm2570_vm3, %v735_v23, %v739_v63  ;;  %2130 = vmatprep.mubr.msk.bf16.mxu1 %vm351_vm0, %v1865_v30  ;;  %v765_v39 = vshll.u32 %v2620_v24, 16  ;;  %v2651_v42 = vcombine.low %v2520_v8, %v2528_v11  ;;  %v770_v46 = vshrl.u32 %v662_v32, 16  ;;  %v2387_v63 = vld [vmem:[%s2901_s1 + $0xc8] sm:$0xff]  }
  0x23   : > { %v1933_v38 = vcombine.low %v2616_v22, %v2636_v33  ;;  %2131 = vmatmul.mubr.msk.bf16.gmra.mrb[4].mxu1 %vm351_vm0, %v1866_v31  ;;  %v758_v43 = vrot.slane %v756_v34, 4  ;;  %v761_v44 = vrot.slane %v759_v35, 5  ;;  %v773_v48 = vshll.u32 %v662_v32, 16  ;;  %v666_v23 = vld [vmem:[%s2511_s16 + $0x48] sm:$0xf]  ;;  %v2391_v32 = vld [vmem:[%s2901_s1 + $0xd0] sm:$0xff]  }
  0x24   : > { %2141 = vmatpush3.bf16.msra.mxu1 %v2383_v2  ;;  %v767_v45 = vrot.slane %v765_v39, 5  ;;  %v779_v49 = vshll.u32 %v2639_v7, 16  ;;  %2142 = vmatprep.mubr.msk.bf16.mxu1 %vm351_vm0, %v1875_v26  ;;  %v914_v51 = vshrl.u32 %v664_v36, 16  ;;  %v917_v52 = vshll.u32 %v664_v36, 16  ;;  %v2704_v34 = vld [vmem:[%s2511_s16 + $0x4c] sm:$0x1] }
  0x25   : > { %2150 = vmatprep.subr.bf16.mxu1 %v2385_v25  ;;  %2191 = vmatmul.mubr.msk.bf16.vlgmr.msra.gmra.mrb[0].mxu0 %vm351_vm0, %v1933_v38  ;;  %v762_v50 = vor.u32 %v761_v44, %v758_v43  ;;  %v923_v8 = vshll.u32 %v2647_v40, 16  ;;  %v754_v11 = vsel %vm2570_vm3, %v749_v37, %v753_v27  ;;  %v772_v56 = vrot.slane %v770_v46, 4  ;;  %v2386_v27 = vld [vmem:[%s2901_s1 + $0x40] sm:$0xff]   ;;  %v1178_v43 = vld [vmem:[%s2511_s16 + $0x18] sm:$0xe] }
  0x26   : > { %2199 = vmatpush3.bf16.msra.mxu0 %v2551_v20  ;;  %v775_v57 = vrot.slane %v773_v48, 5  ;;  %v781_v58 = vrot.slane %v779_v49, 5  ;;  %v916_v61 = vrot.slane %v914_v51, 4  ;;  %v919_v20 = vrot.slane %v917_v52, 5  ;;  %v1175_v44 = vld [vmem:[%s2511_s16] sm:$0xe] }
  0x27   : > { %2200 = vmatprep.subr.bf16.mxu0 %v2378_v29  ;;  %v763_v59 = vrot.slane %v762_v50, 4  ;;  %v925_v62 = vrot.slane %v923_v8, 5  ;;  %v2674_v13 = vcombine.low %v2531_v12, %v2595_v0  ;;  %v675_v17 = vshll.u32 %v2583_v54, 16  ;;  %v2388_v8 = vld [vmem:[%s2901_s1 + $0x48] sm:$0xff]  }
  0x28   : > { %v776_v2 = vor.u32 %v775_v57, %v772_v56  ;;  %v920_v4 = vor.u32 %v919_v20, %v916_v61  ;;  %v1051_v12 = vshrl.u32 %v666_v23, 16  ;;  %v1054_v0 = vshll.u32 %v666_v23, 16  ;;  %v2392_v61 = vld [vmem:[%s2901_s1 + $0x50] sm:$0xff]  }
  0x29   : > { %v768_v3 = vsel %vm2570_vm3, %v763_v59, %v767_v45  ;;  %v2691_v30 = vcombine.low %v2592_v60, %v2616_v22  ;;  %v674_v35 = vrot.slane %v672_v16, 4  ;;  %v677_v36 = vrot.slane %v675_v17, 5  ;;  %v2393_v16 = vld [vmem:[%s2901_s1 + $0xd8] sm:$0xff]   ;;  %v1176_v45 = vld [vmem:[%s2511_s16 + $0x8] sm:$0xe] }
  0x2a   : > { %2201 = vmatpush3.bf16.msra.mxu0 %v2378_v29  ;;  %v1934_v5 = vcombine.low %v754_v11, %v768_v3  ;;  %v777_v6 = vrot.slane %v776_v2, 4  ;;  %v921_v19 = vrot.slane %v920_v4, 4  ;;  %v2687_v29 = vld [vmem:[%s2511_s16 + $0x4] sm:$0x1]  ;;  %v1053_v60 = vrot.slane %v1051_v12, 4 }
  0x2b   : > { %2202 = vmatprep.subr.bf16.mxu0 %v2382_v53  ;;  %2143 = vmatmul.mubr.msk.bf16.vlgmr.msra.gmra.mrb[0].mxu1 %vm351_vm0, %v2651_v42  ;;  %v1056_v22 = vrot.slane %v1054_v0, 5  ;;  %v1878_v37 = vcombine.low %v2598_v1, %v2605_v9  ;;  %v681_v38 = vshll.u32 %v2687_v29, 16  ;;  %v1060_v54 = vshll.u32 %v2704_v34, 16  ;;  %v2719_v1 = vld [vmem:[%s2511_s16 + $0x10] sm:$0xe] }
  0x2c   : > { %2194 = vmatprep.mubr.msk.bf16.mxu0 %vm351_vm0, %v1934_v5  ;;  %v782_v26 = vsel %vm2570_vm3, %v777_v6, %v781_v58  ;;  %2151 = vmatpush3.bf16.msra.mxu1 %v2385_v25  ;;  %v2695_v31 = vsel %vm2570_vm3, %v921_v19, %v925_v62  ;;  %v678_v9 = vor.u32 %v677_v36, %v674_v35  ;;  %v1206_v48 = vrot.slane %v2687_v29, 5  ;;  %v2397_v62 = vld [vmem:[%s2901_s1 + $0x28] sm:$0xff]   ;;  %v2400_v19 = vld [vmem:[%s2901_s1 + $0x30] sm:$0xff]  }
  0x2d   : > { %2152 = vmatprep.subr.bf16.mxu1 %v2387_v63  ;;  %v1935_v25 = vcombine.low %v782_v26, %v2695_v31  ;;  %2146 = vmatprep.mubr.msk.bf16.mxu1 %vm351_vm0, %v2674_v13  ;;  %v1057_v39 = vor.u32 %v1056_v22, %v1053_v60  ;;  %v2726_v46 = vcombine.low %v2636_v33, %v754_v11  ;;  %v1210_v49 = vrot.slane %v2539_v15, 5  ;;  %v2395_v33 = vld [vmem:[%s2901_s1 + $0x20] sm:$0xff]   ;;  %v289_v5 = vld [vmem:[%s2511_s16 + $0x48] sm:$0xf] }
  0x2e   : > { %2203 = vmatpush3.bf16.msra.mxu0 %v2382_v53  ;;  %v2732_v50 = vcombine.low %v768_v3, %v782_v26  ;;  %v1062_v52 = vrot.slane %v1060_v54, 5  ;;  %v1961_v11 = vrot.slane %v1175_v44, 9  ;;  %v1962_v53 = vrot.slane %v1176_v45, 9  ;;  %v1180_v3 = vld [vmem:[%s2511_s16 + $0x28] sm:$0xe] }
  0x2f   : > { %2204 = vmatprep.subr.bf16.mxu0 %v2384_v10  ;;  %2195 = vmatmul.mubr.msk.bf16.gmra.mrb[4].mxu0 %vm351_vm0, %v1935_v25  ;;  %v1058_v51 = vrot.slane %v1057_v39, 4  ;;  %v679_v56 = vrot.slane %v678_v9, 4  ;;  %v683_v57 = vrot.slane %v681_v38, 5  ;;  %v1214_v58 = vrot.slane %v2545_v18, 5  ;;  %v2398_v38 = vld [vmem:[%s2901_s1 + $0xa8] sm:$0xff]  }
  0x30   : > { %2153 = vmatpush3.bf16.msra.mxu1 %v2387_v63  ;;  %2206 = vmatprep.mubr.msk.bf16.mxu0 %vm351_vm0, %v2691_v30  ;;  %v1964_v59 = vrot.slane %v1178_v43, 9  ;;  %v1218_v20 = vrot.slane %v2554_v21, 5  ;;  %v1207_v63 = vsel %vm2742_vm6, %v1961_v11, %v1206_v48  ;;  %v2765_v2 = vsel %vm2742_vm6, %v1962_v53, %v1210_v49  ;;  %v1179_v21 = vld [vmem:[%s2511_s16 + $0x20] sm:$0xe]  ;;  %v2405_v48 = vld [vmem:[%s2901_s1 + $0x108] sm:$0xff]  }
  0x31   : > { %2154 = vmatprep.subr.bf16.mxu1 %v2391_v32  ;;  %v1063_v18 = vsel %vm2570_vm3, %v1058_v51, %v1062_v52  ;;  %v684_v6 = vsel %vm2570_vm3, %v679_v56, %v683_v57  ;;  %v1977_v17 = vcombine.low %v1207_v63, %v2765_v2  ;;  %v1965_v23 = vrot.slane %v1179_v21, 9  ;;  %v1183_v9 = vld [vmem:[%s2511_s16 + $0x40] sm:$0xe]  ;;  %v2407_v51 = vld [vmem:[%s2901_s1 + $0x118] sm:$0xff]   ;;  %v1184_v52 = vld [vmem:[%s2511_s16 + $0x48] sm:$0xe] }
  0x32   : > { %2205 = vmatpush3.bf16.msra.mxu0 %v2384_v10  ;;  %v1952_v4 = vcombine.low %v2695_v31, %v1063_v18  ;;  %v2394_v10 = vld [vmem:[%s2901_s1 + $0x58] sm:$0xff]   ;;  %v1966_v26 = vrot.slane %v1180_v3, 9  ;;  %v1226_v41 = vrot.slane %v2579_v47, 5  ;;  %v1912_v12 = vcombine.low %v684_v6, %v2587_v55  ;;  %v2396_v55 = vld [vmem:[%s2901_s1 + $0xa0] sm:$0xff]   ;;  %v1181_v31 = vld [vmem:[%s2511_s16 + $0x30] sm:$0xe] }
  0x33   : > { %2214 = vmatprep.subr.bf16.mxu0 %v2386_v27  ;;  %2147 = vmatmul.mubr.msk.bf16.gmra.mrb[4].mxu1 %vm351_vm0, %v1878_v37  ;;  %v1219_v0 = vsel %vm2742_vm6, %v1964_v59, %v1218_v20  ;;  %v2402_v47 = vld [vmem:[%s2901_s1 + $0x38] sm:$0xff]   ;;  %v1230_v60 = vrot.slane %v2620_v24, 5  ;;  %v1967_v35 = vrot.slane %v1181_v31, 9  ;;  %v1989_v45 = vrot.slane %v1183_v9, 9  ;;  %v2408_v56 = vld [vmem:[%s2904_s4] sm:$0xff]  }
  0x34   : > { %2155 = vmatpush3.bf16.msra.mxu1 %v2391_v32  ;;  %2158 = vmatprep.mubr.msk.bf16.mxu1 %vm351_vm0, %v2651_v42  ;;  %v1963_v42 = vrot.slane %v2719_v1, 9  ;;  %v1227_v29 = vsel %vm2742_vm6, %v1966_v26, %v1226_v41  ;;  %v1182_v32 = vld [vmem:[%s2511_s16 + $0x38] sm:$0xe]  ;;  %v2028_v63 = vld [vmem:[%s2902_s2] ss:$0 sm:$0xff] }
  0x35   : > { %2156 = vmatprep.subr.bf16.mxu1 %v2393_v16  ;;  %v1968_v36 = vrot.slane %v1182_v32, 9  ;;  %v1231_v24 = vsel %vm2742_vm6, %v1967_v35, %v1230_v60  ;;  %v2403_v1 = vld [vmem:[%s2901_s1 + $0xb8] sm:$0xff]   ;;  %v2029_v3 = vld [vmem:[%s2903_s3] ss:$0 sm:$0xff] }
  0x36   : > { %v2000_v44 = vcombine.low %v1227_v29, %v1231_v24 }
  0x37   : > { %2207 = vmatmul.mubr.msk.bf16.vlgmr.msra.gmra.mrb[0].mxu0 %vm351_vm0, %v2726_v46 }
  0x38   : > { %2157 = vmatpush3.bf16.msra.mxu1 %v2393_v16  ;;  %2215 = vmatpush3.bf16.msra.mxu0 %v2386_v27  ;;  %v1895_v27 = vcombine.low %v2610_v14, %v289_v5 }
  0x39   : > { %2210 = vmatprep.mubr.msk.bf16.mxu0 %vm351_vm0, %v2732_v50  ;;  %2216 = vmatprep.subr.bf16.mxu0 %v2388_v8 }
  0x3a   : > { %2166 = vmatprep.subr.bf16.mxu1 %v2395_v33 }
  0x3b   : > { %2159 = vmatmul.mubr.msk.bf16.vlgmr.msra.gmra.mrb[0].mxu1 %vm351_vm0, %v2674_v13  ;;  %v1222_v13 = vrot.slane %v2561_v28, 5  ;;  %v1215_v28 = vsel %vm2742_vm6, %v1963_v42, %v1214_v58 }
  0x3c   : > { %2167 = vmatpush3.bf16.msra.mxu1 %v2395_v33  ;;  %2162 = vmatprep.mubr.msk.bf16.mxu1 %vm351_vm0, %v1878_v37  ;;  %v1978_v25 = vcombine.low %v1215_v28, %v1219_v0  ;;  %v1234_v37 = vrot.slane %v2639_v7, 5  ;;  %v2401_v7 = vld [vmem:[%s2901_s1 + $0xb0] sm:$0xff]   ;;  %v1998_v16 = vcombine.low %v2765_v2, %v1215_v28  ;;  %v1499_v33 = vrot.slane %v2704_v34, 5  ;;  %v2409_v34 = vld [vmem:[%s2904_s4 + $0x8] sm:$0xff]  }
  0x3d   : > { %2217 = vmatpush3.bf16.msra.mxu0 %v2388_v8  ;;  %2168 = vmatprep.subr.bf16.mxu1 %v2397_v62  ;;  %v1223_v14 = vsel %vm2742_vm6, %v1965_v23, %v1222_v13  ;;  %v2010_v8 = vrot.slane %v1184_v52, 9 }
  0x3e   : > { %2218 = vmatprep.subr.bf16.mxu0 %v2392_v61  ;;  %v1979_v22 = vcombine.low %v1223_v14, %v1227_v29  ;;  %v1235_v39 = vsel %vm2742_vm6, %v1968_v36, %v1234_v37  ;;  %v1999_v43 = vcombine.low %v1219_v0, %v1223_v14 }
  0x3f   : > { %2211 = vmatmul.mubr.msk.bf16.gmra.mrb[4].mxu0 %vm351_vm0, %v1952_v4  ;;  %v1980_v54 = vcombine.low %v1231_v24, %v1235_v39  ;;  %v1500_v11 = vsel %vm2742_vm6, %v2010_v8, %v1499_v33 }
  0x40   : > { %2169 = vmatpush3.bf16.msra.mxu1 %v2397_v62  ;;  %2222 = vmatprep.mubr.msk.bf16.mxu0 %vm351_vm0, %v1977_v17 }
  0x41   : > { %2219 = vmatpush3.bf16.msra.mxu0 %v2392_v61  ;;  %2170 = vmatprep.subr.bf16.mxu1 %v2400_v19 }
  0x42   : > { %2220 = vmatprep.subr.bf16.mxu0 %v2394_v10 }
  0x43   : > { %2163 = vmatmul.mubr.msk.bf16.gmra.mrb[4].mxu1 %vm351_vm0, %v1895_v27 }
  0x44   : > { %2171 = vmatpush3.bf16.msra.mxu1 %v2400_v19  ;;  %2174 = vmatprep.mubr.msk.bf16.mxu1 %vm351_vm0, %v1912_v12 }
  0x45   : > { %2221 = vmatpush3.bf16.msra.mxu0 %v2394_v10  ;;  %2172 = vmatprep.subr.bf16.mxu1 %v2402_v47 }
  0x46   : > { %2230 = vmatprep.subr.bf16.mxu0 %v2396_v55 }
  0x48   : > { %2223 = vmatmul.mubr.msk.bf16.vlgmr.msra.gmra.mrb[0].mxu0 %vm351_vm0, %v1978_v25  ;;  %2173 = vmatpush3.bf16.msra.mxu1 %v2402_v47 }
  0x49   : > { %2231 = vmatpush3.bf16.msra.mxu0 %v2396_v55  ;;  %2226 = vmatprep.mubr.msk.bf16.mxu0 %vm351_vm0, %v1979_v22 }
  0x4a   : > { %2232 = vmatprep.subr.bf16.mxu0 %v2398_v38  ;;  %2262 = vmatprep.subr.bf16.mxu1 %v2408_v56 }
  0x4b   : > { %2175 = vmatmul.mubr.msk.bf16.vlgmr.msra.gmra.mrb[0].mxu1 %vm351_vm0, %v2691_v30  ;;  %v2404_v30 = vld [vmem:[%s2901_s1 + $0x100] sm:$0xff]  }
  0x4c   : > { %2178 = vmatprep.mubr.msk.bf16.mxu1 %vm351_vm0, %v2726_v46  ;;  %v1370_v46 = vrot.slane %v2647_v40, 5  ;;  %2263 = vmatpush3.bf16.msra.mxu1 %v2408_v56 }
  0x4d   : > { %2233 = vmatpush3.bf16.msra.mxu0 %v2398_v38  ;;  %2264 = vmatprep.subr.bf16.mxu1 %v2409_v34 }
  0x4e   : > { %2234 = vmatprep.subr.bf16.mxu0 %v2401_v7  ;;  %v1371_v49 = vsel %vm2742_vm6, %v1989_v45, %v1370_v46 }
  0x4f   : > { %v2001_v40 = vcombine.low %v1235_v39, %v1371_v49  ;;  %v2019_v53 = vcombine.low %v1371_v49, %v1500_v11 }
  0x50   : > { %2227 = vmatmul.mubr.msk.bf16.gmra.mrb[4].mxu0 %vm351_vm0, %v1980_v54  ;;  %2265 = vmatpush3.bf16.msra.mxu1 %v2409_v34 }
  0x51   : > { %2235 = vmatpush3.bf16.msra.mxu0 %v2401_v7  ;;  %2238 = vmatprep.mubr.msk.bf16.mxu0 %vm351_vm0, %v1998_v16 }
  0x52   : > { %2236 = vmatprep.subr.bf16.mxu0 %v2403_v1 }
  0x53   : > { %2179 = vmatmul.mubr.msk.bf16.gmra.mrb[4].mxu1 %vm351_vm0, %v2732_v50  ;;  %v2406_v50 = vld [vmem:[%s2901_s1 + $0x110] sm:$0xff]  }
  0x55   : > { %2237 = vmatpush3.bf16.msra.mxu0 %v2403_v1 }
  0x56   : > { %2246 = vmatprep.subr.bf16.mxu0 %v2404_v30 }
  0x58   : > { %2239 = vmatmul.mubr.msk.bf16.vlgmr.msra.gmra.mrb[0].mxu0 %vm351_vm0, %v1999_v43 }
  0x59   : > { %2247 = vmatpush3.bf16.msra.mxu0 %v2404_v30  ;;  %2242 = vmatprep.mubr.msk.bf16.mxu0 %vm351_vm0, %v2000_v44 }
  0x5a   : > { %2248 = vmatprep.subr.bf16.mxu0 %v2405_v48 }
  0x5d   : > { %2249 = vmatpush3.bf16.msra.mxu0 %v2405_v48 }
  0x5e   : > { %2250 = vmatprep.subr.bf16.mxu0 %v2406_v50 }
  0x60   : > { %2243 = vmatmul.mubr.msk.bf16.gmra.mrb[4].mxu0 %vm351_vm0, %v2001_v40 }
  0x61   : > { %2251 = vmatpush3.bf16.msra.mxu0 %v2406_v50  ;;  %2254 = vmatprep.mubr.msk.bf16.mxu0 %vm351_vm0, %v1978_v25  ;;  %v2030_v50 = vld [vmem:[%s2905_s5] ss:$0 sm:$0xff] }
  0x62   : > { %2252 = vmatprep.subr.bf16.mxu0 %v2407_v51 }
  0x65   : > { %2253 = vmatpush3.bf16.msra.mxu0 %v2407_v51 }
  0x68   : > { %2255 = vmatmul.mubr.msk.bf16.vlgmr.msra.gmra.mrb[0].mxu0 %vm351_vm0, %v1979_v22 }
  0x69   : > { %2258 = vmatprep.mubr.msk.bf16.mxu0 %vm351_vm0, %v1980_v54 }
  0x70   : > { %2259 = vmatmul.mubr.msk.bf16.gmra.mrb[4].mxu0 %vm351_vm0, %v2019_v53 }
 0x11e   : > { %v2176_v57 = vpop.f32.mrb[0].mxu1 }
 0x11f   : > { %v874_v42 = vpop.f32.mrb[1].mxu1 }
 0x120   : > { %v2177_v58 = vpop.f32.mrb[2].mxu1 }
 0x121   : > { %v877_v15 = vpop.f32.mrb[3].mxu1 }
 0x126   : > { %v2180_v59 = vpop.f32.mrb[4].mxu1 }
 0x127   : > { %v890_v61 = vpop.f32.mrb[5].mxu1 }
 0x128   : > { %v2181_v20 = vpop.f32.mrb[6].mxu1 }
 0x129   : > { %v893_v18 = vpop.f32.mrb[7].mxu1 }
 0x13b   : > { %v2256_v62 = vpop.f32.mrb[0].mxu0 }
 0x13c   : > { %v2274_v2 = vadd.f32 %v2256_v62, %v2176_v57  ;;  %v1573_v21 = vpop.f32.mrb[1].mxu0 }
 0x13d   : > { %v2275_v4 = vadd.f32 %v1573_v21, %v874_v42  ;;  %v2257_v5 = vpop.f32.mrb[2].mxu0 }
 0x13e   : > { %v1621_v6 = vmul.f32 %v2274_v2, %v2028_v63  ;;  %v2276_v10 = vadd.f32 %v2257_v5, %v2177_v58  ;;  %v1576_v17 = vpop.f32.mrb[3].mxu0 }
 0x13f   : > { %v1619_v13 = vmul.f32 %v2275_v4, %v2028_v63  ;;  %v2277_v19 = vadd.f32 %v1576_v17, %v877_v15 }
 0x140   : > { %v1636_v23 = vadd.f32 %v2029_v3, %v1621_v6  ;;  %v1622_v26 = vmul.f32 %v2276_v10, %v2028_v63 }
 0x141   : > { %v1634_v41 = vadd.f32 %v2029_v3, %v1619_v13  ;;  %v1620_v27 = vmul.f32 %v2277_v19, %v2028_v63 }
 0x142   : > { %v1637_v12 = vadd.f32 %v2029_v3, %v1622_v26  ;;  %v1644_v47 = vmax.f32 %v1636_v23, 0.0 }
 0x143   : > { %v1635_v28 = vadd.f32 %v2029_v3, %v1620_v27  ;;  %v2260_v0 = vpop.f32.mrb[4].mxu0  ;;  %v1642_v31 = vmax.f32 %v1634_v41, 0.0 }
 0x144   : > { %v1645_v55 = vmax.f32 %v1637_v12, 0.0  ;;  %v2278_v14 = vadd.f32 %v2260_v0, %v2180_v59  ;;  %v1589_v29 = vpop.f32.mrb[5].mxu0 }
 0x145   : > { %v1643_v32 = vmax.f32 %v1635_v28, 0.0  ;;  %v2279_v25 = vadd.f32 %v1589_v29, %v890_v61  ;;  %v2261_v60 = vpop.f32.mrb[6].mxu0 }
 0x146   : > { %v1651_v22 = vpack.c.bf16 %v1645_v55, %v1644_v47  ;;  %v1625_v35 = vmul.f32 %v2278_v14, %v2028_v63  ;;  %v2280_v36 = vadd.f32 %v2261_v60, %v2181_v20  ;;  %v1592_v37 = vpop.f32.mrb[7].mxu0 }
 0x147   : > { %v1650_v38 = vpack.c.bf16 %v1643_v32, %v1642_v31  ;;  %v1623_v24 = vmul.f32 %v2279_v25, %v2028_v63  ;;  %v2281_v39 = vadd.f32 %v1592_v37, %v893_v18 }
 0x148   : > { %v1640_v7 = vadd.f32 %v2029_v3, %v1625_v35  ;;  %v1626_v54 = vmul.f32 %v2280_v36, %v2028_v63 }
 0x149   : > { %v1638_v16 = vadd.f32 %v2029_v3, %v1623_v24  ;;  %v1624_v1 = vmul.f32 %v2281_v39, %v2028_v63  ;;  %2266 = vmatprep.mubr.msk.bf16.mxu1 %vm1677_vm7, %v1650_v38 }
 0x14a   : > { %v1641_v30 = vadd.f32 %v2029_v3, %v1626_v54  ;;  %2267 = vmatmul.mubr.msk.bf16.vlgmr.msra.gmra.mrb[8].mxu1 %vm1677_vm7, %v1651_v22  ;;  %v1648_v43 = vmax.f32 %v1640_v7, 0.0 }
 0x14b   : > { %v1639_v9 = vadd.f32 %v2029_v3, %v1624_v1  ;;  %v1646_v45 = vmax.f32 %v1638_v16, 0.0 }
 0x14c   : > { %v1649_v44 = vmax.f32 %v1641_v30, 0.0 }
 0x14d   : > { %v1647_v46 = vmax.f32 %v1639_v9, 0.0 }
 0x14e   : > { %v1653_v48 = vpack.c.bf16 %v1649_v44, %v1648_v43 }
 0x14f   : > { %v1652_v49 = vpack.c.bf16 %v1647_v46, %v1646_v45 }
 0x151   : > { %2270 = vmatprep.mubr.msk.bf16.mxu1 %vm1677_vm7, %v1652_v49 }
 0x152   : > { %2271 = vmatmul.mubr.msk.bf16.gmra.mrb[12].mxu1 %vm1677_vm7, %v1653_v48 }
 0x21d   : > { %v2268_v40 = vpop.f32.mrb[8].mxu1 }
 0x21e   : > { %v1733_v51 = vadd.f32 %v2268_v40, %v2030_v50  ;;  %v1724_v52 = vpop.f32.mrb[9].mxu1 }
 0x21f   : > { %v1725_v8 = vadd.f32 %v2030_v50, %v1724_v52  ;;  %v2269_v33 = vpop.f32.mrb[10].mxu1 }
 0x220   : > { %1758 = vst.msk [vmem:[%s273_s12 + $0x10] sm:$0xff] %vm1755_vm8, %v1733_v51  ;;  %v1736_v11 = vadd.f32 %v2269_v33, %v2030_v50  ;;  %v1727_v53 = vpop.f32.mrb[11].mxu1 }
 0x221   : > { %1756 = vst.msk [vmem:[%s273_s12] sm:$0xff] %vm1755_vm8, %v1725_v8  ;;  %v1728_v56 = vadd.f32 %v2030_v50, %v1727_v53 }
 0x222   : > { %1759 = vst.msk [vmem:[%s273_s12 + $0x18] sm:$0xff] %vm1755_vm8, %v1736_v11 }
 0x223   : > { %1757 = vst.msk [vmem:[%s273_s12 + $0x8] sm:$0xff] %vm1755_vm8, %v1728_v56 }
 0x225   : > { %v2272_v34 = vpop.f32.mrb[12].mxu1 }
 0x226   : > { %v1749_v57 = vadd.f32 %v2272_v34, %v2030_v50  ;;  %v1740_v42 = vpop.f32.mrb[13].mxu1 }
 0x227   : > { %v1741_v58 = vadd.f32 %v2030_v50, %v1740_v42  ;;  %v2273_v15 = vpop.f32.mrb[14].mxu1 }
 0x228   : > { %1762 = vst.msk [vmem:[%s273_s12 + $0x30] sm:$0xff] %vm1755_vm8, %v1749_v57  ;;  %v1752_v59 = vadd.f32 %v2273_v15, %v2030_v50  ;;  %v1743_v61 = vpop.f32.mrb[15].mxu1 }
 0x229   : > { %1760 = vst.msk [vmem:[%s273_s12 + $0x20] sm:$0xff] %vm1755_vm8, %v1741_v58  ;;  %v1744_v20 = vadd.f32 %v2030_v50, %v1743_v61 }
 0x22a   : > { %1763 = vst.msk [vmem:[%s273_s12 + $0x38] sm:$0xff] %vm1755_vm8, %v1752_v59 }
 0x22b   : > { %1761 = vst.msk [vmem:[%s273_s12 + $0x28] sm:$0xff] %vm1755_vm8, %v1744_v20 }
 0x22c PF: > { %s16_s23 = sadd.s32 1, %s2432_s23   ;;  %s2911_s21 = smov %s2428_s22 }
 0x22d   : > { %p13_p5 = scmp.ge.s32.totalorder %s16_s23, 4   ;;  %s2912_s22 = smov %s2914_s24 }
 0x22f   :  { %15 = sbr.rel (!%p13_p5) target bundleno = 2 (0x2), region = 83 }

// kernel: fastfcn_forward.4
= control target key start
LH: loop header
LB: loop body
LE: loop exit
PB: predicated region body
PF: predicated region fallthrough
CT: control target
= control target key end

     0   :  { %s3477_s24 = smov 0   ;;  %s3479_s25 = smov 0   ;;  %s5492_s0 = inlined_call_operand.vmem [shape: bf16[2,24,24,48], index: 0, kind: input, shape index: {}]   ;;  %s5493_s1 = inlined_call_operand.vmem [shape: f32[36,1,48], index: 1, kind: input, shape index: {}]   ;;  %s5494_s2 = inlined_call_operand.vmem [shape: f32[4,1,48], index: 2, kind: input, shape index: {}]   ;;  %s5495_s3 = inlined_call_operand.vmem [shape: f32[4,1,48], index: 3, kind: input, shape index: {}]   ;;  %s5496_s4 = inlined_call_operand.vmem [shape: bf16[192,64], index: 4, kind: input, shape index: {}]   ;;  %s5497_s5 = inlined_call_operand.vmem [shape: f32[1,64], index: 5, kind: input, shape index: {}]   ;;  %s5498_s6 = inlined_call_operand.vmem [shape: f32[1,64], index: 6, kind: input, shape index: {}]   ;;  %s5499_s7 = inlined_call_operand.vmem [shape: bf16[2,8,8,64], index: 7, kind: output, shape index: {}]  }
   0x1   :  { %s3481_s26 = smov 0  }
   0x2 LB: > { %s29_s27 = sadd.s32 1, %s3427_s25  ;;  %p3195_p0 = scmp.ge.s32.totalorder %s3431_s26, 1  ;;  %s3431_s26 = sphi %s3481_s26, %s17_s26   ;;  %s3427_s25 = sphi %s3479_s25, %s5784_s25   ;;  %s3423_s24 = sphi %s3477_s24, %s5783_s24  }
   0x3   : > { %p31_p1 = scmp.ge.s32.totalorder %s29_s27, 2  ;;  %p251_p2 = scmp.lt.s32.totalorder %s3431_s26, 3 }
   0x5   : > { %s5786_s27 = smov (%p31_p1, %s29_s27), 0  ;;  %p252_p3 = pnand %p3195_p0, %p251_p2 }
   0x7   : > { %255 = sbr.rel (%p252_p3) target bundleno = 663 (0x297), region = 48 }
   0xe   : > { %p287_p4 = scmp.lt.s32.totalorder %s3423_s24, 1  ;;  %v3247_v0 = vld [vmem:[%s5493_s1 + $0x13] ss:$0 sm:$0xff]  ;;  %v3516_v4 = vld [vmem:[%s5493_s1 + $0x1b] ss:$0 sm:$0xff]  ;;  %s3433_s21 = smov 16  }
   0xf   : > { %v3521_v5 = vld [vmem:[%s5493_s1 + $0x1e] ss:$0 sm:$0xff]  ;;  %v3540_v24 = vld [vmem:[%s5493_s1 + $0x21] ss:$0 sm:$0xff]  ;;  %v3547_v29 = vld [vmem:[%s5493_s1 + $0x1c] ss:$0 sm:$0xff] }
  0x10   : > { %s5788_s24 = smov (!%p287_p4, %s3423_s24), 1  ;;  %v3552_v30 = vld [vmem:[%s5493_s1 + $0x1f] ss:$0 sm:$0xff]  ;;  %v3561_v35 = vld [vmem:[%s5493_s1 + $0x22] ss:$0 sm:$0xff]  ;;  %vm1438_vm0 = vcmask 1043456  }
  0x11   : > { %s3345_s28 = smul.u32 288, %s5788_s24  ;;  %v3574_v44 = vld [vmem:[%s5493_s1 + $0x1d] ss:$0 sm:$0xff]  ;;  %v3583_v49 = vld [vmem:[%s5493_s1 + $0x20] ss:$0 sm:$0xff]  ;;  %s3434_s11 = smov 96  }
  0x12   : > { %v3588_v50 = vld [vmem:[%s5493_s1 + $0x23] ss:$0 sm:$0xff]  ;;  %vm1767_vm1 = vcmask 1041408   ;;  %s3435_s9 = smov 48   ;;  %vm706_vm2 = vcmask 1045504   ;;  %vm2850_vm3 = vcmask 130048  }
  0x13   : > { %s3501_s8 = scalar_lea.vmem %s5492_s0, %s3345_s28  ;;  %vm2955_vm4 = vcmask 523264   ;;  %vm1033_vm5 = vcmask 1040384   ;;  %vm2824_vm6 = vcmask 392192   ;;  %vm2837_vm7 = vcmask 785408  }
  0x14   : > { %v3507_v1 = vld [vmem:[%s3501_s8 + $0x94] sm:$0xff]   ;;  %v3510_v2 = vld [vmem:[%s3501_s8 + $0xa0] sm:$0xff]   ;;  %v2444_v16 = vld [vmem:[%s3501_s8 + $0x30] ss:$12 sps:$4 sm:$0xff]   ;;  %vm3099_vm8 = vcmask 519168  }
  0x15   : > { %v454_v3 = vld [vmem:[%s3501_s8 + $0x34] sm:$0xff]   ;;  %v3524_v6 = vunpack.c.l.bf16 %v3507_v1  ;;  %v3527_v7 = vunpack.c.l.bf16 %v3510_v2  ;;  %v455_v8 = vld [vmem:[%s3501_s8 + $0x40] sm:$0xff]   ;;  %v2452_v17 = vld [vmem:[%s3501_s8 + $0x90] ss:$12 sps:$4 sm:$0xff]   ;;  %v2468_v21 = vunpack.c.l.bf16 %v2444_v16  ;;  %v2469_v22 = vunpack.c.h.bf16 %v2444_v16 }
  0x16   : > { %v460_v9 = vld [vmem:[%s3501_s8 + $0xf4] sm:$0xff]   ;;  %v461_v10 = vld [vmem:[%s3501_s8 + $0x100] sm:$0xff]   ;;  %v468_v11 = vunpack.c.l.bf16 %v454_v3  ;;  %v2652_v12 = vunpack.c.h.bf16 %v454_v3  ;;  %v469_v13 = vunpack.c.l.bf16 %v455_v8  ;;  %v2460_v18 = vld [vmem:[%s3501_s8 + $0xf0] ss:$12 sps:$4 sm:$0xff]   ;;  %v2653_v19 = vunpack.c.h.bf16 %v455_v8 }
  0x17   : > { %5618 = vst [vmem:[#allocation2_spill] sm:$0xff] %v3524_v6  ;;  %5619 = vst [vmem:[#allocation3_spill] sm:$0xff] %v3527_v7  ;;  %v474_v14 = vunpack.c.l.bf16 %v460_v9  ;;  %v475_v15 = vunpack.c.l.bf16 %v461_v10  ;;  %v2476_v23 = vunpack.c.l.bf16 %v2452_v17  ;;  %v2477_v26 = vunpack.c.h.bf16 %v2452_v17  ;;  %v3593_v55 = vld [vmem:[%s3501_s8 + $0x64] sm:$0xff]   ;;  %v3596_v56 = vld [vmem:[%s3501_s8 + $0x70] sm:$0xff]  }
  0x18   : > { %v3535_v20 = vmul.f32 %v3247_v0, %v468_v11  ;;  %v3542_v25 = vmul.f32 %v3247_v0, %v469_v13  ;;  %v2484_v27 = vunpack.c.l.bf16 %v2460_v18  ;;  %v2485_v28 = vunpack.c.h.bf16 %v2460_v18  ;;  %v3601_v61 = vld [vmem:[%s3501_s8 + $0xc4] sm:$0xff]   ;;  %v3607_v63 = vld [vmem:[%s3501_s8 + $0x10] sm:$0xff]  }
  0x19   : > { %v2500_v32 = vmul.f32 %v3516_v4, %v2468_v21  ;;  %v2501_v33 = vmul.f32 %v3516_v4, %v2469_v22  ;;  %v2516_v34 = vmul.f32 %v3521_v5, %v2476_v23  ;;  %v2517_v37 = vmul.f32 %v3521_v5, %v2477_v26  ;;  %v3604_v62 = vld [vmem:[%s3501_s8 + $0x4] sm:$0xff]   ;;  %v3613_v8 = vld [vmem:[%s3501_s8 + $0xd0] sm:$0xff]  }
  0x1a   : > { %v1996_v31 = vrot.slane %v3535_v20, 4  ;;  %v1997_v36 = vrot.slane %v3542_v25, 4  ;;  %v2540_v38 = vmul.f32 %v3540_v24, %v2484_v27  ;;  %v2541_v39 = vmul.f32 %v3540_v24, %v2485_v28  ;;  %v3811_v25 = vld [vmem:[%s3501_s8 + $0xa4] sm:$0x3] }
  0x1b   : > { %v2524_v40 = vadd.f32 %v2516_v34, %v2500_v32  ;;  %v2564_v41 = vmul.f32 %v3547_v29, %v468_v11  ;;  %v2565_v42 = vmul.f32 %v3547_v29, %v469_v13  ;;  %v2588_v43 = vmul.f32 %v3552_v30, %v3524_v6  ;;  %5625 = vst [vmem:[#allocation9_spill] sm:$0xff] %v3811_v25 }
  0x1c   : > { %v2525_v45 = vadd.f32 %v2517_v37, %v2501_v33  ;;  %v2589_v46 = vmul.f32 %v3552_v30, %v3527_v7  ;;  %v2612_v47 = vmul.f32 %v3561_v35, %v474_v14  ;;  %v2613_v48 = vmul.f32 %v3561_v35, %v475_v15  ;;  %v2448_v14 = vld [vmem:[%s3501_s8 + $0x60] ss:$12 sps:$4 sm:$0xff]  }
  0x1d   : > { %v2548_v51 = vadd.f32 %v2540_v38, %v2524_v40  ;;  %v2660_v52 = vunpack.c.h.bf16 %v3507_v1  ;;  %v2661_v53 = vunpack.c.h.bf16 %v3510_v2  ;;  %v2668_v54 = vunpack.c.h.bf16 %v460_v9  ;;  %v2440_v9 = vld [vmem:[%s3501_s8] ss:$12 sps:$4 sm:$0xff]  }
  0x1e   : > { %v2549_v57 = vadd.f32 %v2541_v39, %v2525_v45  ;;  %v2669_v58 = vunpack.c.h.bf16 %v461_v10  ;;  %v2684_v59 = vmul.f32 %v3574_v44, %v2652_v12  ;;  %v2685_v60 = vmul.f32 %v3574_v44, %v2653_v19  ;;  %v2456_v15 = vld [vmem:[%s3501_s8 + $0xc0] ss:$12 sps:$4 sm:$0xff]  }
  0x1f   : > { %v2572_v0 = vadd.f32 %v2564_v41, %v2548_v51  ;;  %v2708_v1 = vmul.f32 %v3583_v49, %v2660_v52  ;;  %v2709_v2 = vmul.f32 %v3583_v49, %v2661_v53  ;;  %v2732_v3 = vmul.f32 %v3588_v50, %v2668_v54 }
  0x20   : > { %v2573_v10 = vadd.f32 %v2565_v42, %v2549_v57  ;;  %v2733_v11 = vmul.f32 %v3588_v50, %v2669_v58  ;;  %v3618_v12 = vunpack.c.l.bf16 %v3593_v55  ;;  %v3621_v13 = vunpack.c.l.bf16 %v3596_v56 }
  0x21   : > { %v2596_v16 = vadd.f32 %v2588_v43, %v2572_v0  ;;  %v3626_v17 = vunpack.c.l.bf16 %v3601_v61  ;;  %v464_v18 = vunpack.c.l.bf16 %v3604_v62  ;;  %v465_v19 = vunpack.c.l.bf16 %v3607_v63 }
  0x22   : > { %5620 = vst [vmem:[#allocation4_spill] sm:$0xff] %v3618_v12  ;;  %5621 = vst [vmem:[#allocation5_spill] sm:$0xff] %v3621_v13  ;;  %v2597_v21 = vadd.f32 %v2589_v46, %v2573_v10  ;;  %v3631_v22 = vunpack.c.l.bf16 %v3613_v8  ;;  %v2464_v23 = vunpack.c.l.bf16 %v2440_v9  ;;  %v2465_v26 = vunpack.c.h.bf16 %v2440_v9 }
  0x23   : > { %5622 = vst [vmem:[#allocation6_spill] sm:$0xff] %v3626_v17  ;;  %v2620_v27 = vadd.f32 %v2612_v47, %v2596_v16  ;;  %v2472_v28 = vunpack.c.l.bf16 %v2448_v14  ;;  %v2473_v32 = vunpack.c.h.bf16 %v2448_v14  ;;  %v2480_v33 = vunpack.c.l.bf16 %v2456_v15  ;;  %v1804_v16 = vld [vmem:[%s3501_s8 + $0x30] sm:$0xc] }
  0x24   : > { %v2621_v34 = vadd.f32 %v2613_v48, %v2597_v21  ;;  %v2481_v37 = vunpack.c.h.bf16 %v2456_v15  ;;  %v2496_v38 = vmul.f32 %v3516_v4, %v2464_v23  ;;  %v2497_v39 = vmul.f32 %v3516_v4, %v2465_v26  ;;  %v1805_v21 = vld [vmem:[%s3501_s8 + $0x34] sm:$0x3]  ;;  %v1806_v23 = vld [vmem:[%s3501_s8 + $0x3c] sm:$0xc]  ;;  %v1807_v26 = vld [vmem:[%s3501_s8 + $0x40] sm:$0x3] }
  0x25   : > { %v2692_v40 = vadd.f32 %v2684_v59, %v2620_v27  ;;  %v2512_v41 = vmul.f32 %v3521_v5, %v2472_v28  ;;  %v2513_v42 = vmul.f32 %v3521_v5, %v2473_v32  ;;  %v2536_v43 = vmul.f32 %v3540_v24, %v2480_v33  ;;  %v3646_v5 = vld [vmem:[%s5494_s2 + $0x3] ss:$0 sm:$0xff]  ;;  %v3683_v33 = vld [vmem:[%s3501_s8 + $0x64] sm:$0x3] }
  0x26   : > { %v2693_v45 = vadd.f32 %v2685_v60, %v2621_v34  ;;  %v2537_v46 = vmul.f32 %v3540_v24, %v2481_v37  ;;  %v2560_v47 = vmul.f32 %v3547_v29, %v464_v18  ;;  %v2561_v51 = vmul.f32 %v3547_v29, %v465_v19  ;;  %v3680_v32 = vld [vmem:[%s3501_s8 + $0x60] sm:$0xc]  ;;  %v3686_v34 = vld [vmem:[%s3501_s8 + $0x6c] sm:$0xc] }
  0x27   : > { %v2716_v48 = vadd.f32 %v2708_v1, %v2692_v40  ;;  %v2520_v52 = vadd.f32 %v2512_v41, %v2496_v38  ;;  %v2521_v53 = vadd.f32 %v2513_v42, %v2497_v39  ;;  %v2584_v4 = vmul.f32 %v3552_v30, %v3618_v12  ;;  %v3689_v40 = vld [vmem:[%s3501_s8 + $0x70] sm:$0x3]  ;;  %v3692_v41 = vld [vmem:[%s3501_s8 + $0x90] sm:$0xc] }
  0x28   : > { %v2717_v54 = vadd.f32 %v2709_v2, %v2693_v45  ;;  %v2585_v57 = vmul.f32 %v3552_v30, %v3621_v13  ;;  %v2608_v24 = vmul.f32 %v3561_v35, %v3626_v17  ;;  %v2609_v29 = vmul.f32 %v3561_v35, %v3631_v22  ;;  %v3658_v2 = vld [vmem:[%s5495_s3 + $0x3] ss:$0 sm:$0xff]  ;;  %v3698_v45 = vld [vmem:[%s3501_s8 + $0x9c] sm:$0xc] }
  0x29   : > { %v2740_v58 = vadd.f32 %v2732_v3, %v2716_v48  ;;  %v2544_v59 = vadd.f32 %v2536_v43, %v2520_v52  ;;  %v2545_v60 = vadd.f32 %v2537_v46, %v2521_v53  ;;  %v2648_v0 = vunpack.c.h.bf16 %v3604_v62  ;;  %v3695_v43 = vld [vmem:[%s3501_s8 + $0x94] sm:$0x3]  ;;  %v3701_v52 = vld [vmem:[%s3501_s8 + $0xa0] sm:$0x3] }
  0x2a   : > { %v2741_v1 = vadd.f32 %v2733_v11, %v2717_v54  ;;  %v2649_v30 = vunpack.c.h.bf16 %v3607_v63  ;;  %v2656_v9 = vunpack.c.h.bf16 %v3593_v55  ;;  %v2657_v35 = vunpack.c.h.bf16 %v3596_v56  ;;  %v3708_v54 = vld [vmem:[%s5493_s1 + $0x12] ss:$0 sm:$0xff] }
  0x2b   : > { %v2756_v3 = vmul.f32 %v3646_v5, %v2740_v58  ;;  %v2568_v10 = vadd.f32 %v2560_v47, %v2544_v59  ;;  %v2569_v14 = vadd.f32 %v2561_v51, %v2545_v60  ;;  %v2664_v62 = vunpack.c.h.bf16 %v3601_v61  ;;  %v3716_v59 = vld [vmem:[%s5493_s1 + $0x15] ss:$0 sm:$0xff] }
  0x2c   : > { %v2757_v11 = vmul.f32 %v3646_v5, %v2741_v1  ;;  %v2665_v15 = vunpack.c.h.bf16 %v3613_v8  ;;  %v2680_v63 = vmul.f32 %v3574_v44, %v2648_v0  ;;  %v2681_v55 = vmul.f32 %v3574_v44, %v2649_v30 }
  0x2d   : > { %v2772_v56 = vadd.f32 %v3658_v2, %v2756_v3  ;;  %v2592_v18 = vadd.f32 %v2584_v4, %v2568_v10  ;;  %v2593_v19 = vadd.f32 %v2585_v57, %v2569_v14  ;;  %v2704_v61 = vmul.f32 %v3583_v49, %v2656_v9  ;;  %v3723_v9 = vld [vmem:[%s5493_s1 + $0x18] ss:$0 sm:$0xff] }
  0x2e   : > { %v2773_v8 = vadd.f32 %v3658_v2, %v2757_v11  ;;  %v2705_v27 = vmul.f32 %v3583_v49, %v2657_v35  ;;  %v2728_v44 = vmul.f32 %v3588_v50, %v2664_v62  ;;  %v2729_v28 = vmul.f32 %v3588_v50, %v2665_v15 }
  0x2f   : > { %v2780_v37 = vmax.f32 %v2772_v56, 0.0  ;;  %v2616_v38 = vadd.f32 %v2608_v24, %v2592_v18  ;;  %v2617_v39 = vadd.f32 %v2609_v29, %v2593_v19  ;;  %v1836_v42 = vunpack.c.l.bf16 %v1804_v16 }
  0x30   : > { %v2781_v49 = vmax.f32 %v2773_v8, 0.0  ;;  %v1837_v50 = vunpack.c.l.bf16 %v1805_v21  ;;  %v1838_v46 = vunpack.c.l.bf16 %v1806_v23  ;;  %v1839_v47 = vunpack.c.l.bf16 %v1807_v26  ;;  %v3754_v26 = vld [vmem:[%s5493_s1 + $0x16] ss:$0 sm:$0xff] }
  0x31   : > { %v2688_v51 = vadd.f32 %v2680_v63, %v2616_v38  ;;  %v2689_v48 = vadd.f32 %v2681_v55, %v2617_v39  ;;  %v5515_v53 = vunpack.c.l.bf16 %v3680_v32  ;;  %v5514_v4 = vunpack.c.l.bf16 %v3683_v33 }
  0x32   : > { %v2786_v57 = vpack.c.bf16 %v2781_v49, %v2780_v37  ;;  %v5513_v24 = vunpack.c.l.bf16 %v3686_v34  ;;  %v5512_v29 = vunpack.c.l.bf16 %v3689_v40  ;;  %v5511_v58 = vunpack.c.l.bf16 %v3692_v41 }
  0x33   : > { %v2712_v60 = vadd.f32 %v2704_v61, %v2688_v51  ;;  %v2713_v0 = vadd.f32 %v2705_v27, %v2689_v48  ;;  %v5510_v1 = vunpack.c.l.bf16 %v3695_v43  ;;  %v5509_v30 = vunpack.c.l.bf16 %v3698_v45  ;;  %v2141_v51 = vld [vmem:[%s3501_s8 + $0x38] sm:$0x3] }
  0x34   : > { %2820 = vrot.lane.b32.xlu1 %v2786_v57, %s3433_s21  ;;  %v5508_v35 = vunpack.c.l.bf16 %v3701_v52  ;;  %v1876_v3 = vmul.f32 %v3708_v54, %v1836_v42  ;;  %v1877_v10 = vmul.f32 %v3708_v54, %v1837_v50  ;;  %v1878_v14 = vmul.f32 %v3708_v54, %v1838_v46 }
  0x35   : > { %v2736_v62 = vadd.f32 %v2728_v44, %v2712_v60  ;;  %v2737_v11 = vadd.f32 %v2729_v28, %v2713_v0  ;;  %v1879_v15 = vmul.f32 %v3708_v54, %v1839_v47  ;;  %v1900_v63 = vmul.f32 %v3716_v59, %v5515_v53  ;;  %v3771_v47 = vld [vmem:[%s5493_s1 + $0x19] ss:$0 sm:$0xff] }
  0x36   : > { %v1901_v55 = vmul.f32 %v3716_v59, %v5514_v4  ;;  %v1902_v16 = vmul.f32 %v3716_v59, %v5513_v24  ;;  %v1903_v56 = vmul.f32 %v3716_v59, %v5512_v29  ;;  %v1940_v18 = vmul.f32 %v3723_v9, %v5511_v58  ;;  %v3923_v24 = vld [vmem:[%s3501_s8 + $0x64] sm:$0x7] }
  0x37   : > { %v2752_v19 = vmul.f32 %v3646_v5, %v2736_v62  ;;  %v2753_v61 = vmul.f32 %v3646_v5, %v2737_v11  ;;  %v1916_v21 = vadd.f32 %v1900_v63, %v1876_v3  ;;  %v1941_v23 = vmul.f32 %v3723_v9, %v5510_v1  ;;  %v2142_v3 = vld [vmem:[%s3501_s8 + $0x40] sm:$0xc]  ;;  %5641 = vst [vmem:[#allocation25_spill] sm:$0xff] %v3923_v24 }
  0x38   : > { %v1917_v8 = vadd.f32 %v1901_v55, %v1877_v10  ;;  %v1918_v27 = vadd.f32 %v1902_v16, %v1878_v14  ;;  %v1919_v44 = vadd.f32 %v1903_v56, %v1879_v15  ;;  %v1942_v28 = vmul.f32 %v3723_v9, %v5509_v30  ;;  %v2143_v10 = vld [vmem:[%s3501_s8 + $0x44] sm:$0x3]  ;;  %v3780_v14 = vld [vmem:[%s3501_s8 + $0x64] sm:$0xc]  ;;  %v3787_v55 = vld [vmem:[%s3501_s8 + $0x68] sm:$0x3] }
  0x39   : > { %v2768_v5 = vadd.f32 %v3658_v2, %v2752_v19  ;;  %v2769_v37 = vadd.f32 %v3658_v2, %v2753_v61  ;;  %v1943_v38 = vmul.f32 %v3723_v9, %v5508_v35  ;;  %v1956_v39 = vadd.f32 %v1940_v18, %v1916_v21  ;;  %v2140_v2 = vld [vmem:[%s3501_s8 + $0x34] sm:$0xc]  ;;  %v3799_v19 = vld [vmem:[%s3501_s8 + $0x74] sm:$0x3]  ;;  %v3805_v21 = vld [vmem:[%s3501_s8 + $0x98] sm:$0x3] }
  0x3a   : > { %v1957_v42 = vadd.f32 %v1941_v23, %v1917_v8  ;;  %v1958_v49 = vadd.f32 %v1942_v28, %v1918_v27  ;;  %v2036_v50 = vmul.f32 %v3754_v26, %v3618_v12  ;;  %v2037_v46 = vmul.f32 %v3754_v26, %v3621_v13  ;;  %v3802_v61 = vld [vmem:[%s3501_s8 + $0x94] sm:$0xc]  ;;  %5623 = vst [vmem:[#allocation7_spill] sm:$0xff] %v3805_v21  ;;  %v3816_v28 = vld [vmem:[%s5493_s1 + $0x14] ss:$0 sm:$0xff] }
  0x3b   : > { %v2776_v48 = vmax.f32 %v2768_v5, 0.0  ;;  %v2777_v57 = vmax.f32 %v2769_v37, 0.0  ;;  %v1959_v60 = vadd.f32 %v1943_v38, %v1919_v44  ;;  %v2012_v0 = vadd.f32 %v1996_v31, %v1956_v39  ;;  %v3808_v44 = vld [vmem:[%s3501_s8 + $0xa0] sm:$0xc]  ;;  %v1070_v30 = vld [vmem:[%s3501_s8 + $0x48] sm:$0x8] }
  0x3c   : > { %v2013_v62 = vadd.f32 %v1996_v31, %v1957_v42  ;;  %v2014_v11 = vadd.f32 %v1997_v36, %v1958_v49  ;;  %v2052_v15 = vrot.slane %v2036_v50, 4  ;;  %v2053_v63 = vrot.slane %v2037_v46, 4  ;;  %v3796_v31 = vld [vmem:[%s3501_s8 + $0x70] sm:$0xc]  ;;  %5624 = vst [vmem:[#allocation8_spill] sm:$0xff] %v3808_v44 }
  0x3d   : > { %v2784_v16 = vpack.c.bf16 %v2777_v57, %v2776_v48  ;;  %v2015_v56 = vadd.f32 %v1997_v36, %v1959_v60  ;;  %v2092_v18 = vmul.f32 %v3771_v47, %v3524_v6  ;;  %v2093_v20 = vmul.f32 %v3771_v47, %v3527_v7  ;;  %v3822_v42 = vld [vmem:[%s5493_s1 + $0x17] ss:$0 sm:$0xff] }
  0x3e   : > { %v2068_v23 = vadd.f32 %v2052_v15, %v2012_v0  ;;  %v2069_v8 = vadd.f32 %v2052_v15, %v2013_v62  ;;  %v2070_v27 = vadd.f32 %v2053_v63, %v2014_v11  ;;  %v2172_v36 = vunpack.c.l.bf16 %v2140_v2  ;;  %v3829_v62 = vld [vmem:[%s5493_s1 + $0x1a] ss:$0 sm:$0xff] }
  0x3f   : > { %2816 = vrot.lane.b32.xlu0 %v2784_v16, %s3433_s21  ;;  %v2071_v5 = vadd.f32 %v2053_v63, %v2015_v56  ;;  %v2108_v37 = vrot.slane %v2092_v18, 4  ;;  %v2109_v38 = vrot.slane %v2093_v20, 4  ;;  %v2173_v39 = vunpack.c.l.bf16 %v2141_v51  ;;  %5626 = vst [vmem:[#allocation10_spill] sm:$0xff] %v3829_v62 }
  0x40   : > { %v2174_v49 = vunpack.c.l.bf16 %v2142_v3  ;;  %v2175_v50 = vunpack.c.l.bf16 %v2143_v10  ;;  %v5507_v46 = vunpack.c.l.bf16 %v3780_v14  ;;  %v5502_v2 = vunpack.c.l.bf16 %v3787_v55 }
  0x41   : > { %v2124_v48 = vadd.f32 %v2108_v37, %v2068_v23  ;;  %v2125_v57 = vadd.f32 %v2108_v37, %v2069_v8  ;;  %v2126_v60 = vadd.f32 %v2109_v38, %v2070_v27  ;;  %v2127_v0 = vadd.f32 %v2109_v38, %v2071_v5  ;;  %v3854_v38 = vld [vmem:[%s3501_s8 + $0x54] sm:$0x8] }
  0x42   : > { %v5500_v51 = vunpack.c.l.bf16 %v3796_v31  ;;  %v5501_v11 = vunpack.c.l.bf16 %v3799_v19  ;;  %v5505_v3 = vunpack.c.l.bf16 %v3802_v61  ;;  %v5503_v10 = vunpack.c.l.bf16 %v3805_v21  ;;  %5627 = vst [vmem:[#allocation11_spill] sm:$0xff] %v3854_v38 }
  0x43   : > { %v5504_v15 = vunpack.c.l.bf16 %v3808_v44  ;;  %v5506_v63 = vunpack.c.l.bf16 %v3811_v25  ;;  %v2212_v16 = vmul.f32 %v3816_v28, %v2172_v36  ;;  %v2213_v56 = vmul.f32 %v3816_v28, %v2173_v39  ;;  %v308_v39 = vld [vmem:[%s3501_s8 + $0x58] ss:$36 sps:$4 sm:$0xff]  }
  0x44   : > { %v2214_v18 = vmul.f32 %v3816_v28, %v2174_v49  ;;  %v2215_v20 = vmul.f32 %v3816_v28, %v2175_v50  ;;  %v2252_v23 = vmul.f32 %v3822_v42, %v5507_v46  ;;  %v2253_v8 = vmul.f32 %v3822_v42, %v5502_v2  ;;  %v3892_v46 = vld [vmem:[%s5495_s3 + $0x2] ss:$0 sm:$0xff] }
  0x45   : > { %v2228_v27 = vadd.f32 %v2212_v16, %v2124_v48  ;;  %v2229_v5 = vadd.f32 %v2213_v56, %v2125_v57  ;;  %v2254_v36 = vmul.f32 %v3822_v42, %v5500_v51  ;;  %v2255_v37 = vmul.f32 %v3822_v42, %v5501_v11  ;;  %v309_v16 = vld [vmem:[%s3501_s8 + $0x60] sm:$0x8]  ;;  %v311_v56 = vld [vmem:[%s3501_s8 + $0x6c] sm:$0x8]  ;;  %5633 = vst [vmem:[#allocation17_spill] sm:$0xff] %v3892_v46 }
  0x46   : > { %v2230_v49 = vadd.f32 %v2214_v18, %v2126_v60  ;;  %v2231_v50 = vadd.f32 %v2215_v20, %v2127_v0  ;;  %v2292_v48 = vmul.f32 %v3829_v62, %v5505_v3  ;;  %v2293_v57 = vmul.f32 %v3829_v62, %v5503_v10  ;;  %v313_v0 = vld [vmem:[%s3501_s8 + $0x78] sm:$0x8]  ;;  %v3875_v10 = vld [vmem:[%s5494_s2 + $0x2] ss:$0 sm:$0xff]  ;;  %v316_v3 = vld [vmem:[%s3501_s8 + $0x4c] ss:$60 sps:$4 sm:$0xff]  }
  0x47   : > { %v2268_v51 = vadd.f32 %v2252_v23, %v2228_v27  ;;  %v2269_v11 = vadd.f32 %v2253_v8, %v2229_v5  ;;  %v2294_v2 = vmul.f32 %v3829_v62, %v5504_v15  ;;  %v2295_v60 = vmul.f32 %v3829_v62, %v5506_v63  ;;  %5628 = vst [vmem:[#allocation12_spill] sm:$0xff] %v3875_v10  ;;  %v315_v23 = vld [vmem:[%s3501_s8 + $0x84] sm:$0x8]  ;;  %v3939_v62 = vld [vmem:[%s5493_s1 + $0x9] ss:$0 sm:$0xff] }
  0x48   : > { %v2270_v18 = vadd.f32 %v2254_v36, %v2230_v49  ;;  %v2271_v20 = vadd.f32 %v2255_v37, %v2231_v50  ;;  %v3879_v27 = vunpack.c.l.bf16 %v308_v39  ;;  %v3882_v63 = vunpack.c.l.bf16 %v309_v16  ;;  %v3887_v37 = vld [vmem:[%s3501_s8 + $0x5c] sm:$0x1] }
  0x49   : > { %v2308_v5 = vadd.f32 %v2292_v48, %v2268_v51  ;;  %v2309_v15 = vadd.f32 %v2293_v57, %v2269_v11  ;;  %v3884_v36 = vunpack.c.l.bf16 %v311_v56  ;;  %5632 = vst [vmem:[#allocation16_spill] sm:$0xff] %v3887_v37  ;;  %v3894_v51 = vunpack.c.l.bf16 %v313_v0  ;;  %v647_v48 = vld [vmem:[%s3501_s8 + $0x68] sm:$0x1]  ;;  %v648_v57 = vld [vmem:[%s3501_s8 + $0x74] sm:$0x1] }
  0x4a   : > { %5629 = vst [vmem:[#allocation13_spill] sm:$0xff] %v3879_v27  ;;  %5630 = vst [vmem:[#allocation14_spill] sm:$0xff] %v3882_v63  ;;  %v2310_v49 = vadd.f32 %v2294_v2, %v2270_v18  ;;  %v2311_v50 = vadd.f32 %v2295_v60, %v2271_v20  ;;  %v3896_v11 = vunpack.c.h.bf16 %v308_v39  ;;  %v3902_v2 = vunpack.c.l.bf16 %v315_v23  ;;  %v649_v18 = vld [vmem:[%s3501_s8 + $0x80] sm:$0x1]  ;;  %v650_v20 = vld [vmem:[%s3501_s8 + $0x8c] sm:$0x1] }
  0x4b   : > { %5631 = vst [vmem:[#allocation15_spill] sm:$0xff] %v3884_v36  ;;  %5634 = vst [vmem:[#allocation18_spill] sm:$0xff] %v3894_v51  ;;  %v2332_v16 = vmul.f32 %v3875_v10, %v2308_v5  ;;  %v2333_v56 = vmul.f32 %v3875_v10, %v2309_v15  ;;  %v3904_v60 = vunpack.c.h.bf16 %v316_v3  ;;  %v3910_v0 = vunpack.c.l.bf16 %v316_v3  ;;  %v1071_v15 = vld [vmem:[%s3501_s8 + $0x4c] sm:$0x7]  ;;  %v3932_v5 = vld [vmem:[%s3501_s8 + $0x70] sm:$0x7] }
  0x4c   : > { %5635 = vst [vmem:[#allocation19_spill] sm:$0xff] %v3896_v11  ;;  %5636 = vst [vmem:[#allocation20_spill] sm:$0xff] %v3902_v2  ;;  %v2334_v35 = vmul.f32 %v3875_v10, %v2310_v49  ;;  %v2335_v39 = vmul.f32 %v3875_v10, %v2311_v50  ;;  %v3917_v58 = vunpack.c.l.bf16 %v647_v48  ;;  %v3919_v29 = vunpack.c.l.bf16 %v648_v57  ;;  %v1072_v49 = vld [vmem:[%s3501_s8 + $0x58] sm:$0x7]  ;;  %v1076_v48 = vld [vmem:[%s3501_s8 + $0x88] sm:$0x7] }
  0x4d   : > { %5637 = vst [vmem:[#allocation21_spill] sm:$0xff] %v3904_v60  ;;  %5638 = vst [vmem:[#allocation22_spill] sm:$0xff] %v3910_v0  ;;  %v2356_v23 = vadd.f32 %v3892_v46, %v2332_v16  ;;  %v2357_v1 = vadd.f32 %v3892_v46, %v2333_v56  ;;  %v3927_v4 = vunpack.c.l.bf16 %v649_v18  ;;  %v3929_v53 = vunpack.c.l.bf16 %v650_v20  ;;  %v1075_v16 = vld [vmem:[%s3501_s8 + $0x7c] sm:$0x7] }
  0x4e   : > { %5639 = vst [vmem:[#allocation23_spill] sm:$0xff] %v3917_v58  ;;  %5640 = vst [vmem:[#allocation24_spill] sm:$0xff] %v3919_v29  ;;  %v2358_v50 = vadd.f32 %v3892_v46, %v2334_v35  ;;  %v2359_v3 = vadd.f32 %v3892_v46, %v2335_v39  ;;  %v1084_v10 = vunpack.c.l.bf16 %v1070_v30  ;;  %v1085_v57 = vunpack.c.l.bf16 %v1071_v15 }
  0x4f   : > { %5642 = vst [vmem:[#allocation26_spill] sm:$0xff] %v3927_v4  ;;  %5643 = vst [vmem:[#allocation27_spill] sm:$0xff] %v3929_v53  ;;  %v2372_v8 = vmax.f32 %v2356_v23, 0.0  ;;  %v2373_v56 = vmax.f32 %v2357_v1, 0.0  ;;  %v1086_v39 = vunpack.c.l.bf16 %v1072_v49  ;;  %v5525_v18 = vunpack.c.l.bf16 %v3923_v24  ;;  %v3948_v1 = vld [vmem:[%s5493_s1 + $0xc] ss:$0 sm:$0xff] }
  0x50   : > { %5644 = vst [vmem:[#allocation28_spill] sm:$0xff] %v3932_v5  ;;  %v2374_v35 = vmax.f32 %v2358_v50, 0.0  ;;  %v2375_v25 = vmax.f32 %v2359_v3, 0.0  ;;  %v5529_v44 = vunpack.c.l.bf16 %v3932_v5  ;;  %v3943_v21 = vunpack.c.l.bf16 %v1075_v16  ;;  %5646 = vst [vmem:[#allocation30_spill] sm:$0xff] %v3948_v1  ;;  %v1371_v24 = vld [vmem:[%s3501_s8 + $0x50] sm:$0x1] }
  0x51   : > { %v2404_v20 = vrot.slane %v2372_v8, 4  ;;  %v2405_v46 = vrot.slane %v2373_v56, 4  ;;  %v3950_v23 = vunpack.c.l.bf16 %v1076_v48  ;;  %v1106_v50 = vmul.f32 %v3939_v62, %v1084_v10  ;;  %v3956_v8 = vld [vmem:[%s5493_s1 + $0xf] ss:$0 sm:$0xff] }
  0x52   : > { %5645 = vst [vmem:[#allocation29_spill] sm:$0xff] %v3943_v21  ;;  %v2407_v30 = vrot.slane %v2374_v35, 4  ;;  %v2408_v15 = vrot.slane %v2375_v25, 4  ;;  %5648 = vst [vmem:[#allocation32_spill] sm:$0xff] %v3956_v8  ;;  %v1107_v3 = vmul.f32 %v3939_v62, %v1085_v57  ;;  %v5649_v16 = vunpack.c.l.bf16 %v3854_v38  ;;  %v3975_v57 = vld [vmem:[%s5493_s1 + $0xa] ss:$0 sm:$0xff] }
  0x53   : > { %5647 = vst [vmem:[#allocation31_spill] sm:$0xff] %v3950_v23  ;;  %v2406_v49 = vsel %vm1438_vm0, %v2404_v20, %v2405_v46  ;;  %v1109_v35 = vmul.f32 %v3939_v62, %v1086_v39  ;;  %v1130_v10 = vmul.f32 %v3948_v1, %v3882_v63  ;;  %v1131_v48 = vmul.f32 %v3948_v1, %v5525_v18 }
  0x54   : > { %v1108_v56 = vmul.f32 %v3939_v62, %v5649_v16  ;;  %v2409_v25 = vsel %vm1438_vm0, %v2407_v30, %v2408_v15  ;;  %v1132_v46 = vmul.f32 %v3948_v1, %v3884_v36  ;;  %5650 = vst [vmem:[#allocation33_spill] sm:$0xff] %v3975_v57  ;;  %v1133_v39 = vmul.f32 %v3948_v1, %v5529_v44  ;;  %v3987_v16 = vld [vmem:[%s5493_s1 + $0xd] ss:$0 sm:$0xff] }
  0x55   : > { %v2436_v20 = vpack.c.bf16 %v2409_v25, %v2406_v49  ;;  %v1170_v30 = vmul.f32 %v3956_v8, %v3894_v51  ;;  %v1171_v15 = vmul.f32 %v3956_v8, %v3943_v21  ;;  %5651 = vst [vmem:[#allocation34_spill] sm:$0xff] %v3987_v16  ;;  %v1146_v18 = vadd.f32 %v1130_v10, %v1106_v50 }
  0x56   : > { %v1147_v38 = vadd.f32 %v1131_v48, %v1107_v3  ;;  %v1148_v36 = vadd.f32 %v1132_v46, %v1108_v56  ;;  %v1172_v49 = vmul.f32 %v3956_v8, %v3902_v2  ;;  %v1149_v25 = vadd.f32 %v1133_v39, %v1109_v35  ;;  %v4001_v3 = vld [vmem:[%s5493_s1 + $0x10] ss:$0 sm:$0xff]  ;;  %v1370_v56 = vld [vmem:[%s3501_s8 + $0x4c] sm:$0xe] }
  0x57   : > { %2804 = vrot.lane.b32.xlu1 %v2436_v20, %s3434_s11  ;;  %v1173_v44 = vmul.f32 %v3956_v8, %v3950_v23  ;;  %v1210_v5 = vmul.f32 %v3975_v57, %v3910_v0  ;;  %v1211_v50 = vmul.f32 %v3975_v57, %v3879_v27  ;;  %5652 = vst [vmem:[#allocation35_spill] sm:$0xff] %v4001_v3  ;;  %v1385_v23 = vunpack.c.l.bf16 %v1371_v24  ;;  %v4034_v24 = vld [vmem:[%s5493_s1 + $0xe] ss:$0 sm:$0xff] }
  0x58   : > { %v1186_v10 = vadd.f32 %v1170_v30, %v1146_v18  ;;  %v1187_v48 = vadd.f32 %v1171_v15, %v1147_v38  ;;  %v1188_v35 = vadd.f32 %v1172_v49, %v1148_v36  ;;  %v1266_v46 = vmul.f32 %v3987_v16, %v3618_v12  ;;  %v1372_v36 = vld [vmem:[%s3501_s8 + $0x58] sm:$0xe]  ;;  %v4015_v18 = vld [vmem:[%s3501_s8 + $0x64] sm:$0xe] }
  0x59   : > { %v1189_v20 = vadd.f32 %v1173_v44, %v1149_v25  ;;  %v1226_v39 = vrot.slane %v1210_v5, 2  ;;  %v1227_v0 = vrot.slane %v1211_v50, 2  ;;  %v1267_v27 = vmul.f32 %v3987_v16, %v3621_v13  ;;  %5653 = vst [vmem:[#allocation36_spill] sm:$0xff] %v4015_v18  ;;  %v4018_v25 = vld [vmem:[%s3501_s8 + $0x70] sm:$0xe] }
  0x5a   : > { %v1282_v63 = vrot.slane %v1266_v46, 2  ;;  %v1322_v57 = vmul.f32 %v4001_v3, %v3896_v11  ;;  %v1323_v38 = vmul.f32 %v4001_v3, %v3904_v60  ;;  %v1384_v30 = vunpack.c.l.bf16 %v1370_v56  ;;  %5654 = vst [vmem:[#allocation37_spill] sm:$0xff] %v4018_v25  ;;  %v1375_v50 = vld [vmem:[%s3501_s8 + $0x7c] sm:$0xe]  ;;  %v1376_v16 = vld [vmem:[%s3501_s8 + $0x88] sm:$0xe] }
  0x5b   : > { %v1242_v44 = vadd.f32 %v1226_v39, %v1186_v10  ;;  %v1243_v15 = vadd.f32 %v1226_v39, %v1187_v48  ;;  %v1244_v5 = vadd.f32 %v1227_v0, %v1188_v35  ;;  %v1245_v49 = vadd.f32 %v1227_v0, %v1189_v20  ;;  %v4025_v3 = vld [vmem:[%s5493_s1 + $0xb] ss:$0 sm:$0xff] }
  0x5c   : > { %v1283_v8 = vrot.slane %v1267_v27, 2  ;;  %v1338_v46 = vrot.slane %v1322_v57, 2  ;;  %v1339_v1 = vrot.slane %v1323_v38, 2  ;;  %v1386_v56 = vunpack.c.l.bf16 %v1372_v36 }
  0x5d   : > { %v1298_v60 = vadd.f32 %v1282_v63, %v1242_v44  ;;  %v1299_v11 = vadd.f32 %v1282_v63, %v1243_v15  ;;  %v5555_v10 = vunpack.c.l.bf16 %v4015_v18  ;;  %v5554_v35 = vunpack.c.l.bf16 %v4018_v25 }
  0x5e   : > { %v1300_v48 = vadd.f32 %v1283_v8, %v1244_v5  ;;  %v1301_v0 = vadd.f32 %v1283_v8, %v1245_v49  ;;  %v4029_v20 = vunpack.c.l.bf16 %v1375_v50  ;;  %v4036_v39 = vunpack.c.l.bf16 %v1376_v16 }
  0x5f   : > { %v1354_v27 = vadd.f32 %v1338_v46, %v1298_v60  ;;  %v1355_v57 = vadd.f32 %v1338_v46, %v1299_v11  ;;  %v1406_v63 = vmul.f32 %v4025_v3, %v1384_v30  ;;  %v1407_v44 = vmul.f32 %v4025_v3, %v1385_v23 }
  0x60   : > { %5655 = vst [vmem:[#allocation38_spill] sm:$0xff] %v4029_v20  ;;  %5656 = vst [vmem:[#allocation39_spill] sm:$0xff] %v4036_v39  ;;  %v1356_v38 = vadd.f32 %v1339_v1, %v1300_v48  ;;  %v1357_v36 = vadd.f32 %v1339_v1, %v1301_v0  ;;  %v1408_v8 = vmul.f32 %v4025_v3, %v1386_v56  ;;  %v5657_v15 = vunpack.c.l.bf16 %v3887_v37  ;;  %v4057_v0 = vld [vmem:[%s5493_s1 + $0x11] ss:$0 sm:$0xff] }
  0x61   : > { %v1439_v49 = vrot.slane %v1406_v63, 4  ;;  %v1503_v60 = vmul.f32 %v4034_v24, %v5555_v10  ;;  %v1504_v11 = vmul.f32 %v4034_v24, %v3917_v58  ;;  %v1440_v16 = vrot.slane %v1407_v44, 4 }
  0x62   : > { %v1409_v5 = vmul.f32 %v4025_v3, %v5657_v15  ;;  %v1442_v30 = vrot.slane %v1408_v8, 4  ;;  %v1505_v1 = vmul.f32 %v4034_v24, %v5554_v35  ;;  %v1506_v23 = vmul.f32 %v4034_v24, %v3919_v29 }
  0x63   : > { %v1479_v46 = vadd.f32 %v1439_v49, %v1354_v27  ;;  %v1535_v56 = vrot.slane %v1503_v60, 4  ;;  %v1536_v48 = vrot.slane %v1504_v11, 4  ;;  %v1441_v63 = vsel %vm1438_vm0, %v1439_v49, %v1440_v16  ;;  %v1828_v60 = vld [vmem:[%s3501_s8 + $0xc0] sm:$0xc]  ;;  %v1829_v11 = vld [vmem:[%s3501_s8 + $0xc4] sm:$0x3] }
  0x64   : > { %v1443_v50 = vrot.slane %v1409_v5, 4  ;;  %v1481_v44 = vadd.f32 %v1442_v30, %v1356_v38  ;;  %v1538_v8 = vrot.slane %v1505_v1, 4  ;;  %v1539_v15 = vrot.slane %v1506_v23, 4  ;;  %v1830_v49 = vld [vmem:[%s3501_s8 + $0xcc] sm:$0xc] }
  0x65   : > { %v1480_v10 = vadd.f32 %v1441_v63, %v1355_v57  ;;  %v1537_v5 = vsel %vm1438_vm0, %v1535_v56, %v1536_v48  ;;  %v1575_v27 = vadd.f32 %v1535_v56, %v1479_v46  ;;  %v1599_v58 = vmul.f32 %v4057_v0, %v4029_v20  ;;  %v1831_v1 = vld [vmem:[%s3501_s8 + $0xd0] sm:$0x3] }
  0x66   : > { %v1444_v35 = vsel %vm1438_vm0, %v1442_v30, %v1443_v50  ;;  %v1540_v29 = vsel %vm1438_vm0, %v1538_v8, %v1539_v15  ;;  %v1577_v25 = vadd.f32 %v1538_v8, %v1481_v44  ;;  %v1600_v16 = vmul.f32 %v4057_v0, %v3927_v4 }
  0x67   : > { %v1482_v37 = vadd.f32 %v1444_v35, %v1357_v36  ;;  %v1576_v38 = vadd.f32 %v1537_v5, %v1480_v10  ;;  %v1601_v57 = vmul.f32 %v4057_v0, %v4036_v39  ;;  %v1602_v30 = vmul.f32 %v4057_v0, %v3929_v53  ;;  %v4078_v10 = vld [vmem:[%s5494_s2 + $0x1] ss:$0 sm:$0xff] }
  0x68   : > { %v1631_v35 = vrot.slane %v1599_v58, 4  ;;  %v1860_v36 = vunpack.c.l.bf16 %v1828_v60  ;;  %v1861_v50 = vunpack.c.l.bf16 %v1829_v11  ;;  %v1632_v46 = vrot.slane %v1600_v16, 4  ;;  %v4091_v16 = vld [vmem:[%s5495_s3 + $0x1] ss:$0 sm:$0xff] }
  0x69   : > { %v1578_v23 = vadd.f32 %v1540_v29, %v1482_v37  ;;  %v1634_v56 = vrot.slane %v1601_v57, 4  ;;  %v1635_v48 = vrot.slane %v1602_v30, 4  ;;  %v1862_v63 = vunpack.c.l.bf16 %v1830_v49 }
  0x6a   : > { %v1671_v44 = vadd.f32 %v1631_v35, %v1575_v27  ;;  %v1863_v8 = vunpack.c.l.bf16 %v1831_v1  ;;  %v5658_v15 = vunpack.c.l.bf16 %v3680_v32  ;;  %v5659_v29 = vunpack.c.l.bf16 %v3683_v33 }
  0x6b   : > { %v1633_v37 = vsel %vm1438_vm0, %v1631_v35, %v1632_v46  ;;  %v1636_v60 = vsel %vm1438_vm0, %v1634_v56, %v1635_v48  ;;  %v1673_v11 = vadd.f32 %v1634_v56, %v1577_v25  ;;  %v5660_v27 = vunpack.c.l.bf16 %v3686_v34 }
  0x6c   : > { %v1884_v5 = vmul.f32 %v3708_v54, %v5658_v15  ;;  %v1885_v58 = vmul.f32 %v3708_v54, %v5659_v29  ;;  %v1672_v49 = vadd.f32 %v1633_v37, %v1576_v38  ;;  %v1674_v57 = vadd.f32 %v1636_v60, %v1578_v23 }
  0x6d   : > { %v1886_v32 = vmul.f32 %v3708_v54, %v5660_v27  ;;  %v1695_v33 = vmul.f32 %v4078_v10, %v1671_v44  ;;  %v5661_v30 = vunpack.c.l.bf16 %v3689_v40  ;;  %v1697_v25 = vmul.f32 %v4078_v10, %v1673_v11 }
  0x6e   : > { %v5662_v35 = vunpack.c.l.bf16 %v3692_v41  ;;  %v5663_v56 = vunpack.c.l.bf16 %v3695_v43  ;;  %v5664_v48 = vunpack.c.l.bf16 %v3698_v45  ;;  %v1696_v23 = vmul.f32 %v4078_v10, %v1672_v49 }
  0x6f   : > { %v1887_v1 = vmul.f32 %v3708_v54, %v5661_v30  ;;  %v1698_v40 = vmul.f32 %v4078_v10, %v1674_v57  ;;  %v1719_v54 = vadd.f32 %v4091_v16, %v1695_v33  ;;  %v5665_v44 = vunpack.c.l.bf16 %v3701_v52 }
  0x70   : > { %v1908_v46 = vmul.f32 %v3716_v59, %v5662_v35  ;;  %v1909_v34 = vmul.f32 %v3716_v59, %v5663_v56  ;;  %v1910_v38 = vmul.f32 %v3716_v59, %v5664_v48  ;;  %v1721_v15 = vadd.f32 %v4091_v16, %v1697_v25 }
  0x71   : > { %v1911_v41 = vmul.f32 %v3716_v59, %v5665_v44  ;;  %v1720_v60 = vadd.f32 %v4091_v16, %v1696_v23  ;;  %v1722_v45 = vadd.f32 %v4091_v16, %v1698_v40  ;;  %v1735_v11 = vmax.f32 %v1719_v54, 0.0 }
  0x72   : > { %v1924_v29 = vadd.f32 %v1908_v46, %v1884_v5  ;;  %v1925_v43 = vadd.f32 %v1909_v34, %v1885_v58  ;;  %v1926_v37 = vadd.f32 %v1910_v38, %v1886_v32  ;;  %v1737_v49 = vmax.f32 %v1721_v15, 0.0  ;;  %v2164_v38 = vld [vmem:[%s3501_s8 + $0xc4] sm:$0xc]  ;;  %v2166_v15 = vld [vmem:[%s3501_s8 + $0xd0] sm:$0xc] }
  0x73   : > { %v1927_v27 = vadd.f32 %v1911_v41, %v1887_v1  ;;  %v1948_v57 = vmul.f32 %v3723_v9, %v1860_v36  ;;  %v1949_v33 = vmul.f32 %v3723_v9, %v1861_v50  ;;  %v1950_v52 = vmul.f32 %v3723_v9, %v1862_v63  ;;  %v4126_v36 = vld [vmem:[%s5493_s1 + $0x13] ss:$0 sm:$0xff]  ;;  %v2165_v41 = vld [vmem:[%s3501_s8 + $0xc8] sm:$0x3] }
  0x74   : > { %v1736_v30 = vmax.f32 %v1720_v60, 0.0  ;;  %v1738_v59 = vmax.f32 %v1722_v45, 0.0  ;;  %v1768_v25 = vrot.slane %v1735_v11, 6  ;;  %v1951_v5 = vmul.f32 %v3723_v9, %v1863_v8  ;;  %5666 = vst [vmem:[#allocation40_spill] sm:$0xff] %v4126_v36  ;;  %v2167_v45 = vld [vmem:[%s3501_s8 + $0xd4] sm:$0x3] }
  0x75   : > { %v1771_v58 = vrot.slane %v1737_v49, 6  ;;  %v1964_v32 = vadd.f32 %v1948_v57, %v1924_v29  ;;  %v1965_v35 = vadd.f32 %v1949_v33, %v1925_v43  ;;  %v1966_v46 = vadd.f32 %v1950_v52, %v1926_v37 }
  0x76   : > { %v1769_v1 = vrot.slane %v1736_v30, 6  ;;  %v1772_v56 = vrot.slane %v1738_v59, 6  ;;  %v1967_v34 = vadd.f32 %v1951_v5, %v1927_v27  ;;  %v1984_v50 = vmul.f32 %v4126_v36, %v3618_v12 }
  0x77   : > { %v1985_v9 = vmul.f32 %v4126_v36, %v3621_v13  ;;  %v2040_v63 = vmul.f32 %v3754_v26, %v3524_v6  ;;  %v2041_v8 = vmul.f32 %v3754_v26, %v3527_v7  ;;  %v2096_v48 = vmul.f32 %v3771_v47, %v3626_v17  ;;  %v4273_v36 = vld [vmem:[%s3501_s8 + $0xb8] sm:$0xe] }
  0x78   : > { %v1770_v23 = vsel %vm1767_vm1, %v1768_v25, %v1769_v1  ;;  %v1773_v40 = vsel %vm1767_vm1, %v1771_v58, %v1772_v56  ;;  %v2000_v54 = vrot.slane %v1984_v50, 4  ;;  %v2097_v44 = vmul.f32 %v3771_v47, %v3631_v22 }
  0x79   : > { %v1800_v29 = vpack.c.bf16 %v1773_v40, %v1770_v23  ;;  %v2001_v43 = vrot.slane %v1985_v9, 4  ;;  %v2056_v37 = vrot.slane %v2040_v63, 4  ;;  %v2057_v60 = vrot.slane %v2041_v8, 4  ;;  %v5672_v40 = vld [vmem:[#allocation7_spill] sm:$0xff] }
  0x7a   : > { %v2020_v26 = vadd.f32 %v2000_v54, %v1964_v32  ;;  %v2021_v11 = vadd.f32 %v2000_v54, %v1965_v35  ;;  %v2112_v27 = vrot.slane %v2096_v48, 4  ;;  %v2113_v49 = vrot.slane %v2097_v44, 4 }
  0x7b   : > { %2792 = vrot.lane.b32.xlu0 %v1800_v29, %s3435_s9  ;;  %v2022_v57 = vadd.f32 %v2001_v43, %v1966_v46  ;;  %v2023_v33 = vadd.f32 %v2001_v43, %v1967_v34  ;;  %v2196_v52 = vunpack.c.l.bf16 %v2164_v38  ;;  %v2197_v30 = vunpack.c.l.bf16 %v2165_v41  ;;  %v5676_v43 = vld [vmem:[#allocation9_spill] sm:$0xff] }
  0x7c   : > { %v2076_v59 = vadd.f32 %v2056_v37, %v2020_v26  ;;  %v2077_v47 = vadd.f32 %v2056_v37, %v2021_v11  ;;  %v2198_v25 = vunpack.c.l.bf16 %v2166_v15  ;;  %v2199_v5 = vunpack.c.l.bf16 %v2167_v45  ;;  %v5674_v15 = vld [vmem:[#allocation8_spill] sm:$0xff]  ;;  %v319_v45 = vld [vmem:[%s3501_s8 + $0x9c] sm:$0x8]  ;;  %v5678_v11 = vld [vmem:[#allocation10_spill] sm:$0xff] }
  0x7d   : > { %v2078_v58 = vadd.f32 %v2057_v60, %v2022_v57  ;;  %v2079_v1 = vadd.f32 %v2057_v60, %v2023_v33  ;;  %v5667_v56 = vunpack.c.l.bf16 %v3780_v14  ;;  %v5668_v35 = vunpack.c.l.bf16 %v3787_v55  ;;  %v317_v60 = vld [vmem:[%s3501_s8 + $0x90] sm:$0x8]  ;;  %v321_v57 = vld [vmem:[%s3501_s8 + $0xa8] sm:$0x8]  ;;  %v322_v33 = vld [vmem:[%s3501_s8 + $0xac] ss:$12 sps:$4 sm:$0xff]  }
  0x7e   : > { %v2132_v46 = vadd.f32 %v2112_v27, %v2076_v59  ;;  %v2133_v34 = vadd.f32 %v2112_v27, %v2077_v47  ;;  %v5669_v9 = vunpack.c.l.bf16 %v3796_v31  ;;  %v5670_v8 = vunpack.c.l.bf16 %v3799_v19 }
  0x7f   : > { %v2220_v32 = vmul.f32 %v3816_v28, %v5667_v56  ;;  %v2221_v50 = vmul.f32 %v3816_v28, %v5668_v35  ;;  %v2134_v14 = vadd.f32 %v2113_v49, %v2078_v58  ;;  %v2135_v38 = vadd.f32 %v2113_v49, %v2079_v1  ;;  %v323_v1 = vld [vmem:[%s3501_s8 + $0xb4] sm:$0x8] }
  0x80   : > { %v2222_v63 = vmul.f32 %v3816_v28, %v5669_v9  ;;  %v2223_v48 = vmul.f32 %v3816_v28, %v5670_v8  ;;  %v5671_v23 = vunpack.c.l.bf16 %v3802_v61  ;;  %v5673_v54 = vunpack.c.l.bf16 %v5672_v40  ;;  %v5683_v40 = vld [vmem:[#allocation12_spill] sm:$0xff] }
  0x81   : > { %v2236_v41 = vadd.f32 %v2220_v32, %v2132_v46  ;;  %v2237_v31 = vadd.f32 %v2221_v50, %v2133_v34  ;;  %v5675_v29 = vunpack.c.l.bf16 %v5674_v15  ;;  %v5677_v28 = vunpack.c.l.bf16 %v5676_v43  ;;  %v652_v50 = vld [vmem:[%s3501_s8 + $0xa4] sm:$0x1]  ;;  %v4205_v15 = vld [vmem:[%s3501_s8 + $0xac] sm:$0x7] }
  0x82   : > { %v2260_v55 = vmul.f32 %v3822_v42, %v5671_v23  ;;  %v2261_v44 = vmul.f32 %v3822_v42, %v5673_v54  ;;  %v2238_v61 = vadd.f32 %v2222_v63, %v2134_v14  ;;  %v2239_v26 = vadd.f32 %v2223_v48, %v2135_v38  ;;  %v654_v63 = vld [vmem:[%s3501_s8 + $0xbc] sm:$0x1]  ;;  %v1077_v23 = vld [vmem:[%s3501_s8 + $0x94] sm:$0x7] }
  0x83   : > { %v2262_v19 = vmul.f32 %v3822_v42, %v5675_v29  ;;  %v2263_v37 = vmul.f32 %v3822_v42, %v5677_v28  ;;  %v2300_v27 = vmul.f32 %v5678_v11, %v2196_v52  ;;  %v2301_v49 = vmul.f32 %v5678_v11, %v2197_v30  ;;  %v651_v30 = vld [vmem:[%s3501_s8 + $0x98] sm:$0x1] }
  0x84   : > { %v2276_v59 = vadd.f32 %v2260_v55, %v2236_v41  ;;  %v2277_v47 = vadd.f32 %v2261_v44, %v2237_v31  ;;  %v2302_v58 = vmul.f32 %v5678_v11, %v2198_v25  ;;  %v2303_v42 = vmul.f32 %v5678_v11, %v2199_v5  ;;  %v653_v5 = vld [vmem:[%s3501_s8 + $0xb0] sm:$0x1]  ;;  %v1078_v55 = vld [vmem:[%s3501_s8 + $0xa0] sm:$0x7]  ;;  %v4208_v29 = vld [vmem:[%s3501_s8 + $0xb8] sm:$0x7] }
  0x85   : > { %v2278_v56 = vadd.f32 %v2262_v19, %v2238_v61  ;;  %v2279_v32 = vadd.f32 %v2263_v37, %v2239_v26  ;;  %v4180_v35 = vunpack.c.l.bf16 %v317_v60  ;;  %v4182_v52 = vunpack.c.l.bf16 %v319_v45  ;;  %v5688_v60 = vld [vmem:[#allocation17_spill] sm:$0xff] }
  0x86   : > { %v2316_v46 = vadd.f32 %v2300_v27, %v2276_v59  ;;  %v2317_v34 = vadd.f32 %v2301_v49, %v2277_v47  ;;  %v4186_v9 = vunpack.c.l.bf16 %v321_v57  ;;  %v4188_v25 = vunpack.c.l.bf16 %v322_v33 }
  0x87   : > { %5679 = vst [vmem:[#allocation7_spill] sm:$0xff] %v4180_v35  ;;  %5680 = vst [vmem:[#allocation8_spill] sm:$0xff] %v4182_v52  ;;  %v2318_v8 = vadd.f32 %v2302_v58, %v2278_v56  ;;  %v2319_v48 = vadd.f32 %v2303_v42, %v2279_v32  ;;  %v4192_v14 = vunpack.c.l.bf16 %v323_v1  ;;  %v4194_v38 = vunpack.c.h.bf16 %v322_v33 }
  0x88   : > { %5681 = vst [vmem:[#allocation9_spill] sm:$0xff] %v4186_v9  ;;  %v2340_v54 = vmul.f32 %v5683_v40, %v2316_v46  ;;  %v2341_v44 = vmul.f32 %v5683_v40, %v2317_v34  ;;  %v4200_v41 = vunpack.c.l.bf16 %v651_v30  ;;  %v4202_v31 = vunpack.c.l.bf16 %v652_v50  ;;  %v5689_v30 = vld [vmem:[#allocation31_spill] sm:$0xff] }
  0x89   : > { %5682 = vst [vmem:[#allocation10_spill] sm:$0xff] %v4192_v14  ;;  %v2342_v19 = vmul.f32 %v5683_v40, %v2318_v8  ;;  %v2343_v43 = vmul.f32 %v5683_v40, %v2319_v48  ;;  %v4212_v28 = vunpack.c.l.bf16 %v653_v5  ;;  %v4214_v37 = vunpack.c.l.bf16 %v654_v63  ;;  %v5690_v5 = vld [vmem:[#allocation30_spill] sm:$0xff] }
  0x8a   : > { %5684 = vst [vmem:[#allocation12_spill] sm:$0xff] %v4200_v41  ;;  %5685 = vst [vmem:[#allocation41_spill] sm:$0xff] %v4202_v31  ;;  %v2364_v45 = vadd.f32 %v5688_v60, %v2340_v54  ;;  %v2365_v61 = vadd.f32 %v5688_v60, %v2341_v44  ;;  %v4218_v26 = vunpack.c.l.bf16 %v1077_v23  ;;  %v4220_v11 = vunpack.c.l.bf16 %v1078_v55 }
  0x8b   : > { %5686 = vst [vmem:[#allocation42_spill] sm:$0xff] %v4212_v28  ;;  %5687 = vst [vmem:[#allocation43_spill] sm:$0xff] %v4214_v37  ;;  %v2366_v27 = vadd.f32 %v5688_v60, %v2342_v19  ;;  %v2367_v49 = vadd.f32 %v5688_v60, %v2343_v43  ;;  %v5563_v57 = vunpack.c.l.bf16 %v4205_v15  ;;  %v5562_v33 = vunpack.c.l.bf16 %v4208_v29  ;;  %v5691_v43 = vld [vmem:[#allocation32_spill] sm:$0xff] }
  0x8c   : > { %v2380_v59 = vmax.f32 %v2364_v45, 0.0  ;;  %v2381_v47 = vmax.f32 %v2365_v61, 0.0  ;;  %v1114_v58 = vmul.f32 %v3939_v62, %v3894_v51  ;;  %v1115_v42 = vmul.f32 %v3939_v62, %v3943_v21 }
  0x8d   : > { %v2382_v1 = vmax.f32 %v2366_v27, 0.0  ;;  %v2383_v56 = vmax.f32 %v2367_v49, 0.0  ;;  %v1116_v32 = vmul.f32 %v3939_v62, %v3902_v2  ;;  %v1117_v50 = vmul.f32 %v3939_v62, %v5689_v30 }
  0x8e   : > { %v2416_v46 = vrot.slane %v2380_v59, 4  ;;  %v2417_v34 = vrot.slane %v2381_v47, 4  ;;  %v1138_v63 = vmul.f32 %v5690_v5, %v4180_v35  ;;  %v1139_v8 = vmul.f32 %v5690_v5, %v4218_v26 }
  0x8f   : > { %v2419_v48 = vrot.slane %v2382_v1, 4  ;;  %v2420_v23 = vrot.slane %v2383_v56, 4  ;;  %v1140_v55 = vmul.f32 %v5690_v5, %v4182_v52  ;;  %v1141_v40 = vmul.f32 %v5690_v5, %v4220_v11  ;;  %v5692_v56 = vld [vmem:[#allocation19_spill] sm:$0xff] }
  0x90   : > { %v2418_v54 = vsel %vm1438_vm0, %v2416_v46, %v2417_v34  ;;  %v1154_v44 = vadd.f32 %v1138_v63, %v1114_v58  ;;  %v1155_v19 = vadd.f32 %v1139_v8, %v1115_v42  ;;  %v1178_v60 = vmul.f32 %v5691_v43, %v4186_v9  ;;  %v5693_v46 = vld [vmem:[#allocation33_spill] sm:$0xff]  ;;  %v5695_v63 = vld [vmem:[#allocation34_spill] sm:$0xff] }
  0x91   : > { %v2421_v45 = vsel %vm1438_vm0, %v2419_v48, %v2420_v23  ;;  %v1156_v61 = vadd.f32 %v1140_v55, %v1116_v32  ;;  %v1157_v27 = vadd.f32 %v1141_v40, %v1117_v50  ;;  %v1179_v49 = vmul.f32 %v5691_v43, %v5563_v57  ;;  %v5694_v50 = vld [vmem:[#allocation21_spill] sm:$0xff]  ;;  %v1377_v48 = vld [vmem:[%s3501_s8 + $0x94] sm:$0xe]  ;;  %v1378_v23 = vld [vmem:[%s3501_s8 + $0xa0] sm:$0xe] }
  0x92   : > { %v2438_v59 = vpack.c.bf16 %v2421_v45, %v2418_v54  ;;  %v1180_v47 = vmul.f32 %v5691_v43, %v4192_v14  ;;  %v1181_v58 = vmul.f32 %v5691_v43, %v5562_v33  ;;  %v1194_v42 = vadd.f32 %v1178_v60, %v1154_v44  ;;  %v5696_v44 = vld [vmem:[#allocation35_spill] sm:$0xff] }
  0x93   : > { %v1195_v1 = vadd.f32 %v1179_v49, %v1155_v19  ;;  %v1214_v32 = vmul.f32 %v5693_v46, %v5692_v56  ;;  %v1215_v34 = vmul.f32 %v5693_v46, %v5694_v50  ;;  %v1270_v8 = vmul.f32 %v5695_v63, %v3524_v6  ;;  %v4268_v60 = vld [vmem:[%s3501_s8 + $0xac] sm:$0xe] }
  0x94   : > { %2808 = vrot.lane.b32.xlu1 %v2438_v59, %s3434_s11  ;;  %v1196_v55 = vadd.f32 %v1180_v47, %v1156_v61  ;;  %v1197_v40 = vadd.f32 %v1181_v58, %v1157_v27  ;;  %v1271_v54 = vmul.f32 %v5695_v63, %v3527_v7  ;;  %v1326_v19 = vmul.f32 %v5696_v44, %v4188_v25 }
  0x95   : > { %v1230_v45 = vrot.slane %v1214_v32, 2  ;;  %v1231_v49 = vrot.slane %v1215_v34, 2  ;;  %v1286_v33 = vrot.slane %v1270_v8, 2  ;;  %v1327_v57 = vmul.f32 %v5696_v44, %v4194_v38 }
  0x96   : > { %v1287_v18 = vrot.slane %v1271_v54, 2  ;;  %v1342_v59 = vrot.slane %v1326_v19, 2  ;;  %v4275_v61 = vunpack.c.l.bf16 %v1377_v48  ;;  %v4277_v27 = vunpack.c.l.bf16 %v1378_v23 }
  0x97   : > { %v1250_v47 = vadd.f32 %v1230_v45, %v1194_v42  ;;  %v1251_v58 = vadd.f32 %v1230_v45, %v1195_v1  ;;  %v1252_v50 = vadd.f32 %v1231_v49, %v1196_v55  ;;  %v1253_v56 = vadd.f32 %v1231_v49, %v1197_v40 }
  0x98   : > { %v1343_v13 = vrot.slane %v1327_v57, 2  ;;  %v5571_v32 = vunpack.c.l.bf16 %v4268_v60  ;;  %v1414_v8 = vmul.f32 %v4025_v3, %v4029_v20  ;;  %v1415_v48 = vmul.f32 %v4025_v3, %v3927_v4 }
  0x99   : > { %v1306_v12 = vadd.f32 %v1286_v33, %v1250_v47  ;;  %v1307_v30 = vadd.f32 %v1286_v33, %v1251_v58  ;;  %v1308_v54 = vadd.f32 %v1287_v18, %v1252_v50  ;;  %v1309_v19 = vadd.f32 %v1287_v18, %v1253_v56 }
  0x9a   : > { %v1416_v42 = vmul.f32 %v4025_v3, %v4036_v39  ;;  %v1417_v57 = vmul.f32 %v4025_v3, %v3929_v53  ;;  %v1451_v1 = vrot.slane %v1414_v8, 4  ;;  %v1452_v49 = vrot.slane %v1415_v48, 4 }
  0x9b   : > { %v1362_v23 = vadd.f32 %v1342_v59, %v1306_v12  ;;  %v1363_v55 = vadd.f32 %v1342_v59, %v1307_v30  ;;  %v1364_v40 = vadd.f32 %v1343_v13, %v1308_v54  ;;  %v1365_v45 = vadd.f32 %v1343_v13, %v1309_v19 }
  0x9c   : > { %v1454_v34 = vrot.slane %v1416_v42, 4  ;;  %v1455_v47 = vrot.slane %v1417_v57, 4  ;;  %v1511_v18 = vmul.f32 %v4034_v24, %v4275_v61  ;;  %v1512_v56 = vmul.f32 %v4034_v24, %v4200_v41 }
  0x9d   : > { %v1487_v33 = vadd.f32 %v1451_v1, %v1362_v23  ;;  %v1513_v50 = vmul.f32 %v4034_v24, %v4277_v27  ;;  %v1514_v12 = vmul.f32 %v4034_v24, %v4202_v31  ;;  %v1453_v30 = vsel %vm1438_vm0, %v1451_v1, %v1452_v49  ;;  %v4305_v49 = vld [vmem:[%s3501_s8 + $0xc0] sm:$0x8] }
  0x9e   : > { %v1456_v13 = vsel %vm1438_vm0, %v1454_v34, %v1455_v47  ;;  %v1489_v59 = vadd.f32 %v1454_v34, %v1364_v40  ;;  %v1547_v58 = vrot.slane %v1511_v18, 4  ;;  %v1488_v8 = vadd.f32 %v1453_v30, %v1363_v55  ;;  %5697 = vst [vmem:[#allocation17_spill] sm:$0xff] %v4305_v49  ;;  %v4314_v18 = vld [vmem:[%s3501_s8 + $0xc8] sm:$0x1] }
  0x9f   : > { %v1490_v54 = vadd.f32 %v1456_v13, %v1365_v45  ;;  %v1548_v19 = vrot.slane %v1512_v56, 4  ;;  %v1550_v48 = vrot.slane %v1513_v50, 4  ;;  %v1551_v42 = vrot.slane %v1514_v12, 4  ;;  %5699 = vst [vmem:[#allocation30_spill] sm:$0xff] %v4314_v18  ;;  %v1082_v13 = vld [vmem:[%s3501_s8 + $0xcc] sm:$0x8] }
  0xa0   : > { %v1583_v57 = vadd.f32 %v1547_v58, %v1487_v33  ;;  %v1607_v23 = vmul.f32 %v4057_v0, %v5571_v32  ;;  %v1608_v1 = vmul.f32 %v4057_v0, %v4212_v28  ;;  %v5698_v55 = vunpack.c.l.bf16 %v4273_v36  ;;  %v1081_v33 = vld [vmem:[%s3501_s8 + $0xc4] sm:$0x7] }
  0xa1   : > { %v1549_v34 = vsel %vm1438_vm0, %v1547_v58, %v1548_v19  ;;  %v1585_v40 = vadd.f32 %v1550_v48, %v1489_v59  ;;  %v1610_v47 = vmul.f32 %v4057_v0, %v4214_v37  ;;  %v1552_v56 = vsel %vm1438_vm0, %v1550_v48, %v1551_v42  ;;  %v1083_v19 = vld [vmem:[%s3501_s8 + $0xd0] sm:$0x7] }
  0xa2   : > { %v1609_v45 = vmul.f32 %v4057_v0, %v5698_v55  ;;  %v1584_v50 = vadd.f32 %v1549_v34, %v1488_v8  ;;  %v1643_v12 = vrot.slane %v1607_v23, 4  ;;  %v1644_v30 = vrot.slane %v1608_v1, 4 }
  0xa3   : > { %v1586_v32 = vadd.f32 %v1552_v56, %v1490_v54  ;;  %v1647_v58 = vrot.slane %v1610_v47, 4  ;;  %v5583_v59 = vunpack.c.l.bf16 %v4305_v49  ;;  %v1095_v20 = vunpack.c.l.bf16 %v1081_v33 }
  0xa4   : > { %v1646_v53 = vrot.slane %v1609_v45, 4  ;;  %v1645_v55 = vsel %vm1438_vm0, %v1643_v12, %v1644_v30  ;;  %v1679_v39 = vadd.f32 %v1643_v12, %v1583_v57  ;;  %v1096_v8 = vunpack.c.l.bf16 %v1082_v13 }
  0xa5   : > { %v1680_v21 = vadd.f32 %v1645_v55, %v1584_v50  ;;  %v1097_v54 = vunpack.c.l.bf16 %v1083_v19  ;;  %v1118_v1 = vmul.f32 %v3939_v62, %v4180_v35  ;;  %v1119_v57 = vmul.f32 %v3939_v62, %v4218_v26 }
  0xa6   : > { %v1648_v2 = vsel %vm1438_vm0, %v1646_v53, %v1647_v58  ;;  %v1681_v48 = vadd.f32 %v1646_v53, %v1585_v40  ;;  %v1703_v23 = vmul.f32 %v4078_v10, %v1679_v39  ;;  %v1120_v47 = vmul.f32 %v3939_v62, %v4182_v52 }
  0xa7   : > { %v1682_v42 = vadd.f32 %v1648_v2, %v1586_v32  ;;  %v1704_v34 = vmul.f32 %v4078_v10, %v1680_v21  ;;  %v1121_v39 = vmul.f32 %v3939_v62, %v4220_v11  ;;  %v1142_v32 = vmul.f32 %v5690_v5, %v4186_v9 }
  0xa8   : > { %v1705_v45 = vmul.f32 %v4078_v10, %v1681_v48  ;;  %v1727_v2 = vadd.f32 %v4091_v16, %v1703_v23  ;;  %v5700_v33 = vunpack.c.l.bf16 %v4205_v15  ;;  %v1144_v50 = vmul.f32 %v5690_v5, %v4192_v14 }
  0xa9   : > { %v1706_v53 = vmul.f32 %v4078_v10, %v1682_v42  ;;  %v1728_v21 = vadd.f32 %v4091_v16, %v1704_v34  ;;  %v5701_v13 = vunpack.c.l.bf16 %v4208_v29  ;;  %v1158_v19 = vadd.f32 %v1142_v32, %v1118_v1 }
  0xaa   : > { %v1729_v40 = vadd.f32 %v4091_v16, %v1705_v45  ;;  %v1143_v56 = vmul.f32 %v5690_v5, %v5700_v33  ;;  %v1743_v30 = vmax.f32 %v1727_v2, 0.0  ;;  %v1160_v23 = vadd.f32 %v1144_v50, %v1120_v47 }
  0xab   : > { %v1730_v12 = vadd.f32 %v4091_v16, %v1706_v53  ;;  %v1145_v58 = vmul.f32 %v5690_v5, %v5701_v13  ;;  %v1744_v55 = vmax.f32 %v1728_v21, 0.0  ;;  %v1182_v33 = vmul.f32 %v5691_v43, %v5583_v59  ;;  %v1381_v13 = vld [vmem:[%s3501_s8 + $0xc4] sm:$0xe] }
  0xac   : > { %v1745_v48 = vmax.f32 %v1729_v40, 0.0  ;;  %v1159_v42 = vadd.f32 %v1143_v56, %v1119_v57  ;;  %v1780_v45 = vrot.slane %v1743_v30, 6  ;;  %v1183_v53 = vmul.f32 %v5691_v43, %v1095_v20 }
  0xad   : > { %v1746_v34 = vmax.f32 %v1730_v12, 0.0  ;;  %v1161_v15 = vadd.f32 %v1145_v58, %v1121_v39  ;;  %v1781_v4 = vrot.slane %v1744_v55, 6  ;;  %v1184_v29 = vmul.f32 %v5691_v43, %v1096_v8 }
  0xae   : > { %v1783_v14 = vrot.slane %v1745_v48, 6  ;;  %v1185_v1 = vmul.f32 %v5691_v43, %v1097_v54  ;;  %v1198_v32 = vadd.f32 %v1182_v33, %v1158_v19  ;;  %v1216_v57 = vmul.f32 %v5693_v46, %v3524_v6  ;;  %v1382_v48 = vld [vmem:[%s3501_s8 + $0xd0] sm:$0xe] }
  0xaf   : > { %v1784_v2 = vrot.slane %v1746_v34, 6  ;;  %v1782_v47 = vsel %vm1767_vm1, %v1780_v45, %v1781_v4  ;;  %v1199_v39 = vadd.f32 %v1183_v53, %v1159_v42  ;;  %v1200_v21 = vadd.f32 %v1184_v29, %v1160_v23  ;;  %v1383_v42 = vld [vmem:[%s3501_s8 + $0xd4] sm:$0x1] }
  0xb0   : > { %v1217_v40 = vmul.f32 %v5693_v46, %v3527_v7  ;;  %v1201_v8 = vadd.f32 %v1185_v1, %v1161_v15  ;;  %v1232_v56 = vrot.slane %v1216_v57, 2  ;;  %v1272_v54 = vmul.f32 %v5695_v63, %v4188_v25 }
  0xb1   : > { %v1785_v20 = vsel %vm1767_vm1, %v1783_v14, %v1784_v2  ;;  %v1273_v30 = vmul.f32 %v5695_v63, %v4194_v38  ;;  %v1328_v4 = vmul.f32 %v5696_v44, %v3626_v17  ;;  %v1329_v14 = vmul.f32 %v5696_v44, %v3631_v22  ;;  %v2168_v17 = vld [vmem:[%s3501_s8 + $0xdc] sm:$0xc] }
  0xb2   : > { %v1802_v50 = vpack.c.bf16 %v1785_v20, %v1782_v47  ;;  %v1233_v12 = vrot.slane %v1217_v40, 2  ;;  %v1254_v58 = vadd.f32 %v1232_v56, %v1198_v32  ;;  %v1255_v19 = vadd.f32 %v1232_v56, %v1199_v39 }
  0xb3   : > { %v1288_v55 = vrot.slane %v1272_v54, 2  ;;  %v1289_v45 = vrot.slane %v1273_v30, 2  ;;  %v1344_v15 = vrot.slane %v1328_v4, 2  ;;  %v1345_v29 = vrot.slane %v1329_v14, 2 }
  0xb4   : > { %2796 = vrot.lane.b32.xlu0 %v1802_v50, %s3435_s9  ;;  %v1256_v23 = vadd.f32 %v1233_v12, %v1200_v21  ;;  %v1257_v34 = vadd.f32 %v1233_v12, %v1201_v8  ;;  %v1395_v2 = vunpack.c.l.bf16 %v1381_v13  ;;  %v1396_v32 = vunpack.c.l.bf16 %v1382_v48 }
  0xb5   : > { %v1310_v33 = vadd.f32 %v1288_v55, %v1254_v58  ;;  %v1311_v53 = vadd.f32 %v1288_v55, %v1255_v19  ;;  %v1397_v47 = vunpack.c.l.bf16 %v1383_v42  ;;  %v1418_v22 = vmul.f32 %v4025_v3, %v4275_v61 }
  0xb6   : > { %v1312_v1 = vadd.f32 %v1289_v45, %v1256_v23  ;;  %v1313_v57 = vadd.f32 %v1289_v45, %v1257_v34  ;;  %v1419_v20 = vmul.f32 %v4025_v3, %v4200_v41  ;;  %v1420_v56 = vmul.f32 %v4025_v3, %v4277_v27 }
  0xb7   : > { %v1366_v39 = vadd.f32 %v1344_v15, %v1310_v33  ;;  %v1367_v40 = vadd.f32 %v1344_v15, %v1311_v53  ;;  %v1421_v54 = vmul.f32 %v4025_v3, %v4202_v31  ;;  %v1457_v50 = vrot.slane %v1418_v22, 4 }
  0xb8   : > { %v1368_v21 = vadd.f32 %v1345_v29, %v1312_v1  ;;  %v1369_v8 = vadd.f32 %v1345_v29, %v1313_v57  ;;  %v1458_v12 = vrot.slane %v1419_v20, 4  ;;  %v5702_v30 = vunpack.c.l.bf16 %v4268_v60 }
  0xb9   : > { %v1516_v13 = vmul.f32 %v4034_v24, %v4212_v28  ;;  %v1460_v58 = vrot.slane %v1420_v56, 4  ;;  %v1461_v19 = vrot.slane %v1421_v54, 4  ;;  %v5703_v55 = vunpack.c.l.bf16 %v4273_v36  ;;  %v2170_v28 = vld [vmem:[%s3501_s8 + $0xe8] sm:$0xc] }
  0xba   : > { %v1515_v4 = vmul.f32 %v4034_v24, %v5702_v30  ;;  %v1518_v48 = vmul.f32 %v4034_v24, %v4214_v37  ;;  %v1459_v42 = vsel %vm1438_vm0, %v1457_v50, %v1458_v12  ;;  %v1491_v23 = vadd.f32 %v1457_v50, %v1366_v39  ;;  %v5729_v37 = vld [vmem:[#allocation40_spill] sm:$0xff] }
  0xbb   : > { %v1517_v14 = vmul.f32 %v4034_v24, %v5703_v55  ;;  %v1554_v45 = vrot.slane %v1516_v13, 4  ;;  %v1462_v60 = vsel %vm1438_vm0, %v1460_v58, %v1461_v19  ;;  %v1492_v15 = vadd.f32 %v1459_v42, %v1367_v40 }
  0xbc   : > { %v1553_v34 = vrot.slane %v1515_v4, 4  ;;  %v1493_v33 = vadd.f32 %v1460_v58, %v1368_v21  ;;  %v1494_v29 = vadd.f32 %v1462_v60, %v1369_v8  ;;  %v1557_v57 = vrot.slane %v1518_v48, 4  ;;  %v5705_v21 = vld [vmem:[#allocation14_spill] sm:$0xff]  ;;  %v5706_v58 = vld [vmem:[#allocation25_spill] sm:$0xff]  ;;  %v5708_v48 = vld [vmem:[#allocation15_spill] sm:$0xff] }
  0xbd   : > { %v1556_v53 = vrot.slane %v1517_v14, 4  ;;  %v1611_v56 = vmul.f32 %v4057_v0, %v1395_v2  ;;  %v5704_v54 = vunpack.c.l.bf16 %v4314_v18  ;;  %v1613_v12 = vmul.f32 %v4057_v0, %v1396_v32 }
  0xbe   : > { %v1555_v1 = vsel %vm1438_vm0, %v1553_v34, %v1554_v45  ;;  %v1587_v36 = vadd.f32 %v1553_v34, %v1491_v23  ;;  %v1614_v40 = vmul.f32 %v4057_v0, %v1397_v47  ;;  %v1110_v8 = vmul.f32 %v3939_v62, %v5705_v21  ;;  %v5709_v23 = vld [vmem:[#allocation28_spill] sm:$0xff] }
  0xbf   : > { %v1588_v22 = vadd.f32 %v1555_v1, %v1492_v15  ;;  %v1589_v20 = vadd.f32 %v1556_v53, %v1493_v33  ;;  %v1612_v39 = vmul.f32 %v4057_v0, %v5704_v54  ;;  %v1558_v50 = vsel %vm1438_vm0, %v1556_v53, %v1557_v57  ;;  %v5711_v15 = vld [vmem:[#allocation29_spill] sm:$0xff]  ;;  %v5712_v57 = vld [vmem:[#allocation20_spill] sm:$0xff] }
  0xc0   : > { %v1590_v30 = vadd.f32 %v1558_v50, %v1494_v29  ;;  %v1649_v4 = vrot.slane %v1611_v56, 4  ;;  %v5707_v19 = vunpack.c.l.bf16 %v5706_v58  ;;  %v1652_v55 = vrot.slane %v1613_v12, 4 }
  0xc1   : > { %v1650_v13 = vrot.slane %v1612_v39, 4  ;;  %v1653_v14 = vrot.slane %v1614_v40, 4  ;;  %v1112_v42 = vmul.f32 %v3939_v62, %v5708_v48  ;;  %v5710_v34 = vunpack.c.l.bf16 %v5709_v23 }
  0xc2   : > { %v1111_v2 = vmul.f32 %v3939_v62, %v5707_v19  ;;  %v1683_v45 = vadd.f32 %v1649_v4, %v1587_v36  ;;  %v1134_v60 = vmul.f32 %v5690_v5, %v3894_v51  ;;  %v1135_v33 = vmul.f32 %v5690_v5, %v5711_v15 }
  0xc3   : > { %v1113_v32 = vmul.f32 %v3939_v62, %v5710_v34  ;;  %v1651_v47 = vsel %vm1438_vm0, %v1649_v4, %v1650_v13  ;;  %v1654_v53 = vsel %vm1438_vm0, %v1652_v55, %v1653_v14  ;;  %v1685_v1 = vadd.f32 %v1652_v55, %v1589_v20  ;;  %v5713_v62 = vld [vmem:[#allocation31_spill] sm:$0xff] }
  0xc4   : > { %v1684_v29 = vadd.f32 %v1651_v47, %v1588_v22  ;;  %v1136_v56 = vmul.f32 %v5690_v5, %v5712_v57  ;;  %v1686_v54 = vadd.f32 %v1654_v53, %v1590_v30  ;;  %v1707_v39 = vmul.f32 %v4078_v10, %v1683_v45  ;;  %v5714_v53 = vld [vmem:[#allocation4_spill] sm:$0xff] }
  0xc5   : > { %v1137_v50 = vmul.f32 %v5690_v5, %v5713_v62  ;;  %v1150_v36 = vadd.f32 %v1134_v60, %v1110_v8  ;;  %v1709_v40 = vmul.f32 %v4078_v10, %v1685_v1  ;;  %v1151_v4 = vadd.f32 %v1135_v33, %v1111_v2 }
  0xc6   : > { %v1708_v12 = vmul.f32 %v4078_v10, %v1684_v29  ;;  %v1152_v13 = vadd.f32 %v1136_v56, %v1112_v42  ;;  %v1710_v58 = vmul.f32 %v4078_v10, %v1686_v54  ;;  %v1731_v22 = vadd.f32 %v4091_v16, %v1707_v39  ;;  %v5715_v56 = vld [vmem:[#allocation5_spill] sm:$0xff]  ;;  %v5716_v39 = vld [vmem:[#allocation19_spill] sm:$0xff] }
  0xc7   : > { %v1153_v20 = vadd.f32 %v1137_v50, %v1113_v32  ;;  %v1174_v30 = vmul.f32 %v5691_v43, %v4180_v35  ;;  %v1733_v55 = vadd.f32 %v4091_v16, %v1709_v40  ;;  %v1175_v5 = vmul.f32 %v5691_v43, %v4218_v26  ;;  %v5717_v50 = vld [vmem:[#allocation21_spill] sm:$0xff]  ;;  %v1810_v35 = vld [vmem:[%s3501_s8 + $0x54] sm:$0xc] }
  0xc8   : > { %v1732_v19 = vadd.f32 %v4091_v16, %v1708_v12  ;;  %v1176_v8 = vmul.f32 %v5691_v43, %v4182_v52  ;;  %v1734_v2 = vadd.f32 %v4091_v16, %v1710_v58  ;;  %v1747_v14 = vmax.f32 %v1731_v22, 0.0 }
  0xc9   : > { %v1177_v42 = vmul.f32 %v5691_v43, %v4220_v11  ;;  %v1190_v23 = vadd.f32 %v1174_v30, %v1150_v36  ;;  %v1749_v32 = vmax.f32 %v1733_v55, 0.0  ;;  %v1191_v47 = vadd.f32 %v1175_v5, %v1151_v4 }
  0xca   : > { %v1748_v34 = vmax.f32 %v1732_v19, 0.0  ;;  %v1192_v45 = vadd.f32 %v1176_v8, %v1152_v13  ;;  %v1750_v60 = vmax.f32 %v1734_v2, 0.0  ;;  %v1786_v15 = vrot.slane %v1747_v14, 6 }
  0xcb   : > { %v1193_v33 = vadd.f32 %v1177_v42, %v1153_v20  ;;  %v1212_v26 = vmul.f32 %v5693_v46, %v5714_v53  ;;  %v1789_v1 = vrot.slane %v1749_v32, 6  ;;  %v1213_v54 = vmul.f32 %v5693_v46, %v5715_v56  ;;  %v5718_v42 = vld [vmem:[#allocation36_spill] sm:$0xff] }
  0xcc   : > { %v1787_v29 = vrot.slane %v1748_v34, 6  ;;  %v1268_v62 = vmul.f32 %v5695_v63, %v5716_v39  ;;  %v1790_v11 = vrot.slane %v1750_v60, 6  ;;  %v1269_v36 = vmul.f32 %v5695_v63, %v5717_v50 }
  0xcd   : > { %v1228_v43 = vrot.slane %v1212_v26, 2  ;;  %v1324_v12 = vmul.f32 %v5696_v44, %v3524_v6  ;;  %v1229_v4 = vrot.slane %v1213_v54, 2  ;;  %v1325_v58 = vmul.f32 %v5696_v44, %v3527_v7  ;;  %v1809_v6 = vld [vmem:[%s3501_s8 + $0x4c] sm:$0x3] }
  0xce   : > { %v1788_v40 = vsel %vm1767_vm1, %v1786_v15, %v1787_v29  ;;  %v1284_v13 = vrot.slane %v1268_v62, 2  ;;  %v1791_v46 = vsel %vm1767_vm1, %v1789_v1, %v1790_v11  ;;  %v1285_v30 = vrot.slane %v1269_v36, 2  ;;  %v5720_v15 = vld [vmem:[#allocation23_spill] sm:$0xff]  ;;  %v5723_v1 = vld [vmem:[#allocation24_spill] sm:$0xff] }
  0xcf   : > { %v1246_v22 = vadd.f32 %v1228_v43, %v1190_v23  ;;  %v1247_v20 = vadd.f32 %v1228_v43, %v1191_v47  ;;  %v1803_v19 = vpack.c.bf16 %v1791_v46, %v1788_v40  ;;  %v1248_v55 = vadd.f32 %v1229_v4, %v1192_v45  ;;  %v5721_v47 = vld [vmem:[#allocation37_spill] sm:$0xff]  ;;  %v5725_v46 = vld [vmem:[#allocation26_spill] sm:$0xff] }
  0xd0   : > { %v1249_v5 = vadd.f32 %v1229_v4, %v1193_v33  ;;  %v1340_v8 = vrot.slane %v1324_v12, 2  ;;  %v1341_v14 = vrot.slane %v1325_v58, 2  ;;  %v5719_v34 = vunpack.c.l.bf16 %v5718_v42 }
  0xd1   : > { %v1302_v63 = vadd.f32 %v1284_v13, %v1246_v22  ;;  %v1303_v2 = vadd.f32 %v1284_v13, %v1247_v20  ;;  %2798 = vrot.lane.b32.xlu1 %v1803_v19, %s3435_s9  ;;  %v1304_v60 = vadd.f32 %v1285_v30, %v1248_v55  ;;  %v1411_v23 = vmul.f32 %v4025_v3, %v5720_v15  ;;  %v5724_v13 = vld [vmem:[#allocation38_spill] sm:$0xff]  ;;  %v5726_v19 = vld [vmem:[#allocation39_spill] sm:$0xff] }
  0xd2   : > { %v1410_v32 = vmul.f32 %v4025_v3, %v5719_v34  ;;  %v1305_v44 = vadd.f32 %v1285_v30, %v1249_v5  ;;  %v5722_v26 = vunpack.c.l.bf16 %v5721_v47  ;;  %v1413_v54 = vmul.f32 %v4025_v3, %v5723_v1  ;;  %v5727_v55 = vld [vmem:[#allocation27_spill] sm:$0xff] }
  0xd3   : > { %v1358_v33 = vadd.f32 %v1340_v8, %v1302_v63  ;;  %v1359_v29 = vadd.f32 %v1340_v8, %v1303_v2  ;;  %v1360_v11 = vadd.f32 %v1341_v14, %v1304_v60  ;;  %v1446_v36 = vrot.slane %v1411_v23, 4 }
  0xd4   : > { %v1412_v45 = vmul.f32 %v4025_v3, %v5722_v26  ;;  %v1445_v62 = vrot.slane %v1410_v32, 4  ;;  %v1361_v43 = vadd.f32 %v1341_v14, %v1305_v44  ;;  %v1449_v40 = vrot.slane %v1413_v54, 4  ;;  %v4481_v26 = vld [vmem:[%s3501_s8 + $0xdc] ss:$12 sps:$4 sm:$0xff]  }
  0xd5   : > { %v1507_v58 = vmul.f32 %v4034_v24, %v5724_v13  ;;  %v1508_v22 = vmul.f32 %v4034_v24, %v5725_v46  ;;  %v1509_v3 = vmul.f32 %v4034_v24, %v5726_v19  ;;  %v1510_v5 = vmul.f32 %v4034_v24, %v5727_v55 }
  0xd6   : > { %v1448_v12 = vrot.slane %v1412_v45, 4  ;;  %v1483_v4 = vadd.f32 %v1445_v62, %v1358_v33  ;;  %v1447_v20 = vsel %vm1438_vm0, %v1445_v62, %v1446_v36  ;;  %v1603_v60 = vmul.f32 %v4057_v0, %v4275_v61  ;;  %v4484_v45 = vld [vmem:[%s3501_s8 + $0x78] sm:$0xc]  ;;  %v4490_v62 = vld [vmem:[%s3501_s8 + $0x7c] sm:$0x3] }
  0xd7   : > { %v1484_v63 = vadd.f32 %v1447_v20, %v1359_v29  ;;  %v1541_v2 = vrot.slane %v1507_v58, 4  ;;  %v1542_v14 = vrot.slane %v1508_v22, 4  ;;  %v1544_v34 = vrot.slane %v1509_v3, 4  ;;  %v4506_v3 = vld [vmem:[%s3501_s8 + $0xac] sm:$0x3] }
  0xd8   : > { %v1485_v30 = vadd.f32 %v1448_v12, %v1360_v11  ;;  %v1450_v8 = vsel %vm1438_vm0, %v1448_v12, %v1449_v40  ;;  %v1545_v32 = vrot.slane %v1510_v5, 4  ;;  %v1604_v24 = vmul.f32 %v4057_v0, %v4200_v41  ;;  %v4493_v11 = vld [vmem:[%s3501_s8 + $0x84] sm:$0xc]  ;;  %v4496_v40 = vld [vmem:[%s3501_s8 + $0x88] sm:$0x3] }
  0xd9   : > { %v1486_v42 = vadd.f32 %v1450_v8, %v1361_v43  ;;  %v1543_v44 = vsel %vm1438_vm0, %v1541_v2, %v1542_v14  ;;  %v1579_v23 = vadd.f32 %v1541_v2, %v1483_v4  ;;  %v1605_v47 = vmul.f32 %v4057_v0, %v4277_v27  ;;  %v4509_v5 = vld [vmem:[%s3501_s8 + $0xb4] sm:$0xc]  ;;  %v4512_v8 = vld [vmem:[%s3501_s8 + $0xb8] sm:$0x3] }
  0xda   : > { %v1546_v33 = vsel %vm1438_vm0, %v1544_v34, %v1545_v32  ;;  %v1580_v29 = vadd.f32 %v1543_v44, %v1484_v63  ;;  %v1581_v54 = vadd.f32 %v1544_v34, %v1485_v30  ;;  %v1606_v61 = vmul.f32 %v4057_v0, %v4202_v31  ;;  %v4501_v0 = vld [vmem:[%s3501_s8 + $0xa8] sm:$0xc] }
  0xdb   : > { %v1582_v27 = vadd.f32 %v1546_v33, %v1486_v42  ;;  %v1637_v43 = vrot.slane %v1603_v60, 4  ;;  %v1638_v36 = vrot.slane %v1604_v24, 4  ;;  %v1640_v12 = vrot.slane %v1605_v47, 4  ;;  %v1832_v42 = vld [vmem:[%s3501_s8 + $0xd8] sm:$0xc] }
  0xdc   : > { %v1641_v4 = vrot.slane %v1606_v61, 4  ;;  %v5590_v22 = vunpack.c.l.bf16 %v4484_v45  ;;  %v5589_v63 = vunpack.c.l.bf16 %v4490_v62  ;;  %v5588_v34 = vunpack.c.l.bf16 %v4493_v11  ;;  %v1833_v24 = vld [vmem:[%s3501_s8 + $0xdc] sm:$0x3]  ;;  %v1834_v47 = vld [vmem:[%s3501_s8 + $0xe4] sm:$0xc] }
  0xdd   : > { %v1639_v20 = vsel %vm1438_vm0, %v1637_v43, %v1638_v36  ;;  %v1675_v30 = vadd.f32 %v1637_v43, %v1579_v23  ;;  %v1677_v19 = vadd.f32 %v1640_v12, %v1581_v54  ;;  %v5586_v32 = vunpack.c.l.bf16 %v4496_v40  ;;  %v1835_v33 = vld [vmem:[%s3501_s8 + $0xe8] sm:$0x3]  ;;  %v4537_v36 = vld [vmem:[%s5493_s1 + $0x12] ss:$0 sm:$0xff] }
  0xde   : > { %v1642_v2 = vsel %vm1438_vm0, %v1640_v12, %v1641_v4  ;;  %v1676_v14 = vadd.f32 %v1639_v20, %v1580_v29  ;;  %v5584_v54 = vunpack.c.l.bf16 %v4501_v0  ;;  %v5585_v43 = vunpack.c.l.bf16 %v4506_v3 }
  0xdf   : > { %v1678_v60 = vadd.f32 %v1642_v2, %v1582_v27  ;;  %v1699_v44 = vmul.f32 %v4078_v10, %v1675_v30  ;;  %v1701_v23 = vmul.f32 %v4078_v10, %v1677_v19  ;;  %v5587_v29 = vunpack.c.l.bf16 %v4509_v5 }
  0xe0   : > { %v1700_v61 = vmul.f32 %v4078_v10, %v1676_v14  ;;  %v1864_v20 = vunpack.c.l.bf16 %v1832_v42  ;;  %v1865_v19 = vunpack.c.l.bf16 %v1833_v24  ;;  %v1866_v2 = vunpack.c.l.bf16 %v1834_v47 }
  0xe1   : > { %v1702_v12 = vmul.f32 %v4078_v10, %v1678_v60  ;;  %v1723_v27 = vadd.f32 %v4091_v16, %v1699_v44  ;;  %v1725_v4 = vadd.f32 %v4091_v16, %v1701_v23  ;;  %v1867_v59 = vunpack.c.l.bf16 %v1835_v33  ;;  %v4554_v33 = vld [vmem:[%s5493_s1 + $0x15] ss:$0 sm:$0xff] }
  0xe2   : > { %v1724_v30 = vadd.f32 %v4091_v16, %v1700_v61  ;;  %v1888_v10 = vmul.f32 %v4537_v36, %v5590_v22  ;;  %v1889_v42 = vmul.f32 %v4537_v36, %v5589_v63  ;;  %v1891_v44 = vmul.f32 %v4537_v36, %v5586_v32 }
  0xe3   : > { %v1726_v14 = vadd.f32 %v4091_v16, %v1702_v12  ;;  %v1739_v58 = vmax.f32 %v1723_v27, 0.0  ;;  %v1741_v13 = vmax.f32 %v1725_v4, 0.0  ;;  %v1890_v16 = vmul.f32 %v4537_v36, %v5588_v34 }
  0xe4   : > { %v1740_v60 = vmax.f32 %v1724_v30, 0.0  ;;  %v1912_v61 = vmul.f32 %v4554_v33, %v5584_v54  ;;  %v1913_v27 = vmul.f32 %v4554_v33, %v5585_v43  ;;  %v1914_v4 = vmul.f32 %v4554_v33, %v5587_v29  ;;  %v4571_v54 = vld [vmem:[%s5493_s1 + $0x18] ss:$0 sm:$0xff] }
  0xe5   : > { %v1742_v23 = vmax.f32 %v1726_v14, 0.0  ;;  %v1774_v24 = vrot.slane %v1739_v58, 6  ;;  %v1777_v47 = vrot.slane %v1741_v13, 6  ;;  %v5728_v13 = vunpack.c.l.bf16 %v4512_v8 }
  0xe6   : > { %v1775_v12 = vrot.slane %v1740_v60, 6  ;;  %v1928_v14 = vadd.f32 %v1912_v61, %v1888_v10  ;;  %v1952_v60 = vmul.f32 %v4571_v54, %v1864_v20  ;;  %v1953_v43 = vmul.f32 %v4571_v54, %v1865_v19 }
  0xe7   : > { %v1915_v58 = vmul.f32 %v4554_v33, %v5728_v13  ;;  %v1778_v30 = vrot.slane %v1742_v23, 6  ;;  %v1929_v29 = vadd.f32 %v1913_v27, %v1889_v42  ;;  %v1930_v34 = vadd.f32 %v1914_v4, %v1890_v16  ;;  %v4584_v42 = vld [vmem:[%s3501_s8 + $0x7c] sm:$0xc]  ;;  %v4587_v16 = vld [vmem:[%s3501_s8 + $0x80] sm:$0x3] }
  0xe8   : > { %v1776_v32 = vsel %vm1767_vm1, %v1774_v24, %v1775_v12  ;;  %v1954_v10 = vmul.f32 %v4571_v54, %v1866_v2  ;;  %v1955_v23 = vmul.f32 %v4571_v54, %v1867_v59  ;;  %v1968_v61 = vadd.f32 %v1952_v60, %v1928_v14  ;;  %v4592_v59 = vld [vmem:[%s5493_s1 + $0x16] ss:$0 sm:$0xff]  ;;  %v4611_v27 = vld [vmem:[%s3501_s8 + $0x88] sm:$0xc] }
  0xe9   : > { %v1931_v63 = vadd.f32 %v1915_v58, %v1891_v44  ;;  %v1779_v13 = vsel %vm1767_vm1, %v1777_v47, %v1778_v30  ;;  %v1969_v18 = vadd.f32 %v1953_v43, %v1929_v29  ;;  %v1986_v20 = vmul.f32 %v5729_v37, %v5716_v39  ;;  %v4617_v30 = vld [vmem:[%s3501_s8 + $0xac] sm:$0xc] }
  0xea   : > { %v1801_v22 = vpack.c.bf16 %v1779_v13, %v1776_v32  ;;  %v1987_v19 = vmul.f32 %v5729_v37, %v5717_v50  ;;  %v1970_v44 = vadd.f32 %v1954_v10, %v1930_v34  ;;  %v2042_v32 = vmul.f32 %v4592_v59, %v4188_v25 }
  0xeb   : > { %v1971_v2 = vadd.f32 %v1955_v23, %v1931_v63  ;;  %v2043_v43 = vmul.f32 %v4592_v59, %v4194_v38  ;;  %v2002_v37 = vrot.slane %v1986_v20, 4  ;;  %v4602_v63 = vld [vmem:[%s5493_s1 + $0x19] ss:$0 sm:$0xff]  ;;  %v5730_v34 = vunpack.c.l.bf16 %v4481_v26 }
  0xec   : > { %2794 = vrot.lane.b32.xlu0 %v1801_v22, %s3435_s9  ;;  %v2003_v29 = vrot.slane %v1987_v19, 4  ;;  %v5731_v47 = vunpack.c.h.bf16 %v4481_v26  ;;  %v4614_v22 = vld [vmem:[%s3501_s8 + $0x8c] sm:$0x3]  ;;  %v2058_v4 = vrot.slane %v2042_v32, 4  ;;  %v4622_v19 = vld [vmem:[%s3501_s8 + $0xb0] sm:$0x3] }
  0xed   : > { %v2098_v24 = vmul.f32 %v4602_v63, %v5730_v34  ;;  %v2059_v58 = vrot.slane %v2043_v43, 4  ;;  %v2024_v13 = vadd.f32 %v2002_v37, %v1968_v61  ;;  %v2025_v10 = vadd.f32 %v2002_v37, %v1969_v18  ;;  %v4625_v34 = vld [vmem:[%s3501_s8 + $0xb8] sm:$0xc] }
  0xee   : > { %v2099_v12 = vmul.f32 %v4602_v63, %v5731_v47  ;;  %v2026_v23 = vadd.f32 %v2003_v29, %v1970_v44  ;;  %v2027_v20 = vadd.f32 %v2003_v29, %v1971_v2  ;;  %v4628_v47 = vld [vmem:[%s3501_s8 + $0xbc] sm:$0x3]  ;;  %v2169_v44 = vld [vmem:[%s3501_s8 + $0xe0] sm:$0x3]  ;;  %v2171_v2 = vld [vmem:[%s3501_s8 + $0xec] sm:$0x3]  ;;  %v5613_v29 = vunpack.c.l.bf16 %v4617_v30 }
  0xef   : > { %v2114_v32 = vrot.slane %v2098_v24, 4  ;;  %v2080_v61 = vadd.f32 %v2058_v4, %v2024_v13  ;;  %v2081_v49 = vadd.f32 %v2058_v4, %v2025_v10  ;;  %v5614_v31 = vunpack.c.l.bf16 %v4622_v19 }
  0xf0   : > { %v2115_v43 = vrot.slane %v2099_v12, 4  ;;  %v2082_v18 = vadd.f32 %v2059_v58, %v2026_v23  ;;  %v2083_v37 = vadd.f32 %v2059_v58, %v2027_v20  ;;  %v5615_v41 = vunpack.c.l.bf16 %v4625_v34  ;;  %v4643_v23 = vld [vmem:[%s5493_s1 + $0x14] ss:$0 sm:$0xff] }
  0xf1   : > { %v2136_v12 = vadd.f32 %v2114_v32, %v2080_v61  ;;  %v2137_v55 = vadd.f32 %v2114_v32, %v2081_v49  ;;  %v2200_v13 = vunpack.c.l.bf16 %v2168_v17  ;;  %v2201_v4 = vunpack.c.l.bf16 %v2169_v44 }
  0xf2   : > { %v2138_v14 = vadd.f32 %v2115_v43, %v2082_v18  ;;  %v2139_v60 = vadd.f32 %v2115_v43, %v2083_v37  ;;  %v2202_v10 = vunpack.c.l.bf16 %v2170_v28  ;;  %v2203_v58 = vunpack.c.l.bf16 %v2171_v2  ;;  %v4660_v18 = vld [vmem:[%s5493_s1 + $0x17] ss:$0 sm:$0xff] }
  0xf3   : > { %v5732_v20 = vunpack.c.l.bf16 %v4584_v42  ;;  %v5733_v49 = vunpack.c.l.bf16 %v4587_v16  ;;  %v5734_v17 = vunpack.c.l.bf16 %v4611_v27  ;;  %v5735_v43 = vunpack.c.l.bf16 %v4614_v22 }
  0xf4   : > { %v2264_v37 = vmul.f32 %v4660_v18, %v5613_v29  ;;  %v2265_v44 = vmul.f32 %v4660_v18, %v5614_v31  ;;  %v2266_v2 = vmul.f32 %v4660_v18, %v5615_v41  ;;  %v1811_v29 = vld [vmem:[%s3501_s8 + $0x58] sm:$0x3]  ;;  %v4681_v31 = vld [vmem:[%s5493_s1 + $0x1a] ss:$0 sm:$0xff] }
  0xf5   : > { %v2224_v24 = vmul.f32 %v4643_v23, %v5732_v20  ;;  %v2225_v32 = vmul.f32 %v4643_v23, %v5733_v49  ;;  %v2226_v28 = vmul.f32 %v4643_v23, %v5734_v17  ;;  %v2227_v61 = vmul.f32 %v4643_v23, %v5735_v43  ;;  %v1808_v17 = vld [vmem:[%s3501_s8 + $0x48] sm:$0xc] }
  0xf6   : > { %v5736_v20 = vunpack.c.l.bf16 %v4628_v47  ;;  %v2304_v57 = vmul.f32 %v4681_v31, %v2200_v13  ;;  %v2305_v41 = vmul.f32 %v4681_v31, %v2201_v4  ;;  %v2306_v46 = vmul.f32 %v4681_v31, %v2202_v10 }
  0xf7   : > { %v2240_v43 = vadd.f32 %v2224_v24, %v2136_v12  ;;  %v2241_v9 = vadd.f32 %v2225_v32, %v2137_v55  ;;  %v2242_v7 = vadd.f32 %v2226_v28, %v2138_v14  ;;  %v2243_v52 = vadd.f32 %v2227_v61, %v2139_v60 }
  0xf8   : > { %v2267_v49 = vmul.f32 %v4660_v18, %v5736_v20  ;;  %v2307_v20 = vmul.f32 %v4681_v31, %v2203_v58  ;;  %v1840_v12 = vunpack.c.l.bf16 %v1808_v17  ;;  %v1841_v32 = vunpack.c.l.bf16 %v1809_v6 }
  0xf9   : > { %v2280_v24 = vadd.f32 %v2264_v37, %v2240_v43  ;;  %v2281_v55 = vadd.f32 %v2265_v44, %v2241_v9  ;;  %v2282_v14 = vadd.f32 %v2266_v2, %v2242_v7  ;;  %v1842_v28 = vunpack.c.l.bf16 %v1810_v35  ;;  %v4694_v7 = vld [vmem:[%s5494_s2 + $0x2] ss:$0 sm:$0xff] }
  0xfa   : > { %v2283_v60 = vadd.f32 %v2267_v49, %v2243_v52  ;;  %v1843_v61 = vunpack.c.l.bf16 %v1811_v29  ;;  %v1880_v13 = vmul.f32 %v4537_v36, %v1840_v12  ;;  %v1881_v4 = vmul.f32 %v4537_v36, %v1841_v32 }
  0xfb   : > { %v2320_v1 = vadd.f32 %v2304_v57, %v2280_v24  ;;  %v2321_v15 = vadd.f32 %v2305_v41, %v2281_v55  ;;  %v2322_v51 = vadd.f32 %v2306_v46, %v2282_v14  ;;  %v1882_v10 = vmul.f32 %v4537_v36, %v1842_v28 }
  0xfc   : > { %v2323_v56 = vadd.f32 %v2307_v20, %v2283_v60  ;;  %v1883_v58 = vmul.f32 %v4537_v36, %v1843_v61  ;;  %v5737_v41 = vunpack.c.l.bf16 %v4484_v45  ;;  %v5738_v46 = vunpack.c.l.bf16 %v4490_v62 }
  0xfd   : > { %v2344_v6 = vmul.f32 %v4694_v7, %v2320_v1  ;;  %v2345_v35 = vmul.f32 %v4694_v7, %v2321_v15  ;;  %v2346_v52 = vmul.f32 %v4694_v7, %v2322_v51  ;;  %v5739_v29 = vunpack.c.l.bf16 %v4493_v11  ;;  %v4715_v51 = vld [vmem:[%s5495_s3 + $0x2] ss:$0 sm:$0xff] }
  0xfe   : > { %v2347_v9 = vmul.f32 %v4694_v7, %v2323_v56  ;;  %v1904_v57 = vmul.f32 %v4554_v33, %v5737_v41  ;;  %v1905_v36 = vmul.f32 %v4554_v33, %v5738_v46  ;;  %v5740_v1 = vunpack.c.l.bf16 %v4496_v40 }
  0xff   : > { %v1906_v37 = vmul.f32 %v4554_v33, %v5739_v29  ;;  %v2368_v56 = vadd.f32 %v4715_v51, %v2344_v6  ;;  %v2369_v45 = vadd.f32 %v4715_v51, %v2345_v35  ;;  %v2370_v62 = vadd.f32 %v4715_v51, %v2346_v52  ;;  %v2144_v52 = vld [vmem:[%s3501_s8 + $0x4c] sm:$0xc] }
 0x100   : > { %v1907_v15 = vmul.f32 %v4554_v33, %v5740_v1  ;;  %v2371_v44 = vadd.f32 %v4715_v51, %v2347_v9  ;;  %v1920_v11 = vadd.f32 %v1904_v57, %v1880_v13  ;;  %v1921_v2 = vadd.f32 %v1905_v36, %v1881_v4  ;;  %v5746_v57 = vld [vmem:[#allocation13_spill] sm:$0xff]  ;;  %v2145_v36 = vld [vmem:[%s3501_s8 + $0x50] sm:$0x3] }
 0x101   : > { %v1922_v49 = vadd.f32 %v1906_v37, %v1882_v10  ;;  %v2384_v40 = vmax.f32 %v2368_v56, 0.0  ;;  %v2385_v33 = vmax.f32 %v2369_v45, 0.0  ;;  %v2386_v43 = vmax.f32 %v2370_v62, 0.0 }
 0x102   : > { %v1923_v17 = vadd.f32 %v1907_v15, %v1883_v58  ;;  %v2387_v20 = vmax.f32 %v2371_v44, 0.0  ;;  %v5741_v24 = vunpack.c.l.bf16 %v4501_v0  ;;  %v5742_v14 = vunpack.c.l.bf16 %v4506_v3  ;;  %v2146_v44 = vld [vmem:[%s3501_s8 + $0x58] sm:$0xc] }
 0x103   : > { %v5743_v12 = vunpack.c.l.bf16 %v4509_v5  ;;  %v5744_v28 = vunpack.c.l.bf16 %v4512_v8  ;;  %v2422_v13 = vrot.slane %v2384_v40, 4  ;;  %v2423_v4 = vrot.slane %v2385_v33, 4  ;;  %v3397_v8 = vld [vmem:[%s5493_s1 + $0x13] ss:$0 sm:$0xff] }
 0x104   : > { %v1944_v55 = vmul.f32 %v4571_v54, %v5741_v24  ;;  %v1945_v60 = vmul.f32 %v4571_v54, %v5742_v14  ;;  %v2425_v10 = vrot.slane %v2386_v43, 4  ;;  %v2426_v58 = vrot.slane %v2387_v20, 4 }
 0x105   : > { %v1946_v32 = vmul.f32 %v4571_v54, %v5743_v12  ;;  %v1947_v61 = vmul.f32 %v4571_v54, %v5744_v28  ;;  %v2424_v5 = vsel %vm1438_vm0, %v2422_v13, %v2423_v4  ;;  %v5745_v54 = vld [vmem:[#allocation22_spill] sm:$0xff]  ;;  %v1983_v46 = vmul.f32 %v3397_v8, %v5746_v57 }
 0x106   : > { %v1960_v0 = vadd.f32 %v1944_v55, %v1920_v11  ;;  %v1961_v6 = vadd.f32 %v1945_v60, %v1921_v2  ;;  %v2427_v9 = vsel %vm1438_vm0, %v2425_v10, %v2426_v58  ;;  %v1982_v41 = vmul.f32 %v3397_v8, %v5745_v54  ;;  %v2147_v11 = vld [vmem:[%s3501_s8 + $0x5c] sm:$0x3] }
 0x107   : > { %v1962_v35 = vadd.f32 %v1946_v32, %v1922_v49  ;;  %v1963_v3 = vadd.f32 %v1947_v61, %v1923_v17  ;;  %v2439_v29 = vpack.c.bf16 %v2427_v9, %v2424_v5  ;;  %v2038_v37 = vmul.f32 %v4592_v59, %v5716_v39  ;;  %v4761_v5 = vld [vmem:[%s3501_s8 + $0x10c] sm:$0xff]  }
 0x108   : > { %v2039_v1 = vmul.f32 %v4592_v59, %v5717_v50  ;;  %v2094_v15 = vmul.f32 %v4602_v63, %v4188_v25  ;;  %v1998_v56 = vrot.slane %v1982_v41, 4  ;;  %v1999_v45 = vrot.slane %v1983_v46, 4 }
 0x109   : > { %v2095_v62 = vmul.f32 %v4602_v63, %v4194_v38  ;;  %v2176_v2 = vunpack.c.l.bf16 %v2144_v52  ;;  %2810 = vrot.lane.b32.xlu1 %v2439_v29, %s3434_s11  ;;  %v2054_v49 = vrot.slane %v2038_v37, 4  ;;  %v2177_v33 = vunpack.c.l.bf16 %v2145_v36  ;;  %v2446_v37 = vld [vmem:[%s3501_s8 + $0x48] ss:$204 sps:$4 sm:$0xff]  }
 0x10a   : > { %v2055_v17 = vrot.slane %v2039_v1, 4  ;;  %v2110_v40 = vrot.slane %v2094_v15, 4  ;;  %v2016_v43 = vadd.f32 %v1998_v56, %v1960_v0  ;;  %v2017_v20 = vadd.f32 %v1998_v56, %v1961_v6 }
 0x10b   : > { %v2018_v59 = vadd.f32 %v1999_v45, %v1962_v35  ;;  %v2019_v24 = vadd.f32 %v1999_v45, %v1963_v3  ;;  %v2111_v55 = vrot.slane %v2095_v62, 4  ;;  %v2178_v14 = vunpack.c.l.bf16 %v2146_v44  ;;  %v4777_v45 = vld [vmem:[%s3501_s8 + $0x118] sm:$0xff]  }
 0x10c   : > { %v2179_v60 = vunpack.c.l.bf16 %v2147_v11  ;;  %v2216_v12 = vmul.f32 %v4643_v23, %v2176_v2  ;;  %v2072_v63 = vadd.f32 %v2054_v49, %v2016_v43  ;;  %v2073_v32 = vadd.f32 %v2054_v49, %v2017_v20  ;;  %v4783_v62 = vld [vmem:[%s3501_s8 + $0x5c] ss:$76 sps:$4 sm:$0xff]   ;;  %v4796_v20 = vld [vmem:[%s3501_s8 + $0xb0] sm:$0xff]  }
 0x10d   : > { %v2074_v28 = vadd.f32 %v2055_v17, %v2018_v59  ;;  %v2075_v61 = vadd.f32 %v2055_v17, %v2019_v24  ;;  %v2217_v13 = vmul.f32 %v4643_v23, %v2177_v33  ;;  %v2218_v4 = vmul.f32 %v4643_v23, %v2178_v14  ;;  %v4799_v59 = vld [vmem:[%s3501_s8 + $0xbc] ss:$76 sps:$4 sm:$0xff]  }
 0x10e   : > { %v2219_v10 = vmul.f32 %v4643_v23, %v2179_v60  ;;  %v5747_v58 = vunpack.c.l.bf16 %v4584_v42  ;;  %v2128_v6 = vadd.f32 %v2110_v40, %v2072_v63  ;;  %v2129_v35 = vadd.f32 %v2110_v40, %v2073_v32 }
 0x10f   : > { %v2130_v3 = vadd.f32 %v2111_v55, %v2074_v28  ;;  %v2131_v52 = vadd.f32 %v2111_v55, %v2075_v61  ;;  %v5748_v9 = vunpack.c.l.bf16 %v4587_v16  ;;  %v5749_v41 = vunpack.c.l.bf16 %v4611_v27  ;;  %v4780_v27 = vld [vmem:[%s3501_s8 + $0x50] sm:$0xff]   ;;  %v4809_v28 = vld [vmem:[%s5493_s1 + $0x1b] ss:$0 sm:$0xff] }
 0x110   : > { %v2256_v0 = vmul.f32 %v4660_v18, %v5747_v58  ;;  %v5750_v42 = vunpack.c.l.bf16 %v4614_v22  ;;  %v5751_v36 = vunpack.c.l.bf16 %v4617_v30  ;;  %v2232_v1 = vadd.f32 %v2216_v12, %v2128_v6  ;;  %v4820_v6 = vld [vmem:[%s5493_s1 + $0x1e] ss:$0 sm:$0xff] }
 0x111   : > { %v2257_v8 = vmul.f32 %v4660_v18, %v5748_v9  ;;  %v2258_v23 = vmul.f32 %v4660_v18, %v5749_v41  ;;  %v2233_v15 = vadd.f32 %v2217_v13, %v2129_v35  ;;  %v2234_v16 = vadd.f32 %v2218_v4, %v2130_v3 }
 0x112   : > { %v2259_v46 = vmul.f32 %v4660_v18, %v5750_v42  ;;  %v2296_v29 = vmul.f32 %v4681_v31, %v5751_v36  ;;  %v2235_v56 = vadd.f32 %v2219_v10, %v2131_v52  ;;  %v5752_v22 = vunpack.c.l.bf16 %v4622_v19  ;;  %v4827_v52 = vld [vmem:[%s5493_s1 + $0x21] ss:$0 sm:$0xff] }
 0x113   : > { %v5753_v30 = vunpack.c.l.bf16 %v4625_v34  ;;  %v5754_v11 = vunpack.c.l.bf16 %v4628_v47  ;;  %v476_v49 = vunpack.c.l.bf16 %v4761_v5  ;;  %v2272_v17 = vadd.f32 %v2256_v0, %v2232_v1 }
 0x114   : > { %v2297_v18 = vmul.f32 %v4681_v31, %v5752_v22  ;;  %v2273_v40 = vadd.f32 %v2257_v8, %v2233_v15  ;;  %v2274_v33 = vadd.f32 %v2258_v23, %v2234_v16  ;;  %v2275_v43 = vadd.f32 %v2259_v46, %v2235_v56 }
 0x115   : > { %v2298_v44 = vmul.f32 %v4681_v31, %v5753_v30  ;;  %v2299_v2 = vmul.f32 %v4681_v31, %v5754_v11  ;;  %v477_v19 = vunpack.c.l.bf16 %v4777_v45  ;;  %v2470_v24 = vunpack.c.l.bf16 %v2446_v37  ;;  %v4847_v30 = vld [vmem:[%s5493_s1 + $0x1f] ss:$0 sm:$0xff] }
 0x116   : > { %v2471_v34 = vunpack.c.h.bf16 %v4780_v27  ;;  %v2478_v55 = vunpack.c.h.bf16 %v4783_v62  ;;  %v2312_v47 = vadd.f32 %v2296_v29, %v2272_v17  ;;  %v2313_v14 = vadd.f32 %v2297_v18, %v2273_v40  ;;  %v4838_v29 = vld [vmem:[%s5493_s1 + $0x1c] ss:$0 sm:$0xff] }
 0x117   : > { %v2314_v31 = vadd.f32 %v2298_v44, %v2274_v33  ;;  %v2315_v60 = vadd.f32 %v2299_v2, %v2275_v43  ;;  %v2479_v12 = vunpack.c.h.bf16 %v4796_v20  ;;  %v2486_v63 = vunpack.c.h.bf16 %v4799_v59 }
 0x118   : > { %v2487_v32 = vunpack.c.h.bf16 %v2446_v37  ;;  %v2502_v61 = vmul.f32 %v4809_v28, %v2470_v24  ;;  %v2336_v13 = vmul.f32 %v4694_v7, %v2312_v47  ;;  %v2337_v4 = vmul.f32 %v4694_v7, %v2313_v14  ;;  %v4856_v24 = vld [vmem:[%s5493_s1 + $0x22] ss:$0 sm:$0xff] }
 0x119   : > { %v2338_v10 = vmul.f32 %v4694_v7, %v2314_v31  ;;  %v2339_v58 = vmul.f32 %v4694_v7, %v2315_v60  ;;  %v2503_v0 = vmul.f32 %v4809_v28, %v2471_v34  ;;  %v2518_v35 = vmul.f32 %v4820_v6, %v2478_v55 }
 0x11a   : > { %v2519_v3 = vmul.f32 %v4820_v6, %v2479_v12  ;;  %v2542_v9 = vmul.f32 %v4827_v52, %v2486_v63  ;;  %v2360_v7 = vadd.f32 %v4715_v51, %v2336_v13  ;;  %v2361_v8 = vadd.f32 %v4715_v51, %v2337_v4 }
 0x11b   : > { %v2362_v41 = vadd.f32 %v4715_v51, %v2338_v10  ;;  %v2363_v23 = vadd.f32 %v4715_v51, %v2339_v58  ;;  %v2526_v42 = vadd.f32 %v2518_v35, %v2502_v61  ;;  %v2543_v36 = vmul.f32 %v4827_v52, %v2487_v32  ;;  %v4869_v10 = vld [vmem:[%s3501_s8 + $0x1c] sm:$0xff]  }
 0x11c   : > { %v2527_v46 = vadd.f32 %v2519_v3, %v2503_v0  ;;  %v2566_v37 = vmul.f32 %v4838_v29, %v5745_v54  ;;  %v2376_v1 = vmax.f32 %v2360_v7, 0.0  ;;  %v2377_v15 = vmax.f32 %v2361_v8, 0.0  ;;  %v4887_v0 = vld [vmem:[%s3501_s8 + $0x80] sm:$0xff]  }
 0x11d   : > { %v2378_v16 = vmax.f32 %v2362_v41, 0.0  ;;  %v2379_v56 = vmax.f32 %v2363_v23, 0.0  ;;  %v2550_v22 = vadd.f32 %v2542_v9, %v2526_v42  ;;  %v2567_v51 = vmul.f32 %v4838_v29, %v5746_v57  ;;  %v3405_v35 = vld [vmem:[%s5493_s1 + $0x20] ss:$0 sm:$0xff]  ;;  %v4895_v7 = vld [vmem:[%s5493_s1 + $0x23] ss:$0 sm:$0xff] }
 0x11e   : > { %v2551_v18 = vadd.f32 %v2543_v36, %v2527_v46  ;;  %v2590_v44 = vmul.f32 %v4847_v30, %v4188_v25  ;;  %v2410_v11 = vrot.slane %v2376_v1, 4  ;;  %v2411_v2 = vrot.slane %v2377_v15, 4  ;;  %v2458_v23 = vld [vmem:[%s3501_s8 + $0xd8] ss:$20 sps:$4 sm:$0xff]   ;;  %v2459_v42 = vld [vmem:[%s3501_s8 + $0xe0] sm:$0xff]  }
 0x11f   : > { %v2413_v54 = vrot.slane %v2378_v16, 4  ;;  %v2414_v17 = vrot.slane %v2379_v56, 4  ;;  %v2574_v40 = vadd.f32 %v2566_v37, %v2550_v22  ;;  %v2591_v43 = vmul.f32 %v4847_v30, %v4194_v38 }
 0x120   : > { %v2575_v33 = vadd.f32 %v2567_v51, %v2551_v18  ;;  %v2614_v34 = vmul.f32 %v4856_v24, %v476_v49  ;;  %v2412_v55 = vsel %vm1438_vm0, %v2410_v11, %v2411_v2  ;;  %v2615_v14 = vmul.f32 %v4856_v24, %v477_v19  ;;  %v4872_v19 = vld [vmem:[%s3501_s8 + $0x28] sm:$0xff]  }
 0x121   : > { %v2415_v47 = vsel %vm1438_vm0, %v2413_v54, %v2414_v17  ;;  %v2654_v31 = vunpack.c.l.bf16 %v4780_v27  ;;  %v2598_v12 = vadd.f32 %v2590_v44, %v2574_v40  ;;  %v2655_v32 = vunpack.c.l.bf16 %v4783_v62  ;;  %v4878_v62 = vld [vmem:[%s5493_s1 + $0x1d] ss:$0 sm:$0xff] }
 0x122   : > { %v2437_v60 = vpack.c.bf16 %v2415_v47, %v2412_v55  ;;  %v2599_v63 = vadd.f32 %v2591_v43, %v2575_v33  ;;  %v2662_v61 = vunpack.c.l.bf16 %v4796_v20  ;;  %v2663_v49 = vunpack.c.l.bf16 %v4799_v59  ;;  %v4884_v59 = vld [vmem:[%s3501_s8 + $0x78] ss:$20 sps:$4 sm:$0xff]  }
 0x123   : > { %v2670_v13 = vunpack.c.h.bf16 %v4761_v5  ;;  %v2671_v4 = vunpack.c.h.bf16 %v4777_v45  ;;  %v2622_v27 = vadd.f32 %v2614_v34, %v2598_v12  ;;  %v2686_v20 = vmul.f32 %v4878_v62, %v2654_v31  ;;  %v2442_v45 = vld [vmem:[%s3501_s8 + $0x18] ss:$12 sps:$4 sm:$0xff]  }
 0x124   : > { %2806 = vrot.lane.b32.xlu0 %v2437_v60, %s3434_s11  ;;  %v2623_v58 = vadd.f32 %v2615_v14, %v2599_v63  ;;  %v2687_v5 = vmul.f32 %v4878_v62, %v2655_v32  ;;  %v2710_v3 = vmul.f32 %v3405_v35, %v2662_v61  ;;  %v2711_v9 = vmul.f32 %v3405_v35, %v2663_v49  ;;  %s3312_s11 = sshll.u32 %s5788_s24, 5 }
 0x125   : > { %v2734_v8 = vmul.f32 %v4895_v7, %v2670_v13  ;;  %v2735_v41 = vmul.f32 %v4895_v7, %v2671_v4  ;;  %v2694_v46 = vadd.f32 %v2686_v20, %v2622_v27  ;;  %v466_v37 = vunpack.c.l.bf16 %v4869_v10  ;;  %v4933_v27 = vld [vmem:[%s5495_s3 + $0x3] ss:$0 sm:$0xff]  ;;  %s5465_s18 = scalar_lea.vmem %s5499_s7, %s3312_s11 }
 0x126   : > { %v2695_v36 = vadd.f32 %v2687_v5, %v2623_v58  ;;  %v467_v1 = vunpack.c.l.bf16 %v4872_v19  ;;  %v2466_v15 = vunpack.c.l.bf16 %v2442_v45  ;;  %v2467_v16 = vunpack.c.h.bf16 %v2442_v45 }
 0x127   : > { %v2474_v56 = vunpack.c.l.bf16 %v4884_v59  ;;  %v2475_v22 = vunpack.c.h.bf16 %v4887_v0  ;;  %v2718_v18 = vadd.f32 %v2710_v3, %v2694_v46  ;;  %v2482_v44 = vunpack.c.l.bf16 %v2458_v23 }
 0x128   : > { %v2719_v51 = vadd.f32 %v2711_v9, %v2695_v36  ;;  %v2483_v11 = vunpack.c.h.bf16 %v2459_v42  ;;  %v2498_v2 = vmul.f32 %v4809_v28, %v2466_v15  ;;  %v2499_v54 = vmul.f32 %v4809_v28, %v2467_v16  ;;  %v4916_v28 = vld [vmem:[%s5494_s2 + $0x3] ss:$0 sm:$0xff] }
 0x129   : > { %v2514_v17 = vmul.f32 %v4820_v6, %v2474_v56  ;;  %v2515_v40 = vmul.f32 %v4820_v6, %v2475_v22  ;;  %v2742_v33 = vadd.f32 %v2734_v8, %v2718_v18  ;;  %v2538_v34 = vmul.f32 %v4827_v52, %v2482_v44 }
 0x12a   : > { %v2743_v43 = vadd.f32 %v2735_v41, %v2719_v51  ;;  %v2539_v55 = vmul.f32 %v4827_v52, %v2483_v11  ;;  %v2562_v31 = vmul.f32 %v4838_v29, %v466_v37  ;;  %v2563_v60 = vmul.f32 %v4838_v29, %v467_v1  ;;  %v4969_v11 = vld [vmem:[%s5493_s1 + $0x6] ss:$0 sm:$0xff] }
 0x12b   : > { %v2522_v47 = vadd.f32 %v2514_v17, %v2498_v2  ;;  %v2523_v14 = vadd.f32 %v2515_v40, %v2499_v54  ;;  %v2758_v12 = vmul.f32 %v4916_v28, %v2742_v33  ;;  %v2586_v63 = vmul.f32 %v4847_v30, %v5716_v39  ;;  %v3375_v54 = vld [vmem:[%s5496_s4 + $0x8] sm:$0xff]  }
 0x12c   : > { %v2759_v6 = vmul.f32 %v4916_v28, %v2743_v43  ;;  %v2587_v52 = vmul.f32 %v4847_v30, %v5717_v50  ;;  %v5755_v49 = vunpack.c.l.bf16 %v4481_v26  ;;  %v5756_v13 = vunpack.c.h.bf16 %v4481_v26  ;;  %v5757_v43 = vld [vmem:[#allocation5_spill] sm:$0xff] }
 0x12d   : > { %v2546_v32 = vadd.f32 %v2538_v34, %v2522_v47  ;;  %v2547_v61 = vadd.f32 %v2539_v55, %v2523_v14  ;;  %v2774_v58 = vadd.f32 %v4933_v27, %v2758_v12  ;;  %v2650_v30 = vunpack.c.h.bf16 %v4869_v10  ;;  %v3374_v10 = vld [vmem:[%s5496_s4] sm:$0xff]  }
 0x12e   : > { %v2610_v29 = vmul.f32 %v4856_v24, %v5755_v49  ;;  %v2611_v4 = vmul.f32 %v4856_v24, %v5756_v13  ;;  %v2775_v20 = vadd.f32 %v4933_v27, %v2759_v6  ;;  %v2651_v5 = vunpack.c.h.bf16 %v4872_v19  ;;  %v4949_v19 = vld [vmem:[%s5493_s1] ss:$0 sm:$0xff]  ;;  %v4989_v55 = vld [vmem:[%s5493_s1 + $0x1] ss:$0 sm:$0xff]  ;;  %v3376_v49 = vld [vmem:[%s5496_s4 + $0x10] sm:$0xff]  }
 0x12f   : > { %v2570_v45 = vadd.f32 %v2562_v31, %v2546_v32  ;;  %v2571_v3 = vadd.f32 %v2563_v60, %v2547_v61  ;;  %v2658_v9 = vunpack.c.l.bf16 %v4887_v0  ;;  %v2659_v26 = vunpack.c.h.bf16 %v4884_v59 }
 0x130   : > { %v2782_v24 = vmax.f32 %v2774_v58, 0.0  ;;  %v2783_v8 = vmax.f32 %v2775_v20, 0.0  ;;  %v2666_v41 = vunpack.c.l.bf16 %v2459_v42  ;;  %v2667_v46 = vunpack.c.h.bf16 %v2458_v23  ;;  %v4955_v42 = vld [vmem:[%s5493_s1 + $0x3] ss:$0 sm:$0xff]  ;;  %v5017_v58 = vld [vmem:[%s5493_s1 + $0x7] ss:$0 sm:$0xff] }
 0x131   : > { %v2594_v36 = vadd.f32 %v2586_v63, %v2570_v45  ;;  %v2595_v37 = vadd.f32 %v2587_v52, %v2571_v3  ;;  %v2682_v1 = vmul.f32 %v4878_v62, %v2650_v30  ;;  %v2683_v15 = vmul.f32 %v4878_v62, %v2651_v5  ;;  %v5758_v63 = vld [vmem:[#allocation18_spill] sm:$0xff] }
 0x132   : > { %v2787_v59 = vpack.c.bf16 %v2783_v8, %v2782_v24  ;;  %v2706_v0 = vmul.f32 %v3405_v35, %v2658_v9  ;;  %v2707_v16 = vmul.f32 %v3405_v35, %v2659_v26  ;;  %v2730_v23 = vmul.f32 %v4895_v7, %v2666_v41 }
 0x133   : > { %v2618_v62 = vadd.f32 %v2610_v29, %v2594_v36  ;;  %v2619_v56 = vadd.f32 %v2611_v4, %v2595_v37  ;;  %v2731_v22 = vmul.f32 %v4895_v7, %v2667_v46  ;;  %v3436_v18 = vmov 0   ;;  %v5012_v4 = vld [vmem:[%s5493_s1 + $0x4] ss:$0 sm:$0xff]  ;;  %v3377_v37 = vld [vmem:[%s5496_s4 + $0x18] sm:$0xff]  }
 0x134   : > { %2822 = vrot.lane.b32.xlu1 %v2787_v59, %s3433_s21  ;;  %2964 = vmatprep.subr.bf16.mxu0 %v3436_v18  ;;  %v355_v51 = vmul.f32 %v4949_v19, %v5746_v57  ;;  %v356_v35 = vmul.f32 %v4949_v19, %v5705_v21  ;;  %v357_v44 = vmul.f32 %v4949_v19, %v5714_v53 }
 0x135   : > { %v2690_v7 = vadd.f32 %v2682_v1, %v2618_v62  ;;  %v2691_v2 = vadd.f32 %v2683_v15, %v2619_v56  ;;  %2965 = vmatpush1.bf16.msra.mxu0 %v3374_v10  ;;  %3321 = vmatprep.subr.bf16.mxu1 %v3436_v18  ;;  %v4977_v17 = vmul.f32 %v4955_v42, %v5705_v21 }
 0x136   : > { %2966 = vmatprep.subr.bf16.mxu0 %v3436_v18  ;;  %3333 = vmatpush1.bf16.msra.mxu1 %v3374_v10  ;;  %v379_v40 = vmul.f32 %v4955_v42, %v5714_v53  ;;  %v380_v33 = vmul.f32 %v4955_v42, %v5708_v48  ;;  %v381_v34 = vmul.f32 %v4955_v42, %v5757_v43  ;;  %v5048_v10 = vld [vmem:[%s5493_s1 + $0x2] ss:$0 sm:$0xff] }
 0x137   : > { %v2714_v47 = vadd.f32 %v2706_v0, %v2690_v7  ;;  %v2715_v21 = vadd.f32 %v2707_v16, %v2691_v2  ;;  %3322 = vmatprep.subr.bf16.mxu1 %v3436_v18  ;;  %v4994_v14 = vmul.f32 %v4969_v11, %v5708_v48  ;;  %v419_v31 = vmul.f32 %v4969_v11, %v5757_v43  ;;  %v5063_v2 = vld [vmem:[%s5493_s1 + $0x5] ss:$0 sm:$0xff] }
 0x138   : > { %v395_v60 = vadd.f32 %v379_v40, %v355_v51  ;;  %v396_v12 = vadd.f32 %v380_v33, %v356_v35  ;;  %v397_v6 = vadd.f32 %v381_v34, %v357_v44  ;;  %v420_v52 = vmul.f32 %v4969_v11, %v5758_v63  ;;  %v3378_v40 = vld [vmem:[%s5496_s4 + $0x20] sm:$0xff]   ;;  %v5068_v33 = vpop.permute.xlu1 %2820  ;;  %v5759_v34 = vld [vmem:[#allocation16_spill] sm:$0xff] }
 0x139   : > { %v2738_v32 = vadd.f32 %v2730_v23, %v2714_v47  ;;  %v2739_v61 = vadd.f32 %v2731_v22, %v2715_v21  ;;  %2967 = vmatpush1.bf16.msra.mxu0 %v3375_v54  ;;  %v421_v29 = vmul.f32 %v4969_v11, %v5716_v39  ;;  %v5007_v13 = vmul.f32 %v4989_v55, %v5746_v57 }
 0x13a   : > { %2968 = vmatprep.subr.bf16.mxu0 %v3436_v18  ;;  %3334 = vmatpush1.bf16.msra.mxu1 %v3375_v54  ;;  %v435_v20 = vadd.f32 %v419_v31, %v395_v60  ;;  %v436_v30 = vadd.f32 %v420_v52, %v396_v12  ;;  %v487_v5 = vmul.f32 %v4989_v55, %v5714_v53  ;;  %v5760_v47 = vunpack.c.l.bf16 %v5759_v34  ;;  %v5761_v31 = vld [vmem:[#allocation23_spill] sm:$0xff] }
 0x13b   : > { %v2754_v45 = vmul.f32 %v4916_v28, %v2738_v32  ;;  %v2755_v3 = vmul.f32 %v4916_v28, %v2739_v61  ;;  %3323 = vmatprep.subr.bf16.mxu1 %v3436_v18  ;;  %v437_v9 = vadd.f32 %v421_v29, %v397_v6  ;;  %v502_v26 = vrot.slane %v5007_v13, 1  ;;  %v5080_v12 = vld [vmem:[%s5493_s1 + $0x8] ss:$0 sm:$0xff] }
 0x13c   : > { %v503_v24 = vrot.slane %v487_v5, 1  ;;  %v5028_v8 = vmul.f32 %v5012_v4, %v5714_v53  ;;  %v543_v41 = vmul.f32 %v5012_v4, %v5757_v43  ;;  %v5034_v46 = vmul.f32 %v5017_v58, %v5757_v43  ;;  %v5764_v34 = vld [vmem:[#allocation11_spill] sm:$0xff] }
 0x13d   : > { %v2770_v36 = vadd.f32 %v4933_v27, %v2754_v45  ;;  %v2771_v28 = vadd.f32 %v4933_v27, %v2755_v3  ;;  %2969 = vmatpush1.bf16.msra.mxu0 %v3376_v49  ;;  %v519_v1 = vadd.f32 %v502_v26, %v435_v20  ;;  %v599_v15 = vmul.f32 %v5017_v58, %v5716_v39  ;;  %v5762_v3 = vld [vmem:[#allocation24_spill] sm:$0xff] }
 0x13e   : > { %2970 = vmatprep.subr.bf16.mxu0 %v3436_v18  ;;  %3335 = vmatpush1.bf16.msra.mxu1 %v3376_v49  ;;  %v520_v27 = vadd.f32 %v503_v24, %v436_v30  ;;  %v521_v59 = vadd.f32 %v503_v24, %v437_v9  ;;  %v558_v0 = vrot.slane %v5028_v8, 1  ;;  %v559_v16 = vrot.slane %v543_v41, 1  ;;  %v3379_v41 = vld [vmem:[%s5496_s4 + $0x28] sm:$0xff]  }
 0x13f   : > { %v2778_v23 = vmax.f32 %v2770_v36, 0.0  ;;  %v2779_v62 = vmax.f32 %v2771_v28, 0.0  ;;  %3324 = vmatprep.subr.bf16.mxu1 %v3436_v18  ;;  %v614_v56 = vrot.slane %v5034_v46, 1  ;;  %v615_v22 = vrot.slane %v599_v15, 1 }
 0x140   : > { %v575_v51 = vadd.f32 %v558_v0, %v519_v1  ;;  %v576_v35 = vadd.f32 %v559_v16, %v520_v27  ;;  %v577_v44 = vadd.f32 %v559_v16, %v521_v59  ;;  %v5058_v7 = vmul.f32 %v5048_v10, %v5746_v57  ;;  %v5112_v16 = vpop.permute.xlu1 %2804 }
 0x141   : > { %v2785_v54 = vpack.c.bf16 %v2779_v62, %v2778_v23  ;;  %2971 = vmatpush1.bf16.msra.mxu0 %v3377_v37  ;;  %v675_v21 = vmul.f32 %v5048_v10, %v5760_v47  ;;  %v676_v57 = vmul.f32 %v5048_v10, %v5714_v53  ;;  %v677_v60 = vmul.f32 %v5048_v10, %v5761_v31 }
 0x142   : > { %2972 = vmatprep.subr.bf16.mxu0 %v3436_v18  ;;  %3336 = vmatpush1.bf16.msra.mxu1 %v3377_v37  ;;  %v631_v6 = vadd.f32 %v614_v56, %v575_v51  ;;  %v632_v52 = vadd.f32 %v615_v22, %v576_v35  ;;  %v633_v32 = vadd.f32 %v615_v22, %v577_v44  ;;  %v707_v61 = vrot.slane %v5058_v7, 2  ;;  %v5763_v51 = vld [vmem:[#allocation26_spill] sm:$0xff] }
 0x143   : > { %2818 = vrot.lane.b32.xlu0 %v2785_v54, %s3433_s21  ;;  %3325 = vmatprep.subr.bf16.mxu1 %v3436_v18  ;;  %v708_v49 = vrot.slane %v675_v21, 2  ;;  %v710_v29 = vrot.slane %v676_v57, 2  ;;  %v711_v20 = vrot.slane %v677_v60, 2  ;;  %v5090_v30 = vmul.f32 %v5063_v2, %v5714_v53  ;;  %v3380_v57 = vld [vmem:[%s5496_s4 + $0x30] sm:$0xff]  }
 0x144   : > { %v772_v5 = vmul.f32 %v5063_v2, %v5761_v31  ;;  %v773_v45 = vmul.f32 %v5063_v2, %v5757_v43  ;;  %v774_v9 = vmul.f32 %v5063_v2, %v5762_v3  ;;  %v5100_v24 = vmul.f32 %v5080_v12, %v5757_v43  ;;  %v2817_v31 = vpop.permute.xlu0 %2816 }
 0x145   : > { %2973 = vmatpush1.bf16.msra.mxu0 %v3378_v40  ;;  %v709_v53 = vsel %vm706_vm2, %v707_v61, %v708_v49  ;;  %v712_v36 = vsel %vm706_vm2, %v710_v29, %v711_v20  ;;  %v749_v28 = vadd.f32 %v710_v29, %v632_v52  ;;  %v803_v37 = vrot.slane %v5090_v30, 2  ;;  %v5135_v20 = vld [vmem:[%s5494_s2] ss:$0 sm:$0xff] }
 0x146   : > { %2974 = vmatprep.subr.bf16.mxu0 %v3436_v18  ;;  %3337 = vmatpush1.bf16.msra.mxu1 %v3378_v40  ;;  %v748_v1 = vadd.f32 %v709_v53, %v631_v6  ;;  %v750_v15 = vadd.f32 %v712_v36, %v633_v32  ;;  %v804_v27 = vrot.slane %v772_v5, 2  ;;  %v806_v59 = vrot.slane %v773_v45, 2 }
 0x147   : > { %3326 = vmatprep.subr.bf16.mxu1 %v3436_v18  ;;  %v807_v23 = vrot.slane %v774_v9, 2  ;;  %v868_v62 = vmul.f32 %v5080_v12, %v5762_v3  ;;  %v869_v22 = vmul.f32 %v5080_v12, %v5716_v39  ;;  %v870_v35 = vmul.f32 %v5080_v12, %v5763_v51 }
 0x148   : > { %v805_v44 = vsel %vm706_vm2, %v803_v37, %v804_v27  ;;  %v845_v54 = vadd.f32 %v806_v59, %v749_v28  ;;  %v899_v40 = vrot.slane %v5100_v24, 2  ;;  %v5765_v47 = vunpack.c.l.bf16 %v5764_v34  ;;  %v5148_v28 = vld [vmem:[%s5495_s3] ss:$0 sm:$0xff]  ;;  %v3381_v27 = vld [vmem:[%s5496_s4 + $0x38] sm:$0xff]  }
 0x149   : > { %2975 = vmatpush1.bf16.msra.mxu0 %v3379_v41  ;;  %v808_v60 = vsel %vm706_vm2, %v806_v59, %v807_v23  ;;  %v844_v6 = vadd.f32 %v805_v44, %v748_v1  ;;  %v900_v52 = vrot.slane %v868_v62, 2  ;;  %v902_v32 = vrot.slane %v869_v22, 2  ;;  %v5766_v1 = vld [vmem:[#allocation20_spill] sm:$0xff]  ;;  %v5767_v22 = vld [vmem:[#allocation7_spill] sm:$0xff] }
 0x14a   : > { %v354_v21 = vmul.f32 %v4949_v19, %v5765_v47  ;;  %2976 = vmatprep.subr.bf16.mxu0 %v3436_v18  ;;  %3338 = vmatpush1.bf16.msra.mxu1 %v3379_v41  ;;  %v846_v49 = vadd.f32 %v808_v60, %v750_v15  ;;  %v903_v29 = vrot.slane %v870_v35, 2  ;;  %v2852_v45 = vsel %vm2850_vm3, %v5112_v16, %v2817_v31 }
 0x14b   : > { %3327 = vmatprep.subr.bf16.mxu1 %v3436_v18  ;;  %v901_v9 = vsel %vm706_vm2, %v899_v40, %v900_v52  ;;  %v941_v53 = vadd.f32 %v902_v32, %v845_v54  ;;  %3296 = vmatprep.mubr.msk.bf16.mxu0 %vm2955_vm4, %v2852_v45  ;;  %v362_v15 = vmul.f32 %v4949_v19, %v5766_v1  ;;  %v5768_v54 = vld [vmem:[#allocation2_spill] sm:$0xff]  ;;  %v5770_v52 = vld [vmem:[#allocation3_spill] sm:$0xff] }
 0x14c   : > { %v394_v5 = vadd.f32 %v4977_v17, %v354_v21  ;;  %v904_v41 = vsel %vm706_vm2, %v902_v32, %v903_v29  ;;  %v940_v36 = vadd.f32 %v901_v9, %v844_v6  ;;  %v363_v62 = vmul.f32 %v4949_v19, %v5717_v50 }
 0x14d   : > { %2977 = vmatpush1.bf16.msra.mxu0 %v3380_v57  ;;  %v942_v59 = vadd.f32 %v904_v41, %v846_v49  ;;  %v964_v23 = vmul.f32 %v5135_v20, %v941_v53  ;;  %v364_v35 = vmul.f32 %v4949_v19, %v5767_v22  ;;  %v365_v34 = vmul.f32 %v4949_v19, %v5768_v54  ;;  %v3382_v49 = vld [vmem:[%s5496_s4 + $0x40] sm:$0xff]  }
 0x14e   : > { %v434_v17 = vadd.f32 %v4994_v14, %v394_v5  ;;  %2978 = vmatprep.subr.bf16.mxu0 %v3436_v18  ;;  %3339 = vmatpush1.bf16.msra.mxu1 %v3380_v57  ;;  %v963_v14 = vmul.f32 %v5135_v20, %v940_v36  ;;  %v386_v31 = vmul.f32 %v4955_v42, %v5767_v22 }
 0x14f   : > { %3328 = vmatprep.subr.bf16.mxu1 %v3436_v18  ;;  %v965_v47 = vmul.f32 %v5135_v20, %v942_v59  ;;  %v987_v21 = vadd.f32 %v5148_v28, %v964_v23  ;;  %v387_v57 = vmul.f32 %v4955_v42, %v5768_v54  ;;  %v389_v32 = vmul.f32 %v4955_v42, %v5770_v52  ;;  %v5771_v23 = vld [vmem:[#allocation9_spill] sm:$0xff] }
 0x150   : > { %v518_v44 = vadd.f32 %v502_v26, %v434_v17  ;;  %v986_v60 = vadd.f32 %v5148_v28, %v963_v14  ;;  %v5769_v26 = vld [vmem:[#allocation8_spill] sm:$0xff]  ;;  %v402_v45 = vadd.f32 %v386_v31, %v362_v15  ;;  %v427_v15 = vmul.f32 %v4969_v11, %v5770_v52 }
 0x151   : > { %v388_v6 = vmul.f32 %v4955_v42, %v5769_v26  ;;  %2979 = vmatpush1.bf16.msra.mxu0 %v3381_v27  ;;  %v988_v29 = vadd.f32 %v5148_v28, %v965_v47  ;;  %v1003_v5 = vmax.f32 %v987_v21, 0.0  ;;  %v403_v9 = vadd.f32 %v387_v57, %v363_v62  ;;  %v3383_v62 = vld [vmem:[%s5496_s4 + $0x48] sm:$0xff]  }
 0x152   : > { %v574_v13 = vadd.f32 %v558_v0, %v518_v44  ;;  %2980 = vmatprep.subr.bf16.mxu0 %v3436_v18  ;;  %3340 = vmatpush1.bf16.msra.mxu1 %v3381_v27  ;;  %v1002_v8 = vmax.f32 %v986_v60, 0.0  ;;  %v405_v41 = vadd.f32 %v389_v32, %v365_v34  ;;  %v426_v59 = vmul.f32 %v4969_v11, %v5769_v26 }
 0x153   : > { %v404_v53 = vadd.f32 %v388_v6, %v364_v35  ;;  %3329 = vmatprep.subr.bf16.mxu1 %v3436_v18  ;;  %v1004_v36 = vmax.f32 %v988_v29, 0.0  ;;  %v1037_v17 = vrot.slane %v1003_v5, 7  ;;  %v428_v46 = vmul.f32 %v4969_v11, %v5771_v23 }
 0x154   : > { %v630_v0 = vadd.f32 %v614_v56, %v574_v13  ;;  %v429_v56 = vmul.f32 %v4969_v11, %v4188_v25  ;;  %v442_v14 = vadd.f32 %v426_v59, %v402_v45  ;;  %v443_v44 = vadd.f32 %v427_v15, %v403_v9 }
 0x155   : > { %2981 = vmatpush1.bf16.msra.mxu0 %v3382_v49  ;;  %v1038_v35 = vrot.slane %v1004_v36, 7  ;;  %v490_v34 = vmul.f32 %v4989_v55, %v5717_v50  ;;  %v5206_v7 = vrot.slane %v1002_v8, 7  ;;  %v444_v47 = vadd.f32 %v428_v46, %v404_v53 }
 0x156   : > { %v747_v27 = vadd.f32 %v707_v61, %v630_v0  ;;  %2982 = vmatprep.subr.bf16.mxu0 %v3436_v18  ;;  %3341 = vmatpush1.bf16.msra.mxu1 %v3382_v49  ;;  %v445_v21 = vadd.f32 %v429_v56, %v405_v41  ;;  %v491_v57 = vmul.f32 %v4989_v55, %v5768_v54  ;;  %v3384_v49 = vld [vmem:[%s5496_s4 + $0x50] sm:$0xff]  }
 0x157   : > { %3330 = vmatprep.subr.bf16.mxu1 %v3436_v18  ;;  %v5212_v31 = vsel %vm1033_vm5, %v1037_v17, %v1038_v35  ;;  %v506_v60 = vrot.slane %v490_v34, 1  ;;  %v546_v13 = vmul.f32 %v5012_v4, %v5768_v54  ;;  %v547_v30 = vmul.f32 %v5012_v4, %v5770_v52 }
 0x158   : > { %v843_v61 = vadd.f32 %v803_v37, %v747_v27  ;;  %v602_v37 = vmul.f32 %v5017_v58, %v5770_v52  ;;  %v603_v32 = vmul.f32 %v5017_v58, %v4188_v25  ;;  %v507_v29 = vrot.slane %v491_v57, 1  ;;  %v5772_v27 = vld [vmem:[#allocation27_spill] sm:$0xff] }
 0x159   : > { %2983 = vmatpush1.bf16.msra.mxu0 %v3383_v62  ;;  %v526_v5 = vadd.f32 %v506_v60, %v442_v14  ;;  %v527_v45 = vadd.f32 %v506_v60, %v443_v44  ;;  %v562_v9 = vrot.slane %v546_v13, 1  ;;  %v682_v15 = vmul.f32 %v5048_v10, %v5717_v50 }
 0x15a   : > { %v939_v6 = vadd.f32 %v899_v40, %v843_v61  ;;  %2984 = vmatprep.subr.bf16.mxu0 %v3436_v18  ;;  %3342 = vmatpush1.bf16.msra.mxu1 %v3383_v62  ;;  %v563_v40 = vrot.slane %v547_v30, 1  ;;  %v618_v8 = vrot.slane %v602_v37, 1  ;;  %v619_v0 = vrot.slane %v603_v32, 1  ;;  %v3385_v62 = vld [vmem:[%s5496_s4 + $0x58] sm:$0xff]  }
 0x15b   : > { %3331 = vmatprep.subr.bf16.mxu1 %v3436_v18  ;;  %v528_v53 = vadd.f32 %v507_v29, %v444_v47  ;;  %v529_v41 = vadd.f32 %v507_v29, %v445_v21  ;;  %v582_v36 = vadd.f32 %v562_v9, %v526_v5  ;;  %v583_v17 = vadd.f32 %v562_v9, %v527_v45  ;;  %v5773_v47 = vld [vmem:[#allocation12_spill] sm:$0xff] }
 0x15c   : > { %v962_v24 = vmul.f32 %v5135_v20, %v939_v6  ;;  %v683_v46 = vmul.f32 %v5048_v10, %v5772_v27  ;;  %v684_v56 = vmul.f32 %v5048_v10, %v5768_v54  ;;  %v685_v21 = vmul.f32 %v5048_v10, %v5773_v47 }
 0x15d   : > { %2985 = vmatpush1.bf16.msra.mxu0 %v3384_v49  ;;  %v584_v35 = vadd.f32 %v563_v40, %v528_v53  ;;  %v585_v14 = vadd.f32 %v563_v40, %v529_v41  ;;  %v638_v44 = vadd.f32 %v618_v8, %v582_v36  ;;  %v639_v34 = vadd.f32 %v618_v8, %v583_v17  ;;  %v2793_v40 = vpop.permute.xlu0 %2792  ;;  %v5774_v53 = vld [vmem:[#allocation41_spill] sm:$0xff] }
 0x15e   : > { %v985_v59 = vadd.f32 %v5148_v28, %v962_v24  ;;  %2986 = vmatprep.subr.bf16.mxu0 %v3436_v18  ;;  %3343 = vmatpush1.bf16.msra.mxu1 %v3384_v49  ;;  %v719_v57 = vrot.slane %v682_v15, 2  ;;  %v720_v60 = vrot.slane %v683_v46, 2  ;;  %v722_v30 = vrot.slane %v684_v56, 2 }
 0x15f   : > { %3332 = vmatprep.subr.bf16.mxu1 %v3436_v18  ;;  %v640_v13 = vadd.f32 %v619_v0, %v584_v35  ;;  %v641_v6 = vadd.f32 %v619_v0, %v585_v14  ;;  %v779_v37 = vmul.f32 %v5063_v2, %v5768_v54  ;;  %v723_v5 = vrot.slane %v685_v21, 2 }
 0x160   : > { %v1001_v61 = vmax.f32 %v985_v59, 0.0  ;;  %v721_v29 = vsel %vm706_vm2, %v719_v57, %v720_v60  ;;  %v755_v45 = vadd.f32 %v719_v57, %v638_v44  ;;  %v780_v24 = vmul.f32 %v5063_v2, %v5773_v47  ;;  %v5264_v44 = vpop.permute.xlu1 %2808 }
 0x161   : > { %2987 = vmatpush1.bf16.msra.mxu0 %v3385_v62  ;;  %v756_v49 = vadd.f32 %v721_v29, %v639_v34  ;;  %v757_v9 = vadd.f32 %v722_v30, %v640_v13  ;;  %v781_v18 = vmul.f32 %v5063_v2, %v5770_v52  ;;  %v724_v0 = vsel %vm706_vm2, %v722_v30, %v723_v5  ;;  %v5775_v13 = vld [vmem:[#allocation42_spill] sm:$0xff] }
 0x162   : > { %v1034_v32 = vrot.slane %v1001_v61, 7  ;;  %3344 = vmatpush1.bf16.msra.mxu1 %v3385_v62  ;;  %v782_v41 = vmul.f32 %v5063_v2, %v5774_v53  ;;  %v815_v36 = vrot.slane %v779_v37, 2  ;;  %v758_v59 = vadd.f32 %v724_v0, %v641_v6 }
 0x163   : > { %v816_v15 = vrot.slane %v780_v24, 2  ;;  %v818_v46 = vrot.slane %v781_v18, 2  ;;  %v875_v14 = vmul.f32 %v5080_v12, %v5770_v52  ;;  %v878_v6 = vmul.f32 %v5080_v12, %v5775_v13 }
 0x164   : > { %v1036_v8 = vsel %vm1033_vm5, %v1034_v32, %v5206_v7  ;;  %v819_v56 = vrot.slane %v782_v41, 2  ;;  %v851_v35 = vadd.f32 %v815_v36, %v755_v45  ;;  %v876_v7 = vmul.f32 %v5080_v12, %v5774_v53 }
 0x165   : > { %v1066_v17 = vpack.c.bf16 %v5212_v31, %v1036_v8  ;;  %v817_v34 = vsel %vm706_vm2, %v815_v36, %v816_v15  ;;  %v853_v61 = vadd.f32 %v818_v46, %v757_v9  ;;  %v877_v31 = vmul.f32 %v5080_v12, %v4188_v25 }
 0x166   : > { %v820_v57 = vsel %vm706_vm2, %v818_v46, %v819_v56  ;;  %v852_v60 = vadd.f32 %v817_v34, %v756_v49  ;;  %v911_v37 = vrot.slane %v875_v14, 2  ;;  %v912_v32 = vrot.slane %v876_v7, 2  ;;  %v5776_v46 = vld [vmem:[#allocation10_spill] sm:$0xff] }
 0x167   : > { %v2827_v62 = vsel %vm2824_vm6, %v1066_v17, %v2793_v40  ;;  %v854_v30 = vadd.f32 %v820_v57, %v758_v59  ;;  %v914_v29 = vrot.slane %v877_v31, 2  ;;  %v915_v5 = vrot.slane %v878_v6, 2 }
 0x168   : > { %v2839_v21 = vsel %vm2837_vm7, %v2827_v62, %v5112_v16  ;;  %v2856_v45 = vsel %vm2850_vm3, %v5264_v44, %v5068_v33  ;;  %v366_v9 = vmul.f32 %v4949_v19, %v5769_v26  ;;  %v367_v16 = vmul.f32 %v4949_v19, %v5770_v52 }
 0x169   : > { %2997 = vmatmul.mubr.bf16.vlgmr.msra.gmra.mrb[0].mxu0 %v2839_v21  ;;  %v913_v49 = vsel %vm706_vm2, %v911_v37, %v912_v32  ;;  %v947_v24 = vadd.f32 %v911_v37, %v851_v35  ;;  %v949_v18 = vadd.f32 %v914_v29, %v853_v61  ;;  %3298 = vmatprep.mubr.msk.bf16.mxu1 %vm2955_vm4, %v2856_v45 }
 0x16a   : > { %v368_v40 = vmul.f32 %v4949_v19, %v5771_v23  ;;  %v916_v8 = vsel %vm706_vm2, %v914_v29, %v915_v5  ;;  %v948_v0 = vadd.f32 %v913_v49, %v852_v60  ;;  %v369_v33 = vmul.f32 %v4949_v19, %v4188_v25  ;;  %v5777_v29 = vld [vmem:[#allocation17_spill] sm:$0xff] }
 0x16b   : > { %v390_v26 = vmul.f32 %v4955_v42, %v5771_v23  ;;  %v950_v41 = vadd.f32 %v916_v8, %v854_v30  ;;  %v970_v36 = vmul.f32 %v5135_v20, %v947_v24  ;;  %v972_v17 = vmul.f32 %v5135_v20, %v949_v18 }
 0x16c   : > { %v391_v59 = vmul.f32 %v4955_v42, %v4188_v25  ;;  %v971_v15 = vmul.f32 %v5135_v20, %v948_v0  ;;  %v392_v56 = vmul.f32 %v4955_v42, %v5776_v46  ;;  %v393_v35 = vmul.f32 %v4955_v42, %v4194_v38 }
 0x16d   : > { %v406_v14 = vadd.f32 %v390_v26, %v366_v9  ;;  %v973_v7 = vmul.f32 %v5135_v20, %v950_v41  ;;  %v993_v23 = vadd.f32 %v5148_v28, %v970_v36  ;;  %v995_v62 = vadd.f32 %v5148_v28, %v972_v17  ;;  %v5779_v9 = vld [vmem:[#allocation6_spill] sm:$0xff] }
 0x16e   : > { %v407_v34 = vadd.f32 %v391_v59, %v367_v16  ;;  %v994_v61 = vadd.f32 %v5148_v28, %v971_v15  ;;  %v408_v31 = vadd.f32 %v392_v56, %v368_v40  ;;  %v409_v21 = vadd.f32 %v393_v35, %v369_v33 }
 0x16f   : > { %v430_v57 = vmul.f32 %v4969_v11, %v5776_v46  ;;  %v996_v60 = vadd.f32 %v5148_v28, %v973_v7  ;;  %v1009_v6 = vmax.f32 %v993_v23, 0.0  ;;  %v1011_v30 = vmax.f32 %v995_v62, 0.0  ;;  %v2797_v23 = vpop.permute.xlu0 %2796 }
 0x170   : > { %v431_v37 = vmul.f32 %v4969_v11, %v4194_v38  ;;  %v1010_v32 = vmax.f32 %v994_v61, 0.0  ;;  %v5778_v5 = vunpack.c.l.bf16 %v5777_v29  ;;  %v433_v16 = vmul.f32 %v4969_v11, %v5779_v9 }
 0x171   : > { %v446_v49 = vadd.f32 %v430_v57, %v406_v14  ;;  %v1012_v24 = vmax.f32 %v996_v60, 0.0  ;;  %v1046_v18 = vrot.slane %v1009_v6, 7  ;;  %v1049_v40 = vrot.slane %v1011_v30, 7 }
 0x172   : > { %v432_v45 = vmul.f32 %v4969_v11, %v5778_v5  ;;  %v447_v8 = vadd.f32 %v431_v37, %v407_v34  ;;  %v1047_v0 = vrot.slane %v1010_v32, 7  ;;  %v449_v26 = vadd.f32 %v433_v16, %v409_v21 }
 0x173   : > { %v492_v41 = vmul.f32 %v4989_v55, %v5770_v52  ;;  %v1050_v36 = vrot.slane %v1012_v24, 7  ;;  %v493_v17 = vmul.f32 %v4989_v55, %v4188_v25  ;;  %v548_v59 = vmul.f32 %v5012_v4, %v4188_v25 }
 0x174   : > { %v448_v33 = vadd.f32 %v432_v45, %v408_v31  ;;  %v549_v15 = vmul.f32 %v5012_v4, %v4194_v38  ;;  %v1048_v46 = vsel %vm1033_vm5, %v1046_v18, %v1047_v0  ;;  %v604_v35 = vmul.f32 %v5017_v58, %v4194_v38 }
 0x175   : > { %v508_v56 = vrot.slane %v492_v41, 1  ;;  %v605_v14 = vmul.f32 %v5017_v58, %v5779_v9  ;;  %v1051_v7 = vsel %vm1033_vm5, %v1049_v40, %v1050_v36  ;;  %v509_v62 = vrot.slane %v493_v17, 1 }
 0x176   : > { %v564_v34 = vrot.slane %v548_v59, 1  ;;  %v565_v61 = vrot.slane %v549_v15, 1  ;;  %v1068_v31 = vpack.c.bf16 %v1051_v7, %v1048_v46  ;;  %v620_v60 = vrot.slane %v604_v35, 1 }
 0x177   : > { %v530_v21 = vadd.f32 %v508_v56, %v446_v49  ;;  %v531_v57 = vadd.f32 %v508_v56, %v447_v8  ;;  %v532_v6 = vadd.f32 %v509_v62, %v448_v33  ;;  %v533_v30 = vadd.f32 %v509_v62, %v449_v26 }
 0x178   : > { %v621_v37 = vrot.slane %v605_v14, 1  ;;  %v686_v32 = vmul.f32 %v5048_v10, %v5770_v52  ;;  %v2833_v29 = vsel %vm2824_vm6, %v1068_v31, %v2797_v23  ;;  %v687_v16 = vmul.f32 %v5048_v10, %v5774_v53  ;;  %v5780_v14 = vld [vmem:[#allocation43_spill] sm:$0xff] }
 0x179   : > { %v586_v5 = vadd.f32 %v564_v34, %v530_v21  ;;  %v587_v45 = vadd.f32 %v564_v34, %v531_v57  ;;  %v2845_v24 = vsel %vm2837_vm7, %v2833_v29, %v5264_v44  ;;  %v588_v18 = vadd.f32 %v565_v61, %v532_v6 }
 0x17a   : > { %v589_v49 = vadd.f32 %v565_v61, %v533_v30  ;;  %v688_v40 = vmul.f32 %v5048_v10, %v4188_v25  ;;  %3013 = vmatmul.mubr.bf16.vlgmr.msra.gmra.mrb[0].mxu1 %v2845_v24  ;;  %v689_v52 = vmul.f32 %v5048_v10, %v5775_v13  ;;  %v725_v33 = vrot.slane %v686_v32, 2 }
 0x17b   : > { %v642_v8 = vadd.f32 %v620_v60, %v586_v5  ;;  %v643_v0 = vadd.f32 %v620_v60, %v587_v45  ;;  %v644_v26 = vadd.f32 %v621_v37, %v588_v18  ;;  %v726_v36 = vrot.slane %v687_v16, 2  ;;  %v5781_v5 = vld [vmem:[#allocation30_spill] sm:$0xff] }
 0x17c   : > { %v645_v41 = vadd.f32 %v621_v37, %v589_v49  ;;  %v728_v17 = vrot.slane %v688_v40, 2  ;;  %v729_v53 = vrot.slane %v689_v52, 2  ;;  %v783_v44 = vmul.f32 %v5063_v2, %v4188_v25 }
 0x17d   : > { %v759_v59 = vadd.f32 %v725_v33, %v642_v8  ;;  %v784_v15 = vmul.f32 %v5063_v2, %v5775_v13  ;;  %v727_v46 = vsel %vm706_vm2, %v725_v33, %v726_v36  ;;  %v785_v35 = vmul.f32 %v5063_v2, %v4194_v38 }
 0x17e   : > { %v761_v56 = vadd.f32 %v728_v17, %v644_v26  ;;  %v786_v7 = vmul.f32 %v5063_v2, %v5780_v14  ;;  %v730_v23 = vsel %vm706_vm2, %v728_v17, %v729_v53  ;;  %v760_v62 = vadd.f32 %v727_v46, %v643_v0 }
 0x17f   : > { %v821_v34 = vrot.slane %v783_v44, 2  ;;  %v822_v61 = vrot.slane %v784_v15, 2  ;;  %v762_v31 = vadd.f32 %v730_v23, %v645_v41  ;;  %v824_v21 = vrot.slane %v785_v35, 2 }
 0x180   : > { %v825_v25 = vrot.slane %v786_v7, 2  ;;  %v879_v13 = vmul.f32 %v5080_v12, %v4194_v38  ;;  %v880_v6 = vmul.f32 %v5080_v12, %v5780_v14  ;;  %v881_v30 = vmul.f32 %v5080_v12, %v5779_v9 }
 0x181   : > { %v823_v57 = vsel %vm706_vm2, %v821_v34, %v822_v61  ;;  %v855_v60 = vadd.f32 %v821_v34, %v759_v59  ;;  %v857_v29 = vadd.f32 %v824_v21, %v761_v56  ;;  %v5782_v45 = vunpack.c.l.bf16 %v5781_v5 }
 0x182   : > { %v826_v37 = vsel %vm706_vm2, %v824_v21, %v825_v25  ;;  %v856_v32 = vadd.f32 %v823_v57, %v760_v62  ;;  %v917_v18 = vrot.slane %v879_v13, 2  ;;  %v918_v38 = vrot.slane %v880_v6, 2 }
 0x183   : > { %v882_v16 = vmul.f32 %v5080_v12, %v5782_v45  ;;  %v858_v24 = vadd.f32 %v826_v37, %v762_v31  ;;  %v920_v49 = vrot.slane %v881_v30, 2  ;;  %v358_v8 = vmul.f32 %v4949_v19, %v5708_v48 }
 0x184   : > { %v359_v0 = vmul.f32 %v4949_v19, %v5757_v43  ;;  %v360_v9 = vmul.f32 %v4949_v19, %v5758_v63  ;;  %v919_v52 = vsel %vm706_vm2, %v917_v18, %v918_v38  ;;  %v951_v33 = vadd.f32 %v917_v18, %v855_v60 }
 0x185   : > { %v921_v40 = vrot.slane %v882_v16, 2  ;;  %v953_v26 = vadd.f32 %v920_v49, %v857_v29  ;;  %v361_v41 = vmul.f32 %v4949_v19, %v5716_v39  ;;  %v952_v17 = vadd.f32 %v919_v52, %v856_v32 }
 0x186   : > { %v382_v53 = vmul.f32 %v4955_v42, %v5758_v63  ;;  %v383_v48 = vmul.f32 %v4955_v42, %v5716_v39  ;;  %v974_v44 = vmul.f32 %v5135_v20, %v951_v33  ;;  %v384_v46 = vmul.f32 %v4955_v42, %v5766_v1 }
 0x187   : > { %v922_v36 = vsel %vm706_vm2, %v920_v49, %v921_v40  ;;  %v976_v15 = vmul.f32 %v5135_v20, %v953_v26  ;;  %v975_v56 = vmul.f32 %v5135_v20, %v952_v17  ;;  %v385_v19 = vmul.f32 %v4955_v42, %v5717_v50 }
 0x188   : > { %v954_v59 = vadd.f32 %v922_v36, %v858_v24  ;;  %v398_v35 = vadd.f32 %v382_v53, %v358_v8  ;;  %v997_v63 = vadd.f32 %v5148_v28, %v974_v44  ;;  %v399_v23 = vadd.f32 %v383_v48, %v359_v0 }
 0x189   : > { %v999_v7 = vadd.f32 %v5148_v28, %v976_v15  ;;  %v998_v62 = vadd.f32 %v5148_v28, %v975_v56  ;;  %v400_v34 = vadd.f32 %v384_v46, %v360_v9  ;;  %v422_v61 = vmul.f32 %v4969_v11, %v5766_v1 }
 0x18a   : > { %v977_v14 = vmul.f32 %v5135_v20, %v954_v59  ;;  %v423_v31 = vmul.f32 %v4969_v11, %v5717_v50  ;;  %v401_v42 = vadd.f32 %v385_v19, %v361_v41  ;;  %v424_v25 = vmul.f32 %v4969_v11, %v5767_v22 }
 0x18b   : > { %v1013_v13 = vmax.f32 %v997_v63, 0.0  ;;  %v425_v57 = vmul.f32 %v4969_v11, %v5768_v54  ;;  %v1014_v60 = vmax.f32 %v998_v62, 0.0  ;;  %v1015_v6 = vmax.f32 %v999_v7, 0.0 }
 0x18c   : > { %v1000_v21 = vadd.f32 %v5148_v28, %v977_v14  ;;  %v438_v30 = vadd.f32 %v422_v61, %v398_v35  ;;  %v439_v37 = vadd.f32 %v423_v31, %v399_v23  ;;  %v440_v29 = vadd.f32 %v424_v25, %v400_v34 }
 0x18d   : > { %v488_v1 = vmul.f32 %v4989_v55, %v5757_v43  ;;  %v489_v5 = vmul.f32 %v4989_v55, %v5716_v39  ;;  %v441_v45 = vadd.f32 %v425_v57, %v401_v42  ;;  %v544_v22 = vmul.f32 %v5012_v4, %v5716_v39 }
 0x18e   : > { %v1016_v32 = vmax.f32 %v1000_v21, 0.0  ;;  %v545_v16 = vmul.f32 %v5012_v4, %v5717_v50  ;;  %v600_v11 = vmul.f32 %v5017_v58, %v5717_v50  ;;  %v1052_v24 = vrot.slane %v1013_v13, 7 }
 0x18f   : > { %v504_v18 = vrot.slane %v488_v1, 1  ;;  %v505_v38 = vrot.slane %v489_v5, 1  ;;  %v601_v49 = vmul.f32 %v5017_v58, %v5768_v54  ;;  %v1053_v40 = vrot.slane %v1014_v60, 7 }
 0x190   : > { %v1055_v8 = vrot.slane %v1015_v6, 7  ;;  %v560_v0 = vrot.slane %v544_v22, 1  ;;  %v561_v55 = vrot.slane %v545_v16, 1  ;;  %v616_v26 = vrot.slane %v600_v11, 1  ;;  %v2799_v6 = vpop.permute.xlu1 %2798 }
 0x191   : > { %v522_v9 = vadd.f32 %v504_v18, %v438_v30  ;;  %v523_v52 = vadd.f32 %v504_v18, %v439_v37  ;;  %v524_v33 = vadd.f32 %v505_v38, %v440_v29  ;;  %v525_v41 = vadd.f32 %v505_v38, %v441_v45 }
 0x192   : > { %v617_v36 = vrot.slane %v601_v49, 1  ;;  %v678_v4 = vmul.f32 %v5048_v10, %v5757_v43  ;;  %v679_v17 = vmul.f32 %v5048_v10, %v5762_v3  ;;  %v1056_v53 = vrot.slane %v1016_v32, 7 }
 0x193   : > { %v578_v48 = vadd.f32 %v560_v0, %v522_v9  ;;  %v579_v59 = vadd.f32 %v560_v0, %v523_v52  ;;  %v580_v58 = vadd.f32 %v561_v55, %v524_v33  ;;  %v581_v44 = vadd.f32 %v561_v55, %v525_v41 }
 0x194   : > { %v680_v15 = vmul.f32 %v5048_v10, %v5716_v39  ;;  %v681_v46 = vmul.f32 %v5048_v10, %v5763_v51  ;;  %v713_v56 = vrot.slane %v678_v4, 2  ;;  %v714_v63 = vrot.slane %v679_v17, 2  ;;  %v2811_v33 = vpop.permute.xlu1 %2810 }
 0x195   : > { %v634_v19 = vadd.f32 %v616_v26, %v578_v48  ;;  %v635_v35 = vadd.f32 %v616_v26, %v579_v59  ;;  %v636_v14 = vadd.f32 %v617_v36, %v580_v58  ;;  %v637_v43 = vadd.f32 %v617_v36, %v581_v44 }
 0x196   : > { %v716_v7 = vrot.slane %v680_v15, 2  ;;  %v717_v23 = vrot.slane %v681_v46, 2  ;;  %v775_v3 = vmul.f32 %v5063_v2, %v5716_v39  ;;  %v715_v62 = vsel %vm706_vm2, %v713_v56, %v714_v63 }
 0x197   : > { %v751_v34 = vadd.f32 %v713_v56, %v634_v19  ;;  %v776_v61 = vmul.f32 %v5063_v2, %v5763_v51  ;;  %v777_v10 = vmul.f32 %v5063_v2, %v5717_v50  ;;  %v752_v21 = vadd.f32 %v715_v62, %v635_v35  ;;  %v2795_v56 = vpop.permute.xlu0 %2794 }
 0x198   : > { %v718_v31 = vsel %vm706_vm2, %v716_v7, %v717_v23  ;;  %v753_v42 = vadd.f32 %v716_v7, %v636_v14  ;;  %v778_v25 = vmul.f32 %v5063_v2, %v5772_v27  ;;  %v809_v57 = vrot.slane %v775_v3, 2 }
 0x199   : > { %v754_v13 = vadd.f32 %v718_v31, %v637_v43  ;;  %v810_v60 = vrot.slane %v776_v61, 2  ;;  %v812_v39 = vrot.slane %v777_v10, 2  ;;  %v871_v37 = vmul.f32 %v5080_v12, %v5717_v50  ;;  %v3300_v10 = vld [vmem:[%s5497_s5] ss:$0 sm:$0xff] }
 0x19a   : > { %v813_v30 = vrot.slane %v778_v25, 2  ;;  %v872_v51 = vmul.f32 %v5080_v12, %v5772_v27  ;;  %v873_v32 = vmul.f32 %v5080_v12, %v5768_v54  ;;  %v847_v1 = vadd.f32 %v809_v57, %v751_v34 }
 0x19b   : > { %v811_v29 = vsel %vm706_vm2, %v809_v57, %v810_v60  ;;  %v849_v5 = vadd.f32 %v812_v39, %v753_v42  ;;  %v874_v2 = vmul.f32 %v5080_v12, %v5773_v47  ;;  %v905_v16 = vrot.slane %v871_v37, 2  ;;  %v2807_v7 = vpop.permute.xlu0 %2806 }
 0x19c   : > { %v814_v45 = vsel %vm706_vm2, %v812_v39, %v813_v30  ;;  %v848_v22 = vadd.f32 %v811_v29, %v752_v21  ;;  %v906_v11 = vrot.slane %v872_v51, 2  ;;  %v908_v50 = vrot.slane %v873_v32, 2  ;;  %v3301_v21 = vld [vmem:[%s5498_s6] ss:$0 sm:$0xff] }
 0x19d   : > { %v850_v18 = vadd.f32 %v814_v45, %v754_v13  ;;  %v909_v38 = vrot.slane %v874_v2, 2  ;;  %v1054_v27 = vsel %vm1033_vm5, %v1052_v24, %v1053_v40  ;;  %v943_v54 = vadd.f32 %v905_v16, %v847_v1 }
 0x19e   : > { %v907_v49 = vsel %vm706_vm2, %v905_v16, %v906_v11  ;;  %v1057_v0 = vsel %vm1033_vm5, %v1055_v8, %v1056_v53  ;;  %v945_v52 = vadd.f32 %v908_v50, %v849_v5 }
 0x19f   : > { %v910_v55 = vsel %vm706_vm2, %v908_v50, %v909_v38  ;;  %v944_v9 = vadd.f32 %v907_v49, %v848_v22  ;;  %v966_v47 = vmul.f32 %v5135_v20, %v943_v54  ;;  %v1069_v36 = vpack.c.bf16 %v1057_v0, %v1054_v27 }
 0x1a0   : > { %v946_v12 = vadd.f32 %v910_v55, %v850_v18  ;;  %v968_v41 = vmul.f32 %v5135_v20, %v945_v52 }
 0x1a1   : > { %v967_v26 = vmul.f32 %v5135_v20, %v944_v9  ;;  %v989_v40 = vadd.f32 %v5148_v28, %v966_v47  ;;  %v2836_v53 = vsel %vm2824_vm6, %v1069_v36, %v2799_v6 }
 0x1a2   : > { %v969_v24 = vmul.f32 %v5135_v20, %v946_v12  ;;  %v991_v8 = vadd.f32 %v5148_v28, %v968_v41  ;;  %v2848_v20 = vsel %vm2837_vm7, %v2836_v53, %v2811_v33 }
 0x1a3   : > { %v990_v4 = vadd.f32 %v5148_v28, %v967_v26  ;;  %v1005_v48 = vmax.f32 %v989_v40, 0.0 }
 0x1a4   : > { %v992_v17 = vadd.f32 %v5148_v28, %v969_v24  ;;  %v1007_v44 = vmax.f32 %v991_v8, 0.0 }
 0x1a5   : > { %v1006_v58 = vmax.f32 %v990_v4, 0.0  ;;  %v1040_v19 = vrot.slane %v1005_v48, 7 }
 0x1a6   : > { %v2823_v59 = vpop.permute.xlu1 %2822  ;;  %v1008_v15 = vmax.f32 %v992_v17, 0.0  ;;  %v1043_v14 = vrot.slane %v1007_v44, 7 }
 0x1a7   : > { %v2858_v46 = vsel %vm2850_vm3, %v2811_v33, %v2823_v59  ;;  %v1041_v35 = vrot.slane %v1006_v58, 7 }
 0x1a8   : > { %3299 = vmatprep.mubr.msk.bf16.mxu1 %vm2955_vm4, %v2858_v46  ;;  %v1044_v63 = vrot.slane %v1008_v15, 7 }
 0x1a9   : > { %3021 = vmatmul.mubr.bf16.gmra.mrb[4].mxu1 %v2848_v20  ;;  %v1042_v28 = vsel %vm1033_vm5, %v1040_v19, %v1041_v35 }
 0x1aa   : > { %v1045_v43 = vsel %vm1033_vm5, %v1043_v14, %v1044_v63 }
 0x1ab   : > { %v1067_v23 = vpack.c.bf16 %v1045_v43, %v1042_v28 }
 0x1ad   : > { %v2830_v62 = vsel %vm2824_vm6, %v1067_v23, %v2795_v56 }
 0x1ae   : > { %v2842_v61 = vsel %vm2837_vm7, %v2830_v62, %v2807_v7 }
 0x1b5   : > { %v2819_v3 = vpop.permute.xlu0 %2818 }
 0x1b6   : > { %v2854_v34 = vsel %vm2850_vm3, %v2807_v7, %v2819_v3 }
 0x1b7   : > { %3297 = vmatprep.mubr.msk.bf16.mxu0 %vm2955_vm4, %v2854_v34 }
 0x1b8   : > { %3005 = vmatmul.mubr.bf16.gmra.mrb[4].mxu0 %v2842_v61 }
 0x23c   : > { %v2998_v31 = vpop.f32.mrb[0].mxu0 }
 0x23d   : > { %v3036_v42 = vmul.f32 %v3300_v10, %v2998_v31  ;;  %v3000_v25 = vpop.f32.mrb[1].mxu0 }
 0x23e   : > { %v3001_v13 = vpop.f32.mrb[2].mxu0 }
 0x23f   : > { %v3051_v57 = vadd.f32 %v3301_v21, %v3036_v42  ;;  %v3037_v60 = vmul.f32 %v3300_v10, %v3001_v13  ;;  %v3003_v39 = vpop.f32.mrb[3].mxu0 }
 0x241   : > { %v3059_v6 = vmax.f32 %v3051_v57, 0.0  ;;  %v3052_v30 = vadd.f32 %v3301_v21, %v3037_v60 }
 0x243   : > { %v3313_v37 = vpack.c.bf16 %v3059_v6, %v3059_v6  ;;  %v3060_v51 = vmax.f32 %v3052_v30, 0.0 }
 0x245   : > { %3100 = vst.msk [vmem:[%s5465_s18] sm:$0xf] %vm3099_vm8, %v3313_v37  ;;  %v3314_v32 = vpack.c.bf16 %v3060_v51, %v3060_v51 }
 0x247   : > { %3101 = vst.msk [vmem:[%s5465_s18 + $0x4] sm:$0xf] %vm3099_vm8, %v3314_v32 }
 0x24d   : > { %v3014_v29 = vpop.f32.mrb[0].mxu1 }
 0x24e   : > { %v3040_v1 = vmul.f32 %v3300_v10, %v3014_v29  ;;  %v3016_v5 = vpop.f32.mrb[1].mxu1 }
 0x24f   : > { %v3017_v2 = vpop.f32.mrb[2].mxu1 }
 0x250   : > { %v3055_v45 = vadd.f32 %v3301_v21, %v3040_v1  ;;  %v3041_v22 = vmul.f32 %v3300_v10, %v3017_v2  ;;  %v3019_v16 = vpop.f32.mrb[3].mxu1 }
 0x252   : > { %v3063_v11 = vmax.f32 %v3055_v45, 0.0  ;;  %v3056_v18 = vadd.f32 %v3301_v21, %v3041_v22 }
 0x254   : > { %v3317_v50 = vpack.c.bf16 %v3063_v11, %v3063_v11  ;;  %v3064_v38 = vmax.f32 %v3056_v18, 0.0 }
 0x256   : > { %3104 = vst.msk [vmem:[%s5465_s18 + $0x10] sm:$0xf] %vm3099_vm8, %v3317_v50  ;;  %v3318_v27 = vpack.c.bf16 %v3064_v38, %v3064_v38 }
 0x258   : > { %3105 = vst.msk [vmem:[%s5465_s18 + $0x14] sm:$0xf] %vm3099_vm8, %v3318_v27 }
 0x27c   : > { %v3022_v49 = vpop.f32.mrb[4].mxu1 }
 0x27d   : > { %v3042_v54 = vmul.f32 %v3300_v10, %v3022_v49  ;;  %v3024_v0 = vpop.f32.mrb[5].mxu1 }
 0x27e   : > { %v3025_v55 = vpop.f32.mrb[6].mxu1 }
 0x27f   : > { %v3057_v9 = vadd.f32 %v3301_v21, %v3042_v54  ;;  %v3043_v52 = vmul.f32 %v3300_v10, %v3025_v55  ;;  %v3027_v12 = vpop.f32.mrb[7].mxu1 }
 0x281   : > { %v3065_v47 = vmax.f32 %v3057_v9, 0.0  ;;  %v3058_v33 = vadd.f32 %v3301_v21, %v3043_v52 }
 0x283   : > { %v3319_v26 = vpack.c.bf16 %v3065_v47, %v3065_v47  ;;  %v3066_v41 = vmax.f32 %v3058_v33, 0.0 }
 0x285   : > { %3106 = vst.msk [vmem:[%s5465_s18 + $0x18] sm:$0xf] %vm3099_vm8, %v3319_v26  ;;  %v3320_v36 = vpack.c.bf16 %v3066_v41, %v3066_v41 }
 0x287   : > { %3107 = vst.msk [vmem:[%s5465_s18 + $0x1c] sm:$0xf] %vm3099_vm8, %v3320_v36 }
 0x28b   : > { %v3006_v24 = vpop.f32.mrb[4].mxu0 }
 0x28c   : > { %v3038_v40 = vmul.f32 %v3300_v10, %v3006_v24  ;;  %v3008_v4 = vpop.f32.mrb[5].mxu0 }
 0x28d   : > { %v3009_v8 = vpop.f32.mrb[6].mxu0 }
 0x28e   : > { %v3053_v17 = vadd.f32 %v3301_v21, %v3038_v40  ;;  %v3039_v53 = vmul.f32 %v3300_v10, %v3009_v8  ;;  %v3011_v48 = vpop.f32.mrb[7].mxu0 }
 0x290   : > { %v3061_v59 = vmax.f32 %v3053_v17, 0.0  ;;  %v3054_v58 = vadd.f32 %v3301_v21, %v3039_v53 }
 0x292   : > { %v3315_v44 = vpack.c.bf16 %v3061_v59, %v3061_v59  ;;  %v3062_v15 = vmax.f32 %v3054_v58, 0.0 }
 0x294   : > { %3102 = vst.msk [vmem:[%s5465_s18 + $0x8] sm:$0xf] %vm3099_vm8, %v3315_v44  ;;  %v3316_v46 = vpack.c.bf16 %v3062_v15, %v3062_v15 }
 0x296   : > { %3103 = vst.msk [vmem:[%s5465_s18 + $0xc] sm:$0xf] %vm3099_vm8, %v3316_v46 }
 0x297 PF: > { %s17_s26 = sadd.s32 1, %s3431_s26   ;;  %s5783_s24 = smov %s3427_s25 }
 0x298   : > { %p14_p5 = scmp.ge.s32.totalorder %s17_s26, 4   ;;  %s5784_s25 = smov %s5786_s27 }
 0x29a   :  { %16 = sbr.rel (!%p14_p5) target bundleno = 2 (0x2), region = 120 }

</bundles_post_ra>
